<compile_context>
chip_gen: v5e
topology: v5e:2x2
jax: 0.10.0
libtpu: 0.0.40
codegen_flags: <defaults>
</compile_context>

<pallas_src>
import functools

import numpy as np
import jax
import jax.numpy as jnp
from jax.experimental import pallas as pl
from jax.experimental.pallas import tpu as pltpu


IN_CHANNELS = 4
IN_CHANNELS_LIST = [8, 16, 32]   # channels of backbone layers "0","1","2"
OUT_CHANNELS = 16                # FPN out_channels


# ----------------------------------------------------------------------------
# Parameter construction (standard HWIO convs; deterministic, in-script)
# ----------------------------------------------------------------------------
def _conv_params(key, kh, kw, cin, cout):
    kw_, kb_ = jax.random.split(key)
    fan_in = kh * kw * cin
    w = jax.random.normal(kw_, (kh, kw, cin, cout), jnp.float32) / jnp.sqrt(float(fan_in))
    b = 0.01 * jax.random.normal(kb_, (cout,), jnp.float32)
    return w, b


def init_params(seed=0):
    key = jax.random.PRNGKey(seed)
    keys = jax.random.split(key, 16)
    p = {}
    p["body0"] = _conv_params(keys[0], 3, 3, IN_CHANNELS, IN_CHANNELS_LIST[0])          # s1 p1
    p["body1"] = _conv_params(keys[1], 3, 3, IN_CHANNELS_LIST[0], IN_CHANNELS_LIST[1])  # s2 p1
    p["body2"] = _conv_params(keys[2], 3, 3, IN_CHANNELS_LIST[1], IN_CHANNELS_LIST[2])  # s2 p1
    for i, cin in enumerate(IN_CHANNELS_LIST):
        p[f"inner{i}"] = _conv_params(keys[3 + i], 1, 1, cin, OUT_CHANNELS)
        p[f"layer{i}"] = _conv_params(keys[6 + i], 3, 3, OUT_CHANNELS, OUT_CHANNELS)
    return p


# ----------------------------------------------------------------------------
# Host-side folding of conv weights into lane-packed matmul operands.
#
# Activation 2D layout per image:  rows  = (row-)padded image rows,
#                                  lanes = col * C + channel        (NO column pad)
# Output 2D layout per image:      rows  = output rows, lanes = out_col * Cout + cout.
# ----------------------------------------------------------------------------
def _fold_conv(w, b, W_in, stride, pad):
    """Returns (Wbig[kh, W_in*cin, Wo*cout], bias_tiled[1, Wo*cout]).

    Column taps, column stride, bias tiling AND the column zero-padding are folded
    into the weights: only taps whose input column lands inside [0, W_in) are emitted,
    so the contraction dim is exactly W_in*cin (a multiple of 128 for every internal
    level here) and the activation scratches carry no column pad."""
    w = np.asarray(w, np.float32)
    b = np.asarray(b, np.float32)
    kh, kw, cin, cout = w.shape
    Wo = (W_in + 2 * pad - kw) // stride + 1
    Wbig = np.zeros((kh, W_in * cin, Wo * cout), np.float32)
    for dy in range(kh):
        for j in range(Wo):
            for dx in range(kw):
                q = stride * j + dx - pad            # input column (unpadded coords)
                if 0 <= q < W_in:
                    Wbig[dy, q * cin:(q + 1) * cin, j * cout:(j + 1) * cout] = w[dy, dx]
    bt = np.tile(b, Wo)[None, :]
    return Wbig, bt


def _row_select(Ho, Hp_in, stride):
    """S[dy] @ X picks row-padded input rows stride*i + dy (row taps of a strided conv)."""
    S = np.zeros((3, Ho, Hp_in), np.float32)
    for dy in range(3):
        for i in range(Ho):
            S[dy, i, stride * i + dy] = 1.0
    return S


def _upsample_mats(h, w, c):
    """Nearest 2x upsample as Ur @ (X @ Uc) in the lane-packed layout."""
    Uc = np.zeros((w * c, 2 * w * c), np.float32)
    for j in range(w):
        for cc in range(c):
            Uc[j * c + cc, (2 * j) * c + cc] = 1.0
            Uc[j * c + cc, (2 * j + 1) * c + cc] = 1.0
    Ur = np.zeros((2 * h, h), np.float32)
    for i in range(2 * h):
        Ur[i, i // 2] = 1.0
    return Uc, Ur


def fold_params(params, H, W):
    CIN = IN_CHANNELS
    C0, C1, C2 = IN_CHANNELS_LIST
    OC = OUT_CHANNELS
    H0, W0 = H, W
    H1, W1 = (H0 + 2 - 3) // 2 + 1, (W0 + 2 - 3) // 2 + 1    # 3x3 stride-2 pad-1
    H2, W2 = (H1 + 2 - 3) // 2 + 1, (W1 + 2 - 3) // 2 + 1
    # TODO(synk): odd pyramid sizes would need F.interpolate(size=...) semantics;
    # the fused nearest-2x upsample below assumes exact 2x between levels.
    assert H0 == 2 * H1 and W0 == 2 * W1 and H1 == 2 * H2 and W1 == 2 * W2
    assert H2 % 2 == 0 and W2 % 2 == 0
    hp, wp = H2 // 2, W2 // 2
    slabw = 2 * W2 * OC                       # lane width of the packed out2+pool slab
    assert slabw % 128 == 0
    assert hp * wp * OC <= slabw              # the whole pool level fits in one slab row

    ops = {}
    ops["w0"], ops["b0"] = _fold_conv(*params["body0"], W_in=W0, stride=1, pad=1)
    ops["w1"], ops["b1"] = _fold_conv(*params["body1"], W_in=W0, stride=2, pad=1)
    ops["w2"], ops["b2"] = _fold_conv(*params["body2"], W_in=W1, stride=2, pad=1)
    ops["s1"] = _row_select(H1, H0 + 2, 2)
    ops["s2"] = _row_select(H2, H1 + 2, 2)
    for i, Wi in ((0, W0), (1, W1), (2, W2)):
        wi, bi = _fold_conv(*params[f"inner{i}"], W_in=Wi, stride=1, pad=0)
        ops[f"wi{i}"], ops[f"bi{i}"] = wi[0], bi      # 1x1 conv -> single dy tap
        wl, bl = _fold_conv(*params[f"layer{i}"], W_in=Wi, stride=1, pad=1)
        ops[f"wl{i}"], ops[f"bl{i}"] = wl, bl
    ops["uc1"], ops["ur1"] = _upsample_mats(H2, W2, OC)   # level 2 -> 1
    ops["uc0"], ops["ur0"] = _upsample_mats(H1, W1, OC)   # level 1 -> 0

    # Selection matrices for the lane-dense out2/pool packing and LastLevelMaxPool.
    Se = np.zeros((hp, H2), np.float32)       # even rows of res2
    So = np.zeros((hp, H2), np.float32)       # odd rows of res2
    for i in range(hp):
        Se[i, 2 * i] = 1.0
        So[i, 2 * i + 1] = 1.0
    Cp = np.zeros((W2 * OC, wp * OC), np.float32)   # even column-blocks (k=1,s=2 pool)
    for j in range(wp):
        for c in range(OC):
            Cp[(2 * j) * OC + c, j * OC + c] = 1.0
    ops["se"], ops["so"], ops["cp"] = Se, So, Cp

    ops = {k: jnp.asarray(np.asarray(v, np.float32)) for k, v in ops.items()}

    cfg = dict(cin=CIN, oc=OC,
               l0=(H0, W0, C0), l1=(H1, W1, C1), l2=(H2, W2, C2),
               hp=hp, wp=wp, slabw=slabw)
    return ops, cfg


def _cost_estimate(cfg, ops, n_images):
    """Real conv MACs (not the zero MACs of the folded weights) + actual bytes moved."""
    CIN, OC = cfg["cin"], cfg["oc"]
    H0, W0, C0 = cfg["l0"]
    H1, W1, C1 = cfg["l1"]
    H2, W2, C2 = cfg["l2"]
    flops = 2 * (H0 * W0 * 9 * CIN * C0 + H1 * W1 * 9 * C0 * C1 + H2 * W2 * 9 * C1 * C2)
    for (H, W, C) in (cfg["l0"], cfg["l1"], cfg["l2"]):
        flops += 2 * (H * W * C * OC + H * W * 9 * OC * OC)      # 1x1 inner + 3x3 layer
    flops += 2 * (H1 * W1 * OC + H0 * W0 * OC)                   # top-down adds (rough)
    flops *= n_images
    weight_bytes = sum(int(v.size) * v.dtype.itemsize for v in ops.values())
    act_bytes = 4 * n_images * (H0 * W0 * CIN          # input
                                + H0 * W0 * OC + H1 * W1 * OC    # out0, out1
                                + (H2 // 2 + 1) * cfg["slabw"])  # out2+pool slab
    return pl.CostEstimate(flops=int(flops), transcendentals=0,
                           bytes_accessed=int(weight_bytes + act_bytes))


# ----------------------------------------------------------------------------
# The fused kernel: body (3 convs + ReLU) -> FPN (1x1 inners, top-down adds,
# 3x3 layers) -> LastLevelMaxPool.  One grid step == one image.
# ----------------------------------------------------------------------------
def _fused_fpn_kernel(cfg, x_ref,
                      w0_ref, b0_ref, s1_ref, w1_ref, b1_ref, s2_ref, w2_ref, b2_ref,
                      wi0_ref, bi0_ref, wi1_ref, bi1_ref, wi2_ref, bi2_ref,
                      wl0_ref, bl0_ref, wl1_ref, bl1_ref, wl2_ref, bl2_ref,
                      uc1_ref, ur1_ref, uc0_ref, ur0_ref,
                      se_ref, so_ref, cp_ref,
                      out0_ref, out1_ref, out2p_ref,
                      xp, f0p, f1p, p2p, p1p, p0p):
    H0, W0, C0 = cfg["l0"]
    H1, W1, C1 = cfg["l1"]
    H2, W2, C2 = cfg["l2"]
    OC = cfg["oc"]
    hp, wp, slabw = cfg["hp"], cfg["wp"], cfg["slabw"]
    dotf = functools.partial(jnp.dot, preferred_element_type=jnp.float32)

    # Zero ONLY the 1-row top/bottom borders of the row-padded scratches.  The interior
    # rows are fully overwritten every grid step and there is no column padding.
    # (Not gated on program_id==0: under "parallel" megacore sharding on v7x, core 1
    # never executes step 0 and would otherwise read uninitialized VMEM borders.)
    for ref in (xp, f0p, f1p, p2p, p1p, p0p):
        h, lanes = ref.shape
        zrow = jnp.zeros((1, lanes), jnp.float32)
        ref[0:1, :] = zrow
        ref[h - 1:h, :] = zrow

    def conv3x3(src_rows, w_ref, b_ref):
        # sum over the 3 row taps; column taps / stride / pad / bias are folded in the weights
        acc = b_ref[...]                                   # (1, L) broadcasts over rows
        for dy in range(3):
            acc = acc + dotf(src_rows(dy), w_ref[dy])
        return acc

    # ---------------- backbone body (IntermediateLayerGetter) ----------------
    # body0: 3x3, stride 1, pad 1, CIN -> C0, ReLU
    xp[1:1 + H0, :] = x_ref[0]                             # row padding lives in scratch
    f0 = jnp.maximum(conv3x3(lambda dy: xp[dy:dy + H0, :], w0_ref, b0_ref), 0.0)
    f0p[1:1 + H0, :] = f0                                  # lane-offset-0, full-lane store

    # body1: 3x3, stride 2, pad 1, C0 -> C1, ReLU (row taps via selection matmul)
    f1 = jnp.maximum(conv3x3(lambda dy: dotf(s1_ref[dy], f0p[...]), w1_ref, b1_ref), 0.0)
    f1p[1:1 + H1, :] = f1

    # body2: 3x3, stride 2, pad 1, C1 -> C2, ReLU
    f2 = jnp.maximum(conv3x3(lambda dy: dotf(s2_ref[dy], f1p[...]), w2_ref, b2_ref), 0.0)

    # ---------------- FPN top-down pathway ----------------
    # level 2: 1x1 inner, then 3x3 layer
    li2 = dotf(f2, wi2_ref[...]) + bi2_ref[...]
    p2p[1:1 + H2, :] = li2
    res2 = conv3x3(lambda dy: p2p[dy:dy + H2, :], wl2_ref, bl2_ref)

    # Lane-dense packing of the two small maps into one 128-lane slab:
    #   slab rows [0, H2/2)  : [res2 even row | res2 odd row]      (2 x 128)
    #   slab row   H2/2      : [pool row 0 | pool row 1 | zeros]   (1 x 128)
    # LastLevelMaxPool (kernel=1, stride=2) == stride-2 row/col-block subsample of res2,
    # done with two tiny selection matmuls instead of a scalar-sliced double loop.
    even = dotf(se_ref[...], res2)                         # rows 0,2,...  (hp, W2*OC)
    odd = dotf(so_ref[...], res2)                          # rows 1,3,...  (hp, W2*OC)
    out2p_ref[0, 0:hp, :] = jnp.concatenate([even, odd], axis=1)
    pool = dotf(even, cp_ref[...])                         # (hp, wp*OC)
    pool_parts = [pool[i:i + 1, :] for i in range(hp)]
    pad_lanes = slabw - hp * wp * OC
    if pad_lanes:
        pool_parts.append(jnp.zeros((1, pad_lanes), jnp.float32))
    out2p_ref[0, hp:hp + 1, :] = jnp.concatenate(pool_parts, axis=1)

    # level 1: fused nearest-2x upsample of li2 (two selection matmuls) + lateral
    td1 = dotf(ur1_ref[...], dotf(li2, uc1_ref[...]))
    li1 = dotf(f1, wi1_ref[...]) + bi1_ref[...] + td1
    p1p[1:1 + H1, :] = li1
    out1_ref[0] = conv3x3(lambda dy: p1p[dy:dy + H1, :], wl1_ref, bl1_ref)

    # level 0
    td0 = dotf(ur0_ref[...], dotf(li1, uc0_ref[...]))
    li0 = dotf(f0, wi0_ref[...]) + bi0_ref[...] + td0
    p0p[1:1 + H0, :] = li0
    out0_ref[0] = conv3x3(lambda dy: p0p[dy:dy + H0, :], wl0_ref, bl0_ref)


# ----------------------------------------------------------------------------
# Wrapper: NCHW in -> dict of NCHW feature maps out (PyTorch convention)
# ----------------------------------------------------------------------------
def backbone_with_fpn_forward(ops, cfg, x_nchw):
    N = x_nchw.shape[0]
    CIN, OC = cfg["cin"], cfg["oc"]
    H0, W0, C0 = cfg["l0"]
    H1, W1, C1 = cfg["l1"]
    H2, W2, _ = cfg["l2"]
    hp, wp, slabw = cfg["hp"], cfg["wp"], cfg["slabw"]
    assert x_nchw.shape == (N, CIN, H0, W0)

    # NCHW -> NHWC -> pack (W, C) into the lane axis.  Row padding is done in-kernel,
    # so the only wrapper glue on the input path is this transpose+reshape.
    x = jnp.transpose(x_nchw, (0, 2, 3, 1)).astype(jnp.float32).reshape(N, H0, W0 * CIN)

    operands = [x,
                ops["w0"], ops["b0"], ops["s1"], ops["w1"], ops["b1"],
                ops["s2"], ops["w2"], ops["b2"],
                ops["wi0"], ops["bi0"], ops["wi1"], ops["bi1"], ops["wi2"], ops["bi2"],
                ops["wl0"], ops["bl0"], ops["wl1"], ops["bl1"], ops["wl2"], ops["bl2"],
                ops["uc1"], ops["ur1"], ops["uc0"], ops["ur0"],
                ops["se"], ops["so"], ops["cp"]]

    def img_spec(shape):      # blocked per image along the leading (batch) grid axis
        return pl.BlockSpec((1,) + tuple(shape[1:]),
                            lambda n, _nd=len(shape): (n,) + (0,) * (_nd - 1))

    def full_spec(a):         # whole (small) constant array resident in VMEM every step
        return pl.BlockSpec(a.shape, lambda n, _nd=a.ndim: (0,) * _nd)

    in_specs = [img_spec(x.shape)] + [full_spec(a) for a in operands[1:]]

    out_shapes = (
        jax.ShapeDtypeStruct((N, H0, W0 * OC), jnp.float32),        # "0"  (256 lanes)
        jax.ShapeDtypeStruct((N, H1, W1 * OC), jnp.float32),        # "1"  (128 lanes)
        jax.ShapeDtypeStruct((N, hp + 1, slabw), jnp.float32),      # "2" + "pool" slab (128 lanes)
    )
    out_specs = tuple(img_spec(s.shape) for s in out_shapes)

    scratch = [
        pltpu.VMEM((H0 + 2, W0 * CIN), jnp.float32),   # row-padded input
        pltpu.VMEM((H0 + 2, W0 * C0), jnp.float32),    # row-padded feat0   (128 lanes)
        pltpu.VMEM((H1 + 2, W1 * C1), jnp.float32),    # row-padded feat1   (128 lanes)
        pltpu.VMEM((H2 + 2, W2 * OC), jnp.float32),    # row-padded merged level 2
        pltpu.VMEM((H1 + 2, W1 * OC), jnp.float32),    # row-padded merged level 1 (128)
        pltpu.VMEM((H0 + 2, W0 * OC), jnp.float32),    # row-padded merged level 0 (256)
    ]

    out0, out1, slab = pl.pallas_call(
        functools.partial(_fused_fpn_kernel, cfg),
        out_shape=out_shapes,
        grid=(N,),
        in_specs=in_specs,
        out_specs=out_specs,
        scratch_shapes=scratch,
        compiler_params=pltpu.CompilerParams(dimension_semantics=("parallel",)),
        cost_estimate=_cost_estimate(cfg, ops, N),
    )(*operands)

    def unpack(t, h, w):      # (N, H, W*OC) packed -> NCHW
        return jnp.transpose(t.reshape(N, h, w, OC), (0, 3, 1, 2))

    out2_packed = slab[:, :hp, :].reshape(N, H2, W2 * OC)
    pool_packed = slab[:, hp, :hp * wp * OC].reshape(N, hp, wp * OC)

    return {
        "0": unpack(out0, H0, W0),
        "1": unpack(out1, H1, W1),
        "2": unpack(out2_packed, H2, W2),
        "pool": unpack(pool_packed, hp, wp),
    }


# ----------------------------------------------------------------------------
# Pure-JAX reference (for a loose structural correctness check)
# ----------------------------------------------------------------------------
def _reference_forward(params, x_nchw):
    x = jnp.transpose(x_nchw, (0, 2, 3, 1)).astype(jnp.float32)

    def conv(z, w, b, stride, pad, relu=False):
        y = jax.lax.conv_general_dilated(
            z, w, window_strides=(stride, stride), padding=((pad, pad), (pad, pad)),
            dimension_numbers=("NHWC", "HWIO", "NHWC")) + b
        return jnp.maximum(y, 0.0) if relu else y

    f0 = conv(x, *params["body0"], 1, 1, True)
    f1 = conv(f0, *params["body1"], 2, 1, True)
    f2 = conv(f1, *params["body2"], 2, 1, True)
    feats = [f0, f1, f2]

    last = conv(feats[2], *params["inner2"], 1, 0)
    results = [None, None, conv(last, *params["layer2"], 1, 1)]
    for idx in (1, 0):
        td = jnp.repeat(jnp.repeat(last, 2, axis=1), 2, axis=2)
        last = conv(feats[idx], *params[f"inner{idx}"], 1, 0) + td
        results[idx] = conv(last, *params[f"layer{idx}"], 1, 1)
    pool = results[2][:, ::2, ::2, :]
    to_nchw = lambda t: jnp.transpose(t, (0, 3, 1, 2))
    return {"0": to_nchw(results[0]), "1": to_nchw(results[1]),
            "2": to_nchw(results[2]), "pool": to_nchw(pool)}


# ----------------------------------------------------------------------------
if __name__ == "__main__":
    params = init_params(seed=0)
    x = jax.random.normal(jax.random.PRNGKey(0), (2, IN_CHANNELS, 16, 16), jnp.float32)

    ops, cfg = fold_params(params, 16, 16)
    fwd = jax.jit(lambda inp: backbone_with_fpn_forward(ops, cfg, inp))
    out = jax.block_until_ready(fwd(x))

    expected = {
        "0": (2, OUT_CHANNELS, 16, 16),
        "1": (2, OUT_CHANNELS, 8, 8),
        "2": (2, OUT_CHANNELS, 4, 4),
        "pool": (2, OUT_CHANNELS, 2, 2),
    }
    ref = _reference_forward(params, x)
    for k, shp in expected.items():
        assert out[k].shape == shp, (k, out[k].shape, shp)
        assert out[k].dtype == jnp.float32
        assert bool(jnp.all(jnp.isfinite(out[k])))
        err = float(jnp.max(jnp.abs(out[k] - ref[k])))
        assert err < 5e-2, (k, err)   # loose: matmul precision differs (MXU vs XLA conv)

    print("KERNEL_OK")
</pallas_src>

<mosaic_0001>
module attributes {stable_mosaic.version = 11 : i64} {
  func.func @_fused_fpn_kernel(%arg0: i32, %arg1: memref<1x16x64xf32, #tpu.memory_space<vmem>>, %arg2: memref<3x64x128xf32, #tpu.memory_space<vmem>>, %arg3: memref<1x128xf32, #tpu.memory_space<vmem>>, %arg4: memref<3x8x18xf32, #tpu.memory_space<vmem>>, %arg5: memref<3x128x128xf32, #tpu.memory_space<vmem>>, %arg6: memref<1x128xf32, #tpu.memory_space<vmem>>, %arg7: memref<3x4x10xf32, #tpu.memory_space<vmem>>, %arg8: memref<3x128x128xf32, #tpu.memory_space<vmem>>, %arg9: memref<1x128xf32, #tpu.memory_space<vmem>>, %arg10: memref<128x256xf32, #tpu.memory_space<vmem>>, %arg11: memref<1x256xf32, #tpu.memory_space<vmem>>, %arg12: memref<128x128xf32, #tpu.memory_space<vmem>>, %arg13: memref<1x128xf32, #tpu.memory_space<vmem>>, %arg14: memref<128x64xf32, #tpu.memory_space<vmem>>, %arg15: memref<1x64xf32, #tpu.memory_space<vmem>>, %arg16: memref<3x256x256xf32, #tpu.memory_space<vmem>>, %arg17: memref<1x256xf32, #tpu.memory_space<vmem>>, %arg18: memref<3x128x128xf32, #tpu.memory_space<vmem>>, %arg19: memref<1x128xf32, #tpu.memory_space<vmem>>, %arg20: memref<3x64x64xf32, #tpu.memory_space<vmem>>, %arg21: memref<1x64xf32, #tpu.memory_space<vmem>>, %arg22: memref<64x128xf32, #tpu.memory_space<vmem>>, %arg23: memref<8x4xf32, #tpu.memory_space<vmem>>, %arg24: memref<128x256xf32, #tpu.memory_space<vmem>>, %arg25: memref<16x8xf32, #tpu.memory_space<vmem>>, %arg26: memref<2x4xf32, #tpu.memory_space<vmem>>, %arg27: memref<2x4xf32, #tpu.memory_space<vmem>>, %arg28: memref<64x32xf32, #tpu.memory_space<vmem>>, %arg29: memref<1x16x256xf32, #tpu.memory_space<vmem>>, %arg30: memref<1x8x128xf32, #tpu.memory_space<vmem>>, %arg31: memref<1x3x128xf32, #tpu.memory_space<vmem>>, %arg32: memref<18x64xf32, #tpu.memory_space<vmem>>, %arg33: memref<18x128xf32, #tpu.memory_space<vmem>>, %arg34: memref<10x128xf32, #tpu.memory_space<vmem>>, %arg35: memref<6x64xf32, #tpu.memory_space<vmem>>, %arg36: memref<10x128xf32, #tpu.memory_space<vmem>>, %arg37: memref<18x256xf32, #tpu.memory_space<vmem>>) attributes {dimension_semantics = [#tpu.dimension_semantics<parallel>], iteration_bounds = array<i64: 2>, scalar_prefetch = 0 : i64, scratch_operands = 6 : i64, tpu.core_type = #tpu.core_type<tc>, window_params = [{transform_indices = @transform_0, window_bounds = array<i64: 1, 16, 64>}, {pipeline_mode = #tpu.pipeline_mode<synchronous>, transform_indices = @transform_1, window_bounds = array<i64: 3, 64, 128>}, {pipeline_mode = #tpu.pipeline_mode<synchronous>, transform_indices = @transform_2, window_bounds = array<i64: 1, 128>}, {pipeline_mode = #tpu.pipeline_mode<synchronous>, transform_indices = @transform_3, window_bounds = array<i64: 3, 8, 18>}, {pipeline_mode = #tpu.pipeline_mode<synchronous>, transform_indices = @transform_4, window_bounds = array<i64: 3, 128, 128>}, {pipeline_mode = #tpu.pipeline_mode<synchronous>, transform_indices = @transform_5, window_bounds = array<i64: 1, 128>}, {pipeline_mode = #tpu.pipeline_mode<synchronous>, transform_indices = @transform_6, window_bounds = array<i64: 3, 4, 10>}, {pipeline_mode = #tpu.pipeline_mode<synchronous>, transform_indices = @transform_7, window_bounds = array<i64: 3, 128, 128>}, {pipeline_mode = #tpu.pipeline_mode<synchronous>, transform_indices = @transform_8, window_bounds = array<i64: 1, 128>}, {pipeline_mode = #tpu.pipeline_mode<synchronous>, transform_indices = @transform_9, window_bounds = array<i64: 128, 256>}, {pipeline_mode = #tpu.pipeline_mode<synchronous>, transform_indices = @transform_10, window_bounds = array<i64: 1, 256>}, {pipeline_mode = #tpu.pipeline_mode<synchronous>, transform_indices = @transform_11, window_bounds = array<i64: 128, 128>}, {pipeline_mode = #tpu.pipeline_mode<synchronous>, transform_indices = @transform_12, window_bounds = array<i64: 1, 128>}, {pipeline_mode = #tpu.pipeline_mode<synchronous>, transform_indices = @transform_13, window_bounds = array<i64: 128, 64>}, {pipeline_mode = #tpu.pipeline_mode<synchronous>, transform_indices = @transform_14, window_bounds = array<i64: 1, 64>}, {pipeline_mode = #tpu.pipeline_mode<synchronous>, transform_indices = @transform_15, window_bounds = array<i64: 3, 256, 256>}, {pipeline_mode = #tpu.pipeline_mode<synchronous>, transform_indices = @transform_16, window_bounds = array<i64: 1, 256>}, {pipeline_mode = #tpu.pipeline_mode<synchronous>, transform_indices = @transform_17, window_bounds = array<i64: 3, 128, 128>}, {pipeline_mode = #tpu.pipeline_mode<synchronous>, transform_indices = @transform_18, window_bounds = array<i64: 1, 128>}, {pipeline_mode = #tpu.pipeline_mode<synchronous>, transform_indices = @transform_19, window_bounds = array<i64: 3, 64, 64>}, {pipeline_mode = #tpu.pipeline_mode<synchronous>, transform_indices = @transform_20, window_bounds = array<i64: 1, 64>}, {pipeline_mode = #tpu.pipeline_mode<synchronous>, transform_indices = @transform_21, window_bounds = array<i64: 64, 128>}, {pipeline_mode = #tpu.pipeline_mode<synchronous>, transform_indices = @transform_22, window_bounds = array<i64: 8, 4>}, {pipeline_mode = #tpu.pipeline_mode<synchronous>, transform_indices = @transform_23, window_bounds = array<i64: 128, 256>}, {pipeline_mode = #tpu.pipeline_mode<synchronous>, transform_indices = @transform_24, window_bounds = array<i64: 16, 8>}, {pipeline_mode = #tpu.pipeline_mode<synchronous>, transform_indices = @transform_25, window_bounds = array<i64: 2, 4>}, {pipeline_mode = #tpu.pipeline_mode<synchronous>, transform_indices = @transform_26, window_bounds = array<i64: 2, 4>}, {pipeline_mode = #tpu.pipeline_mode<synchronous>, transform_indices = @transform_27, window_bounds = array<i64: 64, 32>}, {transform_indices = @transform_28, window_bounds = array<i64: 1, 16, 256>}, {transform_indices = @transform_29, window_bounds = array<i64: 1, 8, 128>}, {transform_indices = @transform_30, window_bounds = array<i64: 1, 3, 128>}]} {
    %cst = arith.constant 0.000000e+00 : f32
    %0 = vector.broadcast %cst : f32 to vector<1x64xf32>
    %c0 = arith.constant 0 : index
    %c0_0 = arith.constant 0 : index
    %1 = vector.load %arg32[%c0, %c0_0] : memref<18x64xf32, #tpu.memory_space<vmem>>, vector<1x64xf32>
    tpu.vector_store %arg32[%c0, %c0_0], %0 {strides = array<i32>} : memref<18x64xf32, #tpu.memory_space<vmem>>, vector<1x64xf32>,
    %c17 = arith.constant 17 : index
    %c0_1 = arith.constant 0 : index
    %2 = vector.load %arg32[%c17, %c0_1] : memref<18x64xf32, #tpu.memory_space<vmem>>, vector<1x64xf32>
    tpu.vector_store %arg32[%c17, %c0_1], %0 {strides = array<i32>} : memref<18x64xf32, #tpu.memory_space<vmem>>, vector<1x64xf32>,
    %cst_2 = arith.constant 0.000000e+00 : f32
    %3 = vector.broadcast %cst_2 : f32 to vector<1x128xf32>
    %c0_3 = arith.constant 0 : index
    %c0_4 = arith.constant 0 : index
    %4 = vector.load %arg33[%c0_3, %c0_4] : memref<18x128xf32, #tpu.memory_space<vmem>>, vector<1x128xf32>
    tpu.vector_store %arg33[%c0_3, %c0_4], %3 {strides = array<i32>} : memref<18x128xf32, #tpu.memory_space<vmem>>, vector<1x128xf32>,
    %c17_5 = arith.constant 17 : index
    %c0_6 = arith.constant 0 : index
    %5 = vector.load %arg33[%c17_5, %c0_6] : memref<18x128xf32, #tpu.memory_space<vmem>>, vector<1x128xf32>
    tpu.vector_store %arg33[%c17_5, %c0_6], %3 {strides = array<i32>} : memref<18x128xf32, #tpu.memory_space<vmem>>, vector<1x128xf32>,
    %cst_7 = arith.constant 0.000000e+00 : f32
    %6 = vector.broadcast %cst_7 : f32 to vector<1x128xf32>
    %c0_8 = arith.constant 0 : index
    %c0_9 = arith.constant 0 : index
    %7 = vector.load %arg34[%c0_8, %c0_9] : memref<10x128xf32, #tpu.memory_space<vmem>>, vector<1x128xf32>
    tpu.vector_store %arg34[%c0_8, %c0_9], %6 {strides = array<i32>} : memref<10x128xf32, #tpu.memory_space<vmem>>, vector<1x128xf32>,
    %c9 = arith.constant 9 : index
    %c0_10 = arith.constant 0 : index
    %8 = vector.load %arg34[%c9, %c0_10] : memref<10x128xf32, #tpu.memory_space<vmem>>, vector<1x128xf32>
    tpu.vector_store %arg34[%c9, %c0_10], %6 {strides = array<i32>} : memref<10x128xf32, #tpu.memory_space<vmem>>, vector<1x128xf32>,
    %cst_11 = arith.constant 0.000000e+00 : f32
    %9 = vector.broadcast %cst_11 : f32 to vector<1x64xf32>
    %c0_12 = arith.constant 0 : index
    %c0_13 = arith.constant 0 : index
    %10 = vector.load %arg35[%c0_12, %c0_13] : memref<6x64xf32, #tpu.memory_space<vmem>>, vector<1x64xf32>
    tpu.vector_store %arg35[%c0_12, %c0_13], %9 {strides = array<i32>} : memref<6x64xf32, #tpu.memory_space<vmem>>, vector<1x64xf32>,
    %c5 = arith.constant 5 : index
    %c0_14 = arith.constant 0 : index
    %11 = vector.load %arg35[%c5, %c0_14] : memref<6x64xf32, #tpu.memory_space<vmem>>, vector<1x64xf32>
    tpu.vector_store %arg35[%c5, %c0_14], %9 {strides = array<i32>} : memref<6x64xf32, #tpu.memory_space<vmem>>, vector<1x64xf32>,
    %cst_15 = arith.constant 0.000000e+00 : f32
    %12 = vector.broadcast %cst_15 : f32 to vector<1x128xf32>
    %c0_16 = arith.constant 0 : index
    %c0_17 = arith.constant 0 : index
    %13 = vector.load %arg36[%c0_16, %c0_17] : memref<10x128xf32, #tpu.memory_space<vmem>>, vector<1x128xf32>
    tpu.vector_store %arg36[%c0_16, %c0_17], %12 {strides = array<i32>} : memref<10x128xf32, #tpu.memory_space<vmem>>, vector<1x128xf32>,
    %c9_18 = arith.constant 9 : index
    %c0_19 = arith.constant 0 : index
    %14 = vector.load %arg36[%c9_18, %c0_19] : memref<10x128xf32, #tpu.memory_space<vmem>>, vector<1x128xf32>
    tpu.vector_store %arg36[%c9_18, %c0_19], %12 {strides = array<i32>} : memref<10x128xf32, #tpu.memory_space<vmem>>, vector<1x128xf32>,
    %cst_20 = arith.constant 0.000000e+00 : f32
    %15 = vector.broadcast %cst_20 : f32 to vector<1x256xf32>
    %c0_21 = arith.constant 0 : index
    %c0_22 = arith.constant 0 : index
    %16 = vector.load %arg37[%c0_21, %c0_22] : memref<18x256xf32, #tpu.memory_space<vmem>>, vector<1x256xf32>
    tpu.vector_store %arg37[%c0_21, %c0_22], %15 {strides = array<i32>} : memref<18x256xf32, #tpu.memory_space<vmem>>, vector<1x256xf32>,
    %c17_23 = arith.constant 17 : index
    %c0_24 = arith.constant 0 : index
    %17 = vector.load %arg37[%c17_23, %c0_24] : memref<18x256xf32, #tpu.memory_space<vmem>>, vector<1x256xf32>
    tpu.vector_store %arg37[%c17_23, %c0_24], %15 {strides = array<i32>} : memref<18x256xf32, #tpu.memory_space<vmem>>, vector<1x256xf32>,
    %c0_25 = arith.constant 0 : index
    %c0_26 = arith.constant 0 : index
    %c0_27 = arith.constant 0 : index
    %18 = vector.load %arg1[%c0_25, %c0_26, %c0_27] : memref<1x16x64xf32, #tpu.memory_space<vmem>>, vector<1x16x64xf32>
    %19 = vector.shape_cast %18 : vector<1x16x64xf32> to vector<16x64xf32>
    %c1 = arith.constant 1 : index
    %c0_28 = arith.constant 0 : index
    %20 = vector.load %arg32[%c1, %c0_28] : memref<18x64xf32, #tpu.memory_space<vmem>>, vector<16x64xf32>
    tpu.vector_store %arg32[%c1, %c0_28], %19 {strides = array<i32>} : memref<18x64xf32, #tpu.memory_space<vmem>>, vector<16x64xf32>,
    %c0_29 = arith.constant 0 : index
    %c0_30 = arith.constant 0 : index
    %21 = vector.load %arg3[%c0_29, %c0_30] : memref<1x128xf32, #tpu.memory_space<vmem>>, vector<1x128xf32>
    %c0_31 = arith.constant 0 : index
    %c0_32 = arith.constant 0 : index
    %22 = vector.load %arg32[%c0_31, %c0_32] : memref<18x64xf32, #tpu.memory_space<vmem>>, vector<16x64xf32>
    %c0_33 = arith.constant 0 : index
    %c0_34 = arith.constant 0 : index
    %c0_35 = arith.constant 0 : index
    %23 = vector.load %arg2[%c0_33, %c0_34, %c0_35] : memref<3x64x128xf32, #tpu.memory_space<vmem>>, vector<1x64x128xf32>
    %24 = vector.shape_cast %23 : vector<1x64x128xf32> to vector<64x128xf32>
    %cst_36 = arith.constant dense<0.000000e+00> : vector<16x128xf32>
    %25 = tpu.matmul %22, %24, %cst_36 {dimension_numbers = #tpu.dot_dimension_numbers<[1], [0], [0], [1], [0, 0, 1, 1], [], []>} : vector<16x64xf32>, vector<64x128xf32>, vector<16x128xf32> -> vector<16x128xf32>
    %26 = vector.broadcast %21 : vector<1x128xf32> to vector<16x128xf32>
    %27 = arith.addf %26, %25 : vector<16x128xf32>
    %c1_37 = arith.constant 1 : index
    %c0_38 = arith.constant 0 : index
    %28 = vector.load %arg32[%c1_37, %c0_38] : memref<18x64xf32, #tpu.memory_space<vmem>>, vector<16x64xf32>
    %c1_39 = arith.constant 1 : index
    %c0_40 = arith.constant 0 : index
    %c0_41 = arith.constant 0 : index
    %29 = vector.load %arg2[%c1_39, %c0_40, %c0_41] : memref<3x64x128xf32, #tpu.memory_space<vmem>>, vector<1x64x128xf32>
    %30 = vector.shape_cast %29 : vector<1x64x128xf32> to vector<64x128xf32>
    %cst_42 = arith.constant dense<0.000000e+00> : vector<16x128xf32>
    %31 = tpu.matmul %28, %30, %cst_42 {dimension_numbers = #tpu.dot_dimension_numbers<[1], [0], [0], [1], [0, 0, 1, 1], [], []>} : vector<16x64xf32>, vector<64x128xf32>, vector<16x128xf32> -> vector<16x128xf32>
    %32 = arith.addf %27, %31 : vector<16x128xf32>
    %c2 = arith.constant 2 : index
    %c0_43 = arith.constant 0 : index
    %33 = vector.load %arg32[%c2, %c0_43] : memref<18x64xf32, #tpu.memory_space<vmem>>, vector<16x64xf32>
    %c2_44 = arith.constant 2 : index
    %c0_45 = arith.constant 0 : index
    %c0_46 = arith.constant 0 : index
    %34 = vector.load %arg2[%c2_44, %c0_45, %c0_46] : memref<3x64x128xf32, #tpu.memory_space<vmem>>, vector<1x64x128xf32>
    %35 = vector.shape_cast %34 : vector<1x64x128xf32> to vector<64x128xf32>
    %cst_47 = arith.constant dense<0.000000e+00> : vector<16x128xf32>
    %36 = tpu.matmul %33, %35, %cst_47 {dimension_numbers = #tpu.dot_dimension_numbers<[1], [0], [0], [1], [0, 0, 1, 1], [], []>} : vector<16x64xf32>, vector<64x128xf32>, vector<16x128xf32> -> vector<16x128xf32>
    %37 = arith.addf %32, %36 : vector<16x128xf32>
    %cst_48 = arith.constant 0.000000e+00 : f32
    %38 = vector.broadcast %cst_48 : f32 to vector<16x128xf32>
    %39 = arith.maximumf %37, %38 : vector<16x128xf32>
    %c1_49 = arith.constant 1 : index
    %c0_50 = arith.constant 0 : index
    %40 = vector.load %arg33[%c1_49, %c0_50] : memref<18x128xf32, #tpu.memory_space<vmem>>, vector<16x128xf32>
    tpu.vector_store %arg33[%c1_49, %c0_50], %39 {strides = array<i32>} : memref<18x128xf32, #tpu.memory_space<vmem>>, vector<16x128xf32>,
    %c0_51 = arith.constant 0 : index
    %c0_52 = arith.constant 0 : index
    %41 = vector.load %arg6[%c0_51, %c0_52] : memref<1x128xf32, #tpu.memory_space<vmem>>, vector<1x128xf32>
    %c0_53 = arith.constant 0 : index
    %c0_54 = arith.constant 0 : index
    %c0_55 = arith.constant 0 : index
    %42 = vector.load %arg4[%c0_53, %c0_54, %c0_55] : memref<3x8x18xf32, #tpu.memory_space<vmem>>, vector<1x8x18xf32>
    %43 = vector.shape_cast %42 : vector<1x8x18xf32> to vector<8x18xf32>
    %c0_56 = arith.constant 0 : index
    %c0_57 = arith.constant 0 : index
    %44 = vector.load %arg33[%c0_56, %c0_57] : memref<18x128xf32, #tpu.memory_space<vmem>>, vector<18x128xf32>
    %cst_58 = arith.constant dense<0.000000e+00> : vector<8x128xf32>
    %45 = tpu.matmul %43, %44, %cst_58 {dimension_numbers = #tpu.dot_dimension_numbers<[1], [0], [0], [1], [0, 0, 1, 1], [], []>} : vector<8x18xf32>, vector<18x128xf32>, vector<8x128xf32> -> vector<8x128xf32>
    %c0_59 = arith.constant 0 : index
    %c0_60 = arith.constant 0 : index
    %c0_61 = arith.constant 0 : index
    %46 = vector.load %arg5[%c0_59, %c0_60, %c0_61] : memref<3x128x128xf32, #tpu.memory_space<vmem>>, vector<1x128x128xf32>
    %47 = vector.shape_cast %46 : vector<1x128x128xf32> to vector<128x128xf32>
    %cst_62 = arith.constant dense<0.000000e+00> : vector<8x128xf32>
    %48 = tpu.matmul %45, %47, %cst_62 {dimension_numbers = #tpu.dot_dimension_numbers<[1], [0], [0], [1], [0, 0, 1, 1], [], []>} : vector<8x128xf32>, vector<128x128xf32>, vector<8x128xf32> -> vector<8x128xf32>
    %49 = vector.broadcast %41 : vector<1x128xf32> to vector<8x128xf32>
    %50 = arith.addf %49, %48 : vector<8x128xf32>
    %c1_63 = arith.constant 1 : index
    %c0_64 = arith.constant 0 : index
    %c0_65 = arith.constant 0 : index
    %51 = vector.load %arg4[%c1_63, %c0_64, %c0_65] : memref<3x8x18xf32, #tpu.memory_space<vmem>>, vector<1x8x18xf32>
    %52 = vector.shape_cast %51 : vector<1x8x18xf32> to vector<8x18xf32>
    %c0_66 = arith.constant 0 : index
    %c0_67 = arith.constant 0 : index
    %53 = vector.load %arg33[%c0_66, %c0_67] : memref<18x128xf32, #tpu.memory_space<vmem>>, vector<18x128xf32>
    %cst_68 = arith.constant dense<0.000000e+00> : vector<8x128xf32>
    %54 = tpu.matmul %52, %53, %cst_68 {dimension_numbers = #tpu.dot_dimension_numbers<[1], [0], [0], [1], [0, 0, 1, 1], [], []>} : vector<8x18xf32>, vector<18x128xf32>, vector<8x128xf32> -> vector<8x128xf32>
    %c1_69 = arith.constant 1 : index
    %c0_70 = arith.constant 0 : index
    %c0_71 = arith.constant 0 : index
    %55 = vector.load %arg5[%c1_69, %c0_70, %c0_71] : memref<3x128x128xf32, #tpu.memory_space<vmem>>, vector<1x128x128xf32>
    %56 = vector.shape_cast %55 : vector<1x128x128xf32> to vector<128x128xf32>
    %cst_72 = arith.constant dense<0.000000e+00> : vector<8x128xf32>
    %57 = tpu.matmul %54, %56, %cst_72 {dimension_numbers = #tpu.dot_dimension_numbers<[1], [0], [0], [1], [0, 0, 1, 1], [], []>} : vector<8x128xf32>, vector<128x128xf32>, vector<8x128xf32> -> vector<8x128xf32>
    %58 = arith.addf %50, %57 : vector<8x128xf32>
    %c2_73 = arith.constant 2 : index
    %c0_74 = arith.constant 0 : index
    %c0_75 = arith.constant 0 : index
    %59 = vector.load %arg4[%c2_73, %c0_74, %c0_75] : memref<3x8x18xf32, #tpu.memory_space<vmem>>, vector<1x8x18xf32>
    %60 = vector.shape_cast %59 : vector<1x8x18xf32> to vector<8x18xf32>
    %c0_76 = arith.constant 0 : index
    %c0_77 = arith.constant 0 : index
    %61 = vector.load %arg33[%c0_76, %c0_77] : memref<18x128xf32, #tpu.memory_space<vmem>>, vector<18x128xf32>
    %cst_78 = arith.constant dense<0.000000e+00> : vector<8x128xf32>
    %62 = tpu.matmul %60, %61, %cst_78 {dimension_numbers = #tpu.dot_dimension_numbers<[1], [0], [0], [1], [0, 0, 1, 1], [], []>} : vector<8x18xf32>, vector<18x128xf32>, vector<8x128xf32> -> vector<8x128xf32>
    %c2_79 = arith.constant 2 : index
    %c0_80 = arith.constant 0 : index
    %c0_81 = arith.constant 0 : index
    %63 = vector.load %arg5[%c2_79, %c0_80, %c0_81] : memref<3x128x128xf32, #tpu.memory_space<vmem>>, vector<1x128x128xf32>
    %64 = vector.shape_cast %63 : vector<1x128x128xf32> to vector<128x128xf32>
    %cst_82 = arith.constant dense<0.000000e+00> : vector<8x128xf32>
    %65 = tpu.matmul %62, %64, %cst_82 {dimension_numbers = #tpu.dot_dimension_numbers<[1], [0], [0], [1], [0, 0, 1, 1], [], []>} : vector<8x128xf32>, vector<128x128xf32>, vector<8x128xf32> -> vector<8x128xf32>
    %66 = arith.addf %58, %65 : vector<8x128xf32>
    %cst_83 = arith.constant 0.000000e+00 : f32
    %67 = vector.broadcast %cst_83 : f32 to vector<8x128xf32>
    %68 = arith.maximumf %66, %67 : vector<8x128xf32>
    %c1_84 = arith.constant 1 : index
    %c0_85 = arith.constant 0 : index
    %69 = vector.load %arg34[%c1_84, %c0_85] : memref<10x128xf32, #tpu.memory_space<vmem>>, vector<8x128xf32>
    tpu.vector_store %arg34[%c1_84, %c0_85], %68 {strides = array<i32>} : memref<10x128xf32, #tpu.memory_space<vmem>>, vector<8x128xf32>,
    %c0_86 = arith.constant 0 : index
    %c0_87 = arith.constant 0 : index
    %70 = vector.load %arg9[%c0_86, %c0_87] : memref<1x128xf32, #tpu.memory_space<vmem>>, vector<1x128xf32>
    %c0_88 = arith.constant 0 : index
    %c0_89 = arith.constant 0 : index
    %c0_90 = arith.constant 0 : index
    %71 = vector.load %arg7[%c0_88, %c0_89, %c0_90] : memref<3x4x10xf32, #tpu.memory_space<vmem>>, vector<1x4x10xf32>
    %72 = vector.shape_cast %71 : vector<1x4x10xf32> to vector<4x10xf32>
    %c0_91 = arith.constant 0 : index
    %c0_92 = arith.constant 0 : index
    %73 = vector.load %arg34[%c0_91, %c0_92] : memref<10x128xf32, #tpu.memory_space<vmem>>, vector<10x128xf32>
    %cst_93 = arith.constant dense<0.000000e+00> : vector<4x128xf32>
    %74 = tpu.matmul %72, %73, %cst_93 {dimension_numbers = #tpu.dot_dimension_numbers<[1], [0], [0], [1], [0, 0, 1, 1], [], []>} : vector<4x10xf32>, vector<10x128xf32>, vector<4x128xf32> -> vector<4x128xf32>
    %c0_94 = arith.constant 0 : index
    %c0_95 = arith.constant 0 : index
    %c0_96 = arith.constant 0 : index
    %75 = vector.load %arg8[%c0_94, %c0_95, %c0_96] : memref<3x128x128xf32, #tpu.memory_space<vmem>>, vector<1x128x128xf32>
    %76 = vector.shape_cast %75 : vector<1x128x128xf32> to vector<128x128xf32>
    %cst_97 = arith.constant dense<0.000000e+00> : vector<4x128xf32>
    %77 = tpu.matmul %74, %76, %cst_97 {dimension_numbers = #tpu.dot_dimension_numbers<[1], [0], [0], [1], [0, 0, 1, 1], [], []>} : vector<4x128xf32>, vector<128x128xf32>, vector<4x128xf32> -> vector<4x128xf32>
    %78 = vector.broadcast %70 : vector<1x128xf32> to vector<4x128xf32>
    %79 = arith.addf %78, %77 : vector<4x128xf32>
    %c1_98 = arith.constant 1 : index
    %c0_99 = arith.constant 0 : index
    %c0_100 = arith.constant 0 : index
    %80 = vector.load %arg7[%c1_98, %c0_99, %c0_100] : memref<3x4x10xf32, #tpu.memory_space<vmem>>, vector<1x4x10xf32>
    %81 = vector.shape_cast %80 : vector<1x4x10xf32> to vector<4x10xf32>
    %c0_101 = arith.constant 0 : index
    %c0_102 = arith.constant 0 : index
    %82 = vector.load %arg34[%c0_101, %c0_102] : memref<10x128xf32, #tpu.memory_space<vmem>>, vector<10x128xf32>
    %cst_103 = arith.constant dense<0.000000e+00> : vector<4x128xf32>
    %83 = tpu.matmul %81, %82, %cst_103 {dimension_numbers = #tpu.dot_dimension_numbers<[1], [0], [0], [1], [0, 0, 1, 1], [], []>} : vector<4x10xf32>, vector<10x128xf32>, vector<4x128xf32> -> vector<4x128xf32>
    %c1_104 = arith.constant 1 : index
    %c0_105 = arith.constant 0 : index
    %c0_106 = arith.constant 0 : index
    %84 = vector.load %arg8[%c1_104, %c0_105, %c0_106] : memref<3x128x128xf32, #tpu.memory_space<vmem>>, vector<1x128x128xf32>
    %85 = vector.shape_cast %84 : vector<1x128x128xf32> to vector<128x128xf32>
    %cst_107 = arith.constant dense<0.000000e+00> : vector<4x128xf32>
    %86 = tpu.matmul %83, %85, %cst_107 {dimension_numbers = #tpu.dot_dimension_numbers<[1], [0], [0], [1], [0, 0, 1, 1], [], []>} : vector<4x128xf32>, vector<128x128xf32>, vector<4x128xf32> -> vector<4x128xf32>
    %87 = arith.addf %79, %86 : vector<4x128xf32>
    %c2_108 = arith.constant 2 : index
    %c0_109 = arith.constant 0 : index
    %c0_110 = arith.constant 0 : index
    %88 = vector.load %arg7[%c2_108, %c0_109, %c0_110] : memref<3x4x10xf32, #tpu.memory_space<vmem>>, vector<1x4x10xf32>
    %89 = vector.shape_cast %88 : vector<1x4x10xf32> to vector<4x10xf32>
    %c0_111 = arith.constant 0 : index
    %c0_112 = arith.constant 0 : index
    %90 = vector.load %arg34[%c0_111, %c0_112] : memref<10x128xf32, #tpu.memory_space<vmem>>, vector<10x128xf32>
    %cst_113 = arith.constant dense<0.000000e+00> : vector<4x128xf32>
    %91 = tpu.matmul %89, %90, %cst_113 {dimension_numbers = #tpu.dot_dimension_numbers<[1], [0], [0], [1], [0, 0, 1, 1], [], []>} : vector<4x10xf32>, vector<10x128xf32>, vector<4x128xf32> -> vector<4x128xf32>
    %c2_114 = arith.constant 2 : index
    %c0_115 = arith.constant 0 : index
    %c0_116 = arith.constant 0 : index
    %92 = vector.load %arg8[%c2_114, %c0_115, %c0_116] : memref<3x128x128xf32, #tpu.memory_space<vmem>>, vector<1x128x128xf32>
    %93 = vector.shape_cast %92 : vector<1x128x128xf32> to vector<128x128xf32>
    %cst_117 = arith.constant dense<0.000000e+00> : vector<4x128xf32>
    %94 = tpu.matmul %91, %93, %cst_117 {dimension_numbers = #tpu.dot_dimension_numbers<[1], [0], [0], [1], [0, 0, 1, 1], [], []>} : vector<4x128xf32>, vector<128x128xf32>, vector<4x128xf32> -> vector<4x128xf32>
    %95 = arith.addf %87, %94 : vector<4x128xf32>
    %cst_118 = arith.constant 0.000000e+00 : f32
    %96 = vector.broadcast %cst_118 : f32 to vector<4x128xf32>
    %97 = arith.maximumf %95, %96 : vector<4x128xf32>
    %c0_119 = arith.constant 0 : index
    %c0_120 = arith.constant 0 : index
    %98 = vector.load %arg14[%c0_119, %c0_120] : memref<128x64xf32, #tpu.memory_space<vmem>>, vector<128x64xf32>
    %cst_121 = arith.constant dense<0.000000e+00> : vector<4x64xf32>
    %99 = tpu.matmul %97, %98, %cst_121 {dimension_numbers = #tpu.dot_dimension_numbers<[1], [0], [0], [1], [0, 0, 1, 1], [], []>} : vector<4x128xf32>, vector<128x64xf32>, vector<4x64xf32> -> vector<4x64xf32>
    %c0_122 = arith.constant 0 : index
    %c0_123 = arith.constant 0 : index
    %100 = vector.load %arg15[%c0_122, %c0_123] : memref<1x64xf32, #tpu.memory_space<vmem>>, vector<1x64xf32>
    %101 = vector.broadcast %100 : vector<1x64xf32> to vector<4x64xf32>
    %102 = arith.addf %99, %101 : vector<4x64xf32>
    %c1_124 = arith.constant 1 : index
    %c0_125 = arith.constant 0 : index
    %103 = vector.load %arg35[%c1_124, %c0_125] : memref<6x64xf32, #tpu.memory_space<vmem>>, vector<4x64xf32>
    tpu.vector_store %arg35[%c1_124, %c0_125], %102 {strides = array<i32>} : memref<6x64xf32, #tpu.memory_space<vmem>>, vector<4x64xf32>,
    %c0_126 = arith.constant 0 : index
    %c0_127 = arith.constant 0 : index
    %104 = vector.load %arg21[%c0_126, %c0_127] : memref<1x64xf32, #tpu.memory_space<vmem>>, vector<1x64xf32>
    %c0_128 = arith.constant 0 : index
    %c0_129 = arith.constant 0 : index
    %105 = vector.load %arg35[%c0_128, %c0_129] : memref<6x64xf32, #tpu.memory_space<vmem>>, vector<4x64xf32>
    %c0_130 = arith.constant 0 : index
    %c0_131 = arith.constant 0 : index
    %c0_132 = arith.constant 0 : index
    %106 = vector.load %arg20[%c0_130, %c0_131, %c0_132] : memref<3x64x64xf32, #tpu.memory_space<vmem>>, vector<1x64x64xf32>
    %107 = vector.shape_cast %106 : vector<1x64x64xf32> to vector<64x64xf32>
    %cst_133 = arith.constant dense<0.000000e+00> : vector<4x64xf32>
    %108 = tpu.matmul %105, %107, %cst_133 {dimension_numbers = #tpu.dot_dimension_numbers<[1], [0], [0], [1], [0, 0, 1, 1], [], []>} : vector<4x64xf32>, vector<64x64xf32>, vector<4x64xf32> -> vector<4x64xf32>
    %109 = vector.broadcast %104 : vector<1x64xf32> to vector<4x64xf32>
    %110 = arith.addf %109, %108 : vector<4x64xf32>
    %c1_134 = arith.constant 1 : index
    %c0_135 = arith.constant 0 : index
    %111 = vector.load %arg35[%c1_134, %c0_135] : memref<6x64xf32, #tpu.memory_space<vmem>>, vector<4x64xf32>
    %c1_136 = arith.constant 1 : index
    %c0_137 = arith.constant 0 : index
    %c0_138 = arith.constant 0 : index
    %112 = vector.load %arg20[%c1_136, %c0_137, %c0_138] : memref<3x64x64xf32, #tpu.memory_space<vmem>>, vector<1x64x64xf32>
    %113 = vector.shape_cast %112 : vector<1x64x64xf32> to vector<64x64xf32>
    %cst_139 = arith.constant dense<0.000000e+00> : vector<4x64xf32>
    %114 = tpu.matmul %111, %113, %cst_139 {dimension_numbers = #tpu.dot_dimension_numbers<[1], [0], [0], [1], [0, 0, 1, 1], [], []>} : vector<4x64xf32>, vector<64x64xf32>, vector<4x64xf32> -> vector<4x64xf32>
    %115 = arith.addf %110, %114 : vector<4x64xf32>
    %c2_140 = arith.constant 2 : index
    %c0_141 = arith.constant 0 : index
    %116 = vector.load %arg35[%c2_140, %c0_141] : memref<6x64xf32, #tpu.memory_space<vmem>>, vector<4x64xf32>
    %c2_142 = arith.constant 2 : index
    %c0_143 = arith.constant 0 : index
    %c0_144 = arith.constant 0 : index
    %117 = vector.load %arg20[%c2_142, %c0_143, %c0_144] : memref<3x64x64xf32, #tpu.memory_space<vmem>>, vector<1x64x64xf32>
    %118 = vector.shape_cast %117 : vector<1x64x64xf32> to vector<64x64xf32>
    %cst_145 = arith.constant dense<0.000000e+00> : vector<4x64xf32>
    %119 = tpu.matmul %116, %118, %cst_145 {dimension_numbers = #tpu.dot_dimension_numbers<[1], [0], [0], [1], [0, 0, 1, 1], [], []>} : vector<4x64xf32>, vector<64x64xf32>, vector<4x64xf32> -> vector<4x64xf32>
    %120 = arith.addf %115, %119 : vector<4x64xf32>
    %c0_146 = arith.constant 0 : index
    %c0_147 = arith.constant 0 : index
    %121 = vector.load %arg26[%c0_146, %c0_147] : memref<2x4xf32, #tpu.memory_space<vmem>>, vector<2x4xf32>
    %cst_148 = arith.constant dense<0.000000e+00> : vector<2x64xf32>
    %122 = tpu.matmul %121, %120, %cst_148 {dimension_numbers = #tpu.dot_dimension_numbers<[1], [0], [0], [1], [0, 0, 1, 1], [], []>} : vector<2x4xf32>, vector<4x64xf32>, vector<2x64xf32> -> vector<2x64xf32>
    %c0_149 = arith.constant 0 : index
    %c0_150 = arith.constant 0 : index
    %123 = vector.load %arg27[%c0_149, %c0_150] : memref<2x4xf32, #tpu.memory_space<vmem>>, vector<2x4xf32>
    %cst_151 = arith.constant dense<0.000000e+00> : vector<2x64xf32>
    %124 = tpu.matmul %123, %120, %cst_151 {dimension_numbers = #tpu.dot_dimension_numbers<[1], [0], [0], [1], [0, 0, 1, 1], [], []>} : vector<2x4xf32>, vector<4x64xf32>, vector<2x64xf32> -> vector<2x64xf32>
    %125 = tpu.concatenate %122, %124 in 1 : vector<2x64xf32>, vector<2x64xf32> -> vector<2x128xf32>
    %c0_152 = arith.constant 0 : index
    %c0_153 = arith.constant 0 : index
    %c0_154 = arith.constant 0 : index
    %126 = vector.load %arg31[%c0_152, %c0_153, %c0_154] : memref<1x3x128xf32, #tpu.memory_space<vmem>>, vector<1x2x128xf32>
    %127 = vector.shape_cast %126 : vector<1x2x128xf32> to vector<2x128xf32>
    %128 = vector.shape_cast %125 : vector<2x128xf32> to vector<1x2x128xf32>
    tpu.vector_store %arg31[%c0_152, %c0_153, %c0_154], %128 {strides = array<i32>} : memref<1x3x128xf32, #tpu.memory_space<vmem>>, vector<1x2x128xf32>,
    %c0_155 = arith.constant 0 : index
    %c0_156 = arith.constant 0 : index
    %129 = vector.load %arg28[%c0_155, %c0_156] : memref<64x32xf32, #tpu.memory_space<vmem>>, vector<64x32xf32>
    %cst_157 = arith.constant dense<0.000000e+00> : vector<2x32xf32>
    %130 = tpu.matmul %122, %129, %cst_157 {dimension_numbers = #tpu.dot_dimension_numbers<[1], [0], [0], [1], [0, 0, 1, 1], [], []>} : vector<2x64xf32>, vector<64x32xf32>, vector<2x32xf32> -> vector<2x32xf32>
    %131 = vector.extract_strided_slice %130 {offsets = [0, 0], sizes = [1, 32], strides = [1, 1]} : vector<2x32xf32> to vector<1x32xf32>
    %132 = vector.extract_strided_slice %130 {offsets = [1, 0], sizes = [1, 32], strides = [1, 1]} : vector<2x32xf32> to vector<1x32xf32>
    %cst_158 = arith.constant 0.000000e+00 : f32
    %133 = vector.broadcast %cst_158 : f32 to vector<1x64xf32>
    %134 = tpu.concatenate %131, %132, %133 in 1 : vector<1x32xf32>, vector<1x32xf32>, vector<1x64xf32> -> vector<1x128xf32>
    %c0_159 = arith.constant 0 : index
    %c2_160 = arith.constant 2 : index
    %c0_161 = arith.constant 0 : index
    %135 = vector.load %arg31[%c0_159, %c2_160, %c0_161] : memref<1x3x128xf32, #tpu.memory_space<vmem>>, vector<1x1x128xf32>
    %136 = vector.shape_cast %135 : vector<1x1x128xf32> to vector<1x128xf32>
    %137 = vector.shape_cast %134 : vector<1x128xf32> to vector<1x1x128xf32>
    tpu.vector_store %arg31[%c0_159, %c2_160, %c0_161], %137 {strides = array<i32>} : memref<1x3x128xf32, #tpu.memory_space<vmem>>, vector<1x1x128xf32>,
    %c0_162 = arith.constant 0 : index
    %c0_163 = arith.constant 0 : index
    %138 = vector.load %arg23[%c0_162, %c0_163] : memref<8x4xf32, #tpu.memory_space<vmem>>, vector<8x4xf32>
    %c0_164 = arith.constant 0 : index
    %c0_165 = arith.constant 0 : index
    %139 = vector.load %arg22[%c0_164, %c0_165] : memref<64x128xf32, #tpu.memory_space<vmem>>, vector<64x128xf32>
    %cst_166 = arith.constant dense<0.000000e+00> : vector<4x128xf32>
    %140 = tpu.matmul %102, %139, %cst_166 {dimension_numbers = #tpu.dot_dimension_numbers<[1], [0], [0], [1], [0, 0, 1, 1], [], []>} : vector<4x64xf32>, vector<64x128xf32>, vector<4x128xf32> -> vector<4x128xf32>
    %cst_167 = arith.constant dense<0.000000e+00> : vector<8x128xf32>
    %141 = tpu.matmul %138, %140, %cst_167 {dimension_numbers = #tpu.dot_dimension_numbers<[1], [0], [0], [1], [0, 0, 1, 1], [], []>} : vector<8x4xf32>, vector<4x128xf32>, vector<8x128xf32> -> vector<8x128xf32>
    %c0_168 = arith.constant 0 : index
    %c0_169 = arith.constant 0 : index
    %142 = vector.load %arg12[%c0_168, %c0_169] : memref<128x128xf32, #tpu.memory_space<vmem>>, vector<128x128xf32>
    %cst_170 = arith.constant dense<0.000000e+00> : vector<8x128xf32>
    %143 = tpu.matmul %68, %142, %cst_170 {dimension_numbers = #tpu.dot_dimension_numbers<[1], [0], [0], [1], [0, 0, 1, 1], [], []>} : vector<8x128xf32>, vector<128x128xf32>, vector<8x128xf32> -> vector<8x128xf32>
    %c0_171 = arith.constant 0 : index
    %c0_172 = arith.constant 0 : index
    %144 = vector.load %arg13[%c0_171, %c0_172] : memref<1x128xf32, #tpu.memory_space<vmem>>, vector<1x128xf32>
    %145 = vector.broadcast %144 : vector<1x128xf32> to vector<8x128xf32>
    %146 = arith.addf %143, %145 : vector<8x128xf32>
    %147 = arith.addf %146, %141 : vector<8x128xf32>
    %c1_173 = arith.constant 1 : index
    %c0_174 = arith.constant 0 : index
    %148 = vector.load %arg36[%c1_173, %c0_174] : memref<10x128xf32, #tpu.memory_space<vmem>>, vector<8x128xf32>
    tpu.vector_store %arg36[%c1_173, %c0_174], %147 {strides = array<i32>} : memref<10x128xf32, #tpu.memory_space<vmem>>, vector<8x128xf32>,
    %c0_175 = arith.constant 0 : index
    %c0_176 = arith.constant 0 : index
    %149 = vector.load %arg19[%c0_175, %c0_176] : memref<1x128xf32, #tpu.memory_space<vmem>>, vector<1x128xf32>
    %c0_177 = arith.constant 0 : index
    %c0_178 = arith.constant 0 : index
    %150 = vector.load %arg36[%c0_177, %c0_178] : memref<10x128xf32, #tpu.memory_space<vmem>>, vector<8x128xf32>
    %c0_179 = arith.constant 0 : index
    %c0_180 = arith.constant 0 : index
    %c0_181 = arith.constant 0 : index
    %151 = vector.load %arg18[%c0_179, %c0_180, %c0_181] : memref<3x128x128xf32, #tpu.memory_space<vmem>>, vector<1x128x128xf32>
    %152 = vector.shape_cast %151 : vector<1x128x128xf32> to vector<128x128xf32>
    %cst_182 = arith.constant dense<0.000000e+00> : vector<8x128xf32>
    %153 = tpu.matmul %150, %152, %cst_182 {dimension_numbers = #tpu.dot_dimension_numbers<[1], [0], [0], [1], [0, 0, 1, 1], [], []>} : vector<8x128xf32>, vector<128x128xf32>, vector<8x128xf32> -> vector<8x128xf32>
    %154 = vector.broadcast %149 : vector<1x128xf32> to vector<8x128xf32>
    %155 = arith.addf %154, %153 : vector<8x128xf32>
    %c1_183 = arith.constant 1 : index
    %c0_184 = arith.constant 0 : index
    %156 = vector.load %arg36[%c1_183, %c0_184] : memref<10x128xf32, #tpu.memory_space<vmem>>, vector<8x128xf32>
    %c1_185 = arith.constant 1 : index
    %c0_186 = arith.constant 0 : index
    %c0_187 = arith.constant 0 : index
    %157 = vector.load %arg18[%c1_185, %c0_186, %c0_187] : memref<3x128x128xf32, #tpu.memory_space<vmem>>, vector<1x128x128xf32>
    %158 = vector.shape_cast %157 : vector<1x128x128xf32> to vector<128x128xf32>
    %cst_188 = arith.constant dense<0.000000e+00> : vector<8x128xf32>
    %159 = tpu.matmul %156, %158, %cst_188 {dimension_numbers = #tpu.dot_dimension_numbers<[1], [0], [0], [1], [0, 0, 1, 1], [], []>} : vector<8x128xf32>, vector<128x128xf32>, vector<8x128xf32> -> vector<8x128xf32>
    %160 = arith.addf %155, %159 : vector<8x128xf32>
    %c2_189 = arith.constant 2 : index
    %c0_190 = arith.constant 0 : index
    %161 = vector.load %arg36[%c2_189, %c0_190] : memref<10x128xf32, #tpu.memory_space<vmem>>, vector<8x128xf32>
    %c2_191 = arith.constant 2 : index
    %c0_192 = arith.constant 0 : index
    %c0_193 = arith.constant 0 : index
    %162 = vector.load %arg18[%c2_191, %c0_192, %c0_193] : memref<3x128x128xf32, #tpu.memory_space<vmem>>, vector<1x128x128xf32>
    %163 = vector.shape_cast %162 : vector<1x128x128xf32> to vector<128x128xf32>
    %cst_194 = arith.constant dense<0.000000e+00> : vector<8x128xf32>
    %164 = tpu.matmul %161, %163, %cst_194 {dimension_numbers = #tpu.dot_dimension_numbers<[1], [0], [0], [1], [0, 0, 1, 1], [], []>} : vector<8x128xf32>, vector<128x128xf32>, vector<8x128xf32> -> vector<8x128xf32>
    %165 = arith.addf %160, %164 : vector<8x128xf32>
    %c0_195 = arith.constant 0 : index
    %c0_196 = arith.constant 0 : index
    %c0_197 = arith.constant 0 : index
    %166 = vector.load %arg30[%c0_195, %c0_196, %c0_197] : memref<1x8x128xf32, #tpu.memory_space<vmem>>, vector<1x8x128xf32>
    %167 = vector.shape_cast %166 : vector<1x8x128xf32> to vector<8x128xf32>
    %168 = vector.shape_cast %165 : vector<8x128xf32> to vector<1x8x128xf32>
    tpu.vector_store %arg30[%c0_195, %c0_196, %c0_197], %168 {strides = array<i32>} : memref<1x8x128xf32, #tpu.memory_space<vmem>>, vector<1x8x128xf32>,
    %c0_198 = arith.constant 0 : index
    %c0_199 = arith.constant 0 : index
    %169 = vector.load %arg25[%c0_198, %c0_199] : memref<16x8xf32, #tpu.memory_space<vmem>>, vector<16x8xf32>
    %c0_200 = arith.constant 0 : index
    %c0_201 = arith.constant 0 : index
    %170 = vector.load %arg24[%c0_200, %c0_201] : memref<128x256xf32, #tpu.memory_space<vmem>>, vector<128x256xf32>
    %cst_202 = arith.constant dense<0.000000e+00> : vector<8x256xf32>
    %171 = tpu.matmul %147, %170, %cst_202 {dimension_numbers = #tpu.dot_dimension_numbers<[1], [0], [0], [1], [0, 0, 1, 1], [], []>} : vector<8x128xf32>, vector<128x256xf32>, vector<8x256xf32> -> vector<8x256xf32>
    %cst_203 = arith.constant dense<0.000000e+00> : vector<16x256xf32>
    %172 = tpu.matmul %169, %171, %cst_203 {dimension_numbers = #tpu.dot_dimension_numbers<[1], [0], [0], [1], [0, 0, 1, 1], [], []>} : vector<16x8xf32>, vector<8x256xf32>, vector<16x256xf32> -> vector<16x256xf32>
    %c0_204 = arith.constant 0 : index
    %c0_205 = arith.constant 0 : index
    %173 = vector.load %arg10[%c0_204, %c0_205] : memref<128x256xf32, #tpu.memory_space<vmem>>, vector<128x256xf32>
    %cst_206 = arith.constant dense<0.000000e+00> : vector<16x256xf32>
    %174 = tpu.matmul %39, %173, %cst_206 {dimension_numbers = #tpu.dot_dimension_numbers<[1], [0], [0], [1], [0, 0, 1, 1], [], []>} : vector<16x128xf32>, vector<128x256xf32>, vector<16x256xf32> -> vector<16x256xf32>
    %c0_207 = arith.constant 0 : index
    %c0_208 = arith.constant 0 : index
    %175 = vector.load %arg11[%c0_207, %c0_208] : memref<1x256xf32, #tpu.memory_space<vmem>>, vector<1x256xf32>
    %176 = vector.broadcast %175 : vector<1x256xf32> to vector<16x256xf32>
    %177 = arith.addf %174, %176 : vector<16x256xf32>
    %178 = arith.addf %177, %172 : vector<16x256xf32>
    %c1_209 = arith.constant 1 : index
    %c0_210 = arith.constant 0 : index
    %179 = vector.load %arg37[%c1_209, %c0_210] : memref<18x256xf32, #tpu.memory_space<vmem>>, vector<16x256xf32>
    tpu.vector_store %arg37[%c1_209, %c0_210], %178 {strides = array<i32>} : memref<18x256xf32, #tpu.memory_space<vmem>>, vector<16x256xf32>,
    %c0_211 = arith.constant 0 : index
    %c0_212 = arith.constant 0 : index
    %180 = vector.load %arg17[%c0_211, %c0_212] : memref<1x256xf32, #tpu.memory_space<vmem>>, vector<1x256xf32>
    %c0_213 = arith.constant 0 : index
    %c0_214 = arith.constant 0 : index
    %181 = vector.load %arg37[%c0_213, %c0_214] : memref<18x256xf32, #tpu.memory_space<vmem>>, vector<16x256xf32>
    %c0_215 = arith.constant 0 : index
    %c0_216 = arith.constant 0 : index
    %c0_217 = arith.constant 0 : index
    %182 = vector.load %arg16[%c0_215, %c0_216, %c0_217] : memref<3x256x256xf32, #tpu.memory_space<vmem>>, vector<1x256x256xf32>
    %183 = vector.shape_cast %182 : vector<1x256x256xf32> to vector<256x256xf32>
    %cst_218 = arith.constant dense<0.000000e+00> : vector<16x256xf32>
    %184 = tpu.matmul %181, %183, %cst_218 {dimension_numbers = #tpu.dot_dimension_numbers<[1], [0], [0], [1], [0, 0, 1, 1], [], []>} : vector<16x256xf32>, vector<256x256xf32>, vector<16x256xf32> -> vector<16x256xf32>
    %185 = vector.broadcast %180 : vector<1x256xf32> to vector<16x256xf32>
    %186 = arith.addf %185, %184 : vector<16x256xf32>
    %c1_219 = arith.constant 1 : index
    %c0_220 = arith.constant 0 : index
    %187 = vector.load %arg37[%c1_219, %c0_220] : memref<18x256xf32, #tpu.memory_space<vmem>>, vector<16x256xf32>
    %c1_221 = arith.constant 1 : index
    %c0_222 = arith.constant 0 : index
    %c0_223 = arith.constant 0 : index
    %188 = vector.load %arg16[%c1_221, %c0_222, %c0_223] : memref<3x256x256xf32, #tpu.memory_space<vmem>>, vector<1x256x256xf32>
    %189 = vector.shape_cast %188 : vector<1x256x256xf32> to vector<256x256xf32>
    %cst_224 = arith.constant dense<0.000000e+00> : vector<16x256xf32>
    %190 = tpu.matmul %187, %189, %cst_224 {dimension_numbers = #tpu.dot_dimension_numbers<[1], [0], [0], [1], [0, 0, 1, 1], [], []>} : vector<16x256xf32>, vector<256x256xf32>, vector<16x256xf32> -> vector<16x256xf32>
    %191 = arith.addf %186, %190 : vector<16x256xf32>
    %c2_225 = arith.constant 2 : index
    %c0_226 = arith.constant 0 : index
    %192 = vector.load %arg37[%c2_225, %c0_226] : memref<18x256xf32, #tpu.memory_space<vmem>>, vector<16x256xf32>
    %c2_227 = arith.constant 2 : index
    %c0_228 = arith.constant 0 : index
    %c0_229 = arith.constant 0 : index
    %193 = vector.load %arg16[%c2_227, %c0_228, %c0_229] : memref<3x256x256xf32, #tpu.memory_space<vmem>>, vector<1x256x256xf32>
    %194 = vector.shape_cast %193 : vector<1x256x256xf32> to vector<256x256xf32>
    %cst_230 = arith.constant dense<0.000000e+00> : vector<16x256xf32>
    %195 = tpu.matmul %192, %194, %cst_230 {dimension_numbers = #tpu.dot_dimension_numbers<[1], [0], [0], [1], [0, 0, 1, 1], [], []>} : vector<16x256xf32>, vector<256x256xf32>, vector<16x256xf32> -> vector<16x256xf32>
    %196 = arith.addf %191, %195 : vector<16x256xf32>
    %c0_231 = arith.constant 0 : index
    %c0_232 = arith.constant 0 : index
    %c0_233 = arith.constant 0 : index
    %197 = vector.load %arg29[%c0_231, %c0_232, %c0_233] : memref<1x16x256xf32, #tpu.memory_space<vmem>>, vector<1x16x256xf32>
    %198 = vector.shape_cast %197 : vector<1x16x256xf32> to vector<16x256xf32>
    %199 = vector.shape_cast %196 : vector<16x256xf32> to vector<1x16x256xf32>
    tpu.vector_store %arg29[%c0_231, %c0_232, %c0_233], %199 {strides = array<i32>} : memref<1x16x256xf32, #tpu.memory_space<vmem>>, vector<1x16x256xf32>,
    return
  }
  func.func @transform_0(%arg0: i32) -> (i32, i32, i32) {
    %c0_i32 = arith.constant 0 : i32
    %c0_i32_0 = arith.constant 0 : i32
    %c0_i32_1 = arith.constant 0 : i32
    return %arg0, %c0_i32, %c0_i32_0 : i32, i32, i32
  }
  func.func @transform_1(%arg0: i32) -> (i32, i32, i32) {
    %c0_i32 = arith.constant 0 : i32
    %c0_i32_0 = arith.constant 0 : i32
    %c0_i32_1 = arith.constant 0 : i32
    %c0_i32_2 = arith.constant 0 : i32
    return %c0_i32, %c0_i32_0, %c0_i32_1 : i32, i32, i32
  }
  func.func @transform_2(%arg0: i32) -> (i32, i32) {
    %c0_i32 = arith.constant 0 : i32
    %c0_i32_0 = arith.constant 0 : i32
    %c0_i32_1 = arith.constant 0 : i32
    return %c0_i32, %c0_i32_0 : i32, i32
  }
  func.func @transform_3(%arg0: i32) -> (i32, i32, i32) {
    %c0_i32 = arith.constant 0 : i32
    %c0_i32_0 = arith.constant 0 : i32
    %c0_i32_1 = arith.constant 0 : i32
    %c0_i32_2 = arith.constant 0 : i32
    return %c0_i32, %c0_i32_0, %c0_i32_1 : i32, i32, i32
  }
  func.func @transform_4(%arg0: i32) -> (i32, i32, i32) {
    %c0_i32 = arith.constant 0 : i32
    %c0_i32_0 = arith.constant 0 : i32
    %c0_i32_1 = arith.constant 0 : i32
    %c0_i32_2 = arith.constant 0 : i32
    return %c0_i32, %c0_i32_0, %c0_i32_1 : i32, i32, i32
  }
  func.func @transform_5(%arg0: i32) -> (i32, i32) {
    %c0_i32 = arith.constant 0 : i32
    %c0_i32_0 = arith.constant 0 : i32
    %c0_i32_1 = arith.constant 0 : i32
    return %c0_i32, %c0_i32_0 : i32, i32
  }
  func.func @transform_6(%arg0: i32) -> (i32, i32, i32) {
    %c0_i32 = arith.constant 0 : i32
    %c0_i32_0 = arith.constant 0 : i32
    %c0_i32_1 = arith.constant 0 : i32
    %c0_i32_2 = arith.constant 0 : i32
    return %c0_i32, %c0_i32_0, %c0_i32_1 : i32, i32, i32
  }
  func.func @transform_7(%arg0: i32) -> (i32, i32, i32) {
    %c0_i32 = arith.constant 0 : i32
    %c0_i32_0 = arith.constant 0 : i32
    %c0_i32_1 = arith.constant 0 : i32
    %c0_i32_2 = arith.constant 0 : i32
    return %c0_i32, %c0_i32_0, %c0_i32_1 : i32, i32, i32
  }
  func.func @transform_8(%arg0: i32) -> (i32, i32) {
    %c0_i32 = arith.constant 0 : i32
    %c0_i32_0 = arith.constant 0 : i32
    %c0_i32_1 = arith.constant 0 : i32
    return %c0_i32, %c0_i32_0 : i32, i32
  }
  func.func @transform_9(%arg0: i32) -> (i32, i32) {
    %c0_i32 = arith.constant 0 : i32
    %c0_i32_0 = arith.constant 0 : i32
    %c0_i32_1 = arith.constant 0 : i32
    return %c0_i32, %c0_i32_0 : i32, i32
  }
  func.func @transform_10(%arg0: i32) -> (i32, i32) {
    %c0_i32 = arith.constant 0 : i32
    %c0_i32_0 = arith.constant 0 : i32
    %c0_i32_1 = arith.constant 0 : i32
    return %c0_i32, %c0_i32_0 : i32, i32
  }
  func.func @transform_11(%arg0: i32) -> (i32, i32) {
    %c0_i32 = arith.constant 0 : i32
    %c0_i32_0 = arith.constant 0 : i32
    %c0_i32_1 = arith.constant 0 : i32
    return %c0_i32, %c0_i32_0 : i32, i32
  }
  func.func @transform_12(%arg0: i32) -> (i32, i32) {
    %c0_i32 = arith.constant 0 : i32
    %c0_i32_0 = arith.constant 0 : i32
    %c0_i32_1 = arith.constant 0 : i32
    return %c0_i32, %c0_i32_0 : i32, i32
  }
  func.func @transform_13(%arg0: i32) -> (i32, i32) {
    %c0_i32 = arith.constant 0 : i32
    %c0_i32_0 = arith.constant 0 : i32
    %c0_i32_1 = arith.constant 0 : i32
    return %c0_i32, %c0_i32_0 : i32, i32
  }
  func.func @transform_14(%arg0: i32) -> (i32, i32) {
    %c0_i32 = arith.constant 0 : i32
    %c0_i32_0 = arith.constant 0 : i32
    %c0_i32_1 = arith.constant 0 : i32
    return %c0_i32, %c0_i32_0 : i32, i32
  }
  func.func @transform_15(%arg0: i32) -> (i32, i32, i32) {
    %c0_i32 = arith.constant 0 : i32
    %c0_i32_0 = arith.constant 0 : i32
    %c0_i32_1 = arith.constant 0 : i32
    %c0_i32_2 = arith.constant 0 : i32
    return %c0_i32, %c0_i32_0, %c0_i32_1 : i32, i32, i32
  }
  func.func @transform_16(%arg0: i32) -> (i32, i32) {
    %c0_i32 = arith.constant 0 : i32
    %c0_i32_0 = arith.constant 0 : i32
    %c0_i32_1 = arith.constant 0 : i32
    return %c0_i32, %c0_i32_0 : i32, i32
  }
  func.func @transform_17(%arg0: i32) -> (i32, i32, i32) {
    %c0_i32 = arith.constant 0 : i32
    %c0_i32_0 = arith.constant 0 : i32
    %c0_i32_1 = arith.constant 0 : i32
    %c0_i32_2 = arith.constant 0 : i32
    return %c0_i32, %c0_i32_0, %c0_i32_1 : i32, i32, i32
  }
  func.func @transform_18(%arg0: i32) -> (i32, i32) {
    %c0_i32 = arith.constant 0 : i32
    %c0_i32_0 = arith.constant 0 : i32
    %c0_i32_1 = arith.constant 0 : i32
    return %c0_i32, %c0_i32_0 : i32, i32
  }
  func.func @transform_19(%arg0: i32) -> (i32, i32, i32) {
    %c0_i32 = arith.constant 0 : i32
    %c0_i32_0 = arith.constant 0 : i32
    %c0_i32_1 = arith.constant 0 : i32
    %c0_i32_2 = arith.constant 0 : i32
    return %c0_i32, %c0_i32_0, %c0_i32_1 : i32, i32, i32
  }
  func.func @transform_20(%arg0: i32) -> (i32, i32) {
    %c0_i32 = arith.constant 0 : i32
    %c0_i32_0 = arith.constant 0 : i32
    %c0_i32_1 = arith.constant 0 : i32
    return %c0_i32, %c0_i32_0 : i32, i32
  }
  func.func @transform_21(%arg0: i32) -> (i32, i32) {
    %c0_i32 = arith.constant 0 : i32
    %c0_i32_0 = arith.constant 0 : i32
    %c0_i32_1 = arith.constant 0 : i32
    return %c0_i32, %c0_i32_0 : i32, i32
  }
  func.func @transform_22(%arg0: i32) -> (i32, i32) {
    %c0_i32 = arith.constant 0 : i32
    %c0_i32_0 = arith.constant 0 : i32
    %c0_i32_1 = arith.constant 0 : i32
    return %c0_i32, %c0_i32_0 : i32, i32
  }
  func.func @transform_23(%arg0: i32) -> (i32, i32) {
    %c0_i32 = arith.constant 0 : i32
    %c0_i32_0 = arith.constant 0 : i32
    %c0_i32_1 = arith.constant 0 : i32
    return %c0_i32, %c0_i32_0 : i32, i32
  }
  func.func @transform_24(%arg0: i32) -> (i32, i32) {
    %c0_i32 = arith.constant 0 : i32
    %c0_i32_0 = arith.constant 0 : i32
    %c0_i32_1 = arith.constant 0 : i32
    return %c0_i32, %c0_i32_0 : i32, i32
  }
  func.func @transform_25(%arg0: i32) -> (i32, i32) {
    %c0_i32 = arith.constant 0 : i32
    %c0_i32_0 = arith.constant 0 : i32
    %c0_i32_1 = arith.constant 0 : i32
    return %c0_i32, %c0_i32_0 : i32, i32
  }
  func.func @transform_26(%arg0: i32) -> (i32, i32) {
    %c0_i32 = arith.constant 0 : i32
    %c0_i32_0 = arith.constant 0 : i32
    %c0_i32_1 = arith.constant 0 : i32
    return %c0_i32, %c0_i32_0 : i32, i32
  }
  func.func @transform_27(%arg0: i32) -> (i32, i32) {
    %c0_i32 = arith.constant 0 : i32
    %c0_i32_0 = arith.constant 0 : i32
    %c0_i32_1 = arith.constant 0 : i32
    return %c0_i32, %c0_i32_0 : i32, i32
  }
  func.func @transform_28(%arg0: i32) -> (i32, i32, i32) {
    %c0_i32 = arith.constant 0 : i32
    %c0_i32_0 = arith.constant 0 : i32
    %c0_i32_1 = arith.constant 0 : i32
    return %arg0, %c0_i32, %c0_i32_0 : i32, i32, i32
  }
  func.func @transform_29(%arg0: i32) -> (i32, i32, i32) {
    %c0_i32 = arith.constant 0 : i32
    %c0_i32_0 = arith.constant 0 : i32
    %c0_i32_1 = arith.constant 0 : i32
    return %arg0, %c0_i32, %c0_i32_0 : i32, i32, i32
  }
  func.func @transform_30(%arg0: i32) -> (i32, i32, i32) {
    %c0_i32 = arith.constant 0 : i32
    %c0_i32_0 = arith.constant 0 : i32
    %c0_i32_1 = arith.constant 0 : i32
    return %arg0, %c0_i32, %c0_i32_0 : i32, i32, i32
  }
}

</mosaic_0001>

<bundles_post_ra>
// kernel: squeeze.1
= control target key start
LH: loop header
LB: loop body
LE: loop exit
PB: predicated region body
PF: predicated region fallthrough
CT: control target
= control target key end

     0   :  { %s114_s0 = inlined_call_operand.vmem [shape: f32[2,64], index: 0, kind: input, shape index: {}]   ;;  %s115_s1 = inlined_call_operand.hbm [shape: f32[2,2,2,16], index: 1, kind: output, shape index: {}]  }
   0x1   :  { %v5_v0 = vld [vmem:[%s114_s0] sm:$0x3] }
   0x2   :  { %6 = vst [vmem:[#allocation3] sm:$0x3] %v5_v0 }
   0x3   :  { %2 = vsyncpa [#allocation1], 0  ;;  %s94_s0 = smov 112   ;;  %s95_s8 = smov 80   ;;  %vm8_vm0 = vcmask 130048  }
   0x4   :  { %s96_s9 = smov 96   ;;  %s97_s10 = smov [#allocation0]  }
   0x5   :  { %s55_s11 = sshll.u32 %s97_s10, 4  ;;  %s57_s1 = sshll.u32 %s115_s1, 4  ;;  %s56_s11 = int_to_ptr.vmem [resolvable:$true] %s55_s11  ;;  %s58_s1 = int_to_ptr.hbm [resolvable:$true] %s57_s1 }
   0x9   :  { %v10_v1 = vld [vmem:[#allocation3] sm:$0x3]  }
   0xa   :  { %v22_v2 = vld [vmem:[#allocation3] sm:$0x3]   ;;  %11 = vrot.lane.b32.xlu0 %v10_v1, %s94_s0 }
   0xb   :  { %23 = vrot.lane.b32.xlu1 %v22_v2, %s95_s8  ;;  %v16_v3 = vld [vmem:[#allocation3] sm:$0x3]  }
   0xc   :  { %v7_v4 = vld [vmem:[#allocation3] sm:$0x3]  }
   0xd   :  { %9 = vst.msk [vmem:[#allocation2] ss:$16 sm:$0x3] %vm8_vm0, %v7_v4  }
  0x12   :  { %17 = vrot.lane.b32.xlu0 %v16_v3, %s96_s9 }
  0x7c   :  { %v12_v5 = vpop.permute.xlu0 %11  }
  0x7d   :  { %v24_v6 = vpop.permute.xlu1 %23   ;;  %15 = vst.msk [vmem:[#allocation2 + $0x1] ss:$16 sm:$0x3] %vm8_vm0, %v12_v5  }
  0x7e   :  { %27 = vst.msk [vmem:[#allocation2 + $0x9] ss:$16 sm:$0x3] %vm8_vm0, %v24_v6  }
  0x84   :  { %v30_v7 = vld [vmem:[#allocation2] sm:$0x3]  ;;  %v41_v8 = vld [vmem:[#allocation2 + $0x10] sm:$0x3]  ;;  %v18_v9 = vpop.permute.xlu0 %17  }
  0x85   :  { %33 = vst [vmem:[#allocation0] sm:$0x3] %v30_v7 }
  0x86   :  { %45 = vst [vmem:[#allocation0 + $0x4] sm:$0x3] %v41_v8 }
  0x87   :  { %21 = vst.msk [vmem:[#allocation2 + $0x8] ss:$16 sm:$0x3] %vm8_vm0, %v18_v9  }
  0x8e   :  { %v35_v10 = vld [vmem:[#allocation2 + $0x8] sm:$0x3]  ;;  %v47_v11 = vld [vmem:[#allocation2 + $0x18] sm:$0x3] }
  0x8f   :  { %39 = vst [vmem:[#allocation0 + $0x2] sm:$0x3] %v35_v10 }
  0x90   :  { %51 = vst [vmem:[#allocation0 + $0x6] sm:$0x3] %v47_v11 }
  0x91   :  { %60 = dma.vmem_to_hbm [thread:$0]  %s56_s11, 128, %s58_s1, [#allocation1]  }
  0x92   :  { %92 = dma.done.wait [#allocation1], 128  }
  0x93   :  { %93 = vsyncadd [#allocation1], 4294967168 }
  0x94   :  { %63 = vsyncpa [#allocation1], 1 }

// kernel: _lambda_.1
= control target key start
LH: loop header
LB: loop body
LE: loop exit
PB: predicated region body
PF: predicated region fallthrough
CT: control target
= control target key end

     0   :  { %s4509_s6 = smov 1   ;;  %s4510_s10 = smov 2   ;;  %s5246_s0 = inlined_call_operand.smem [shape: u32[31], index: -1, kind: input, shape index: {}] }
   0x1   :  { %s4575_s5 = sld [smem:[%s5246_s0]]   ;;  %s4511_s14 = smov 3  }
   0x2   :  { %s4580_s9 = sld [smem:[%s5246_s0 + %s4509_s6]]   ;;  %s4512_s18 = smov 4  }
   0x3   :  { %s4585_s13 = sld [smem:[%s5246_s0 + %s4510_s10]]   ;;  %s4513_s22 = smov 5  }
   0x4   :  { %s4590_s17 = sld [smem:[%s5246_s0 + %s4511_s14]]   ;;  %s4514_s26 = smov 6  }
   0x5   :  { %s4595_s21 = sld [smem:[%s5246_s0 + %s4512_s18]]   ;;  %s4515_s30 = smov 7  }
   0x6   :  { %s4600_s25 = sld [smem:[%s5246_s0 + %s4513_s22]]   ;;  %s4516_s4 = smov 8  }
   0x7   :  { %5275 = sst [smem:[#allocation51_spill]] %s4575_s5  ;;  %s4517_s10 = smov 9  }
   0x8   :  { %5276 = sst [smem:[#allocation52_spill]] %s4580_s9  ;;  %s4518_s15 = smov 10  }
   0x9   :  { %5277 = sst [smem:[#allocation53_spill]] %s4585_s13  ;;  %s4519_s20 = smov 11  }
   0xa   :  { %5278 = sst [smem:[#allocation54_spill]] %s4590_s17  ;;  %s4521_s1 = smov 13  }
   0xb   :  { %5279 = sst [smem:[#allocation55_spill]] %s4595_s21  ;;  %s4522_s7 = smov 14  }
   0xc   :  { %s4605_s29 = sld [smem:[%s5246_s0 + %s4514_s26]]   ;;  %s4520_s26 = smov 12  }
   0xd   :  { %s4610_s3 = sld [smem:[%s5246_s0 + %s4515_s30]]   ;;  %s4524_s22 = smov 16  }
   0xe   :  { %s4615_s8 = sld [smem:[%s5246_s0 + %s4516_s4]]   ;;  %s4525_s28 = smov 17  }
   0xf   :  { %s4620_s14 = sld [smem:[%s5246_s0 + %s4517_s10]]  }
  0x10   :  { %s4625_s19 = sld [smem:[%s5246_s0 + %s4518_s15]]   ;;  %s4523_s15 = smov 15  }
  0x11   :  { %s4630_s24 = sld [smem:[%s5246_s0 + %s4519_s20]]  }
  0x12   :  { %5280 = sst [smem:[#allocation56_spill]] %s4605_s29 }
  0x13   :  { %5281 = sst [smem:[#allocation57_spill]] %s4610_s3 }
  0x14   :  { %5282 = sst [smem:[#allocation58_spill]] %s4615_s8 }
  0x15   :  { %s4635_s30 = sld [smem:[%s5246_s0 + %s4520_s26]]  }
  0x16   :  { %5283 = sst [smem:[#allocation59_spill]] %s4625_s19 }
  0x17   :  { %s4640_s6 = sld [smem:[%s5246_s0 + %s4521_s1]]  }
  0x18   :  { %s4645_s12 = sld [smem:[%s5246_s0 + %s4522_s7]]   ;;  %s4526_s7 = smov 18  }
  0x19   :  { %s4650_s20 = sld [smem:[%s5246_s0 + %s4523_s15]]   ;;  %s4527_s15 = smov 19  }
  0x1a   :  { %s4655_s27 = sld [smem:[%s5246_s0 + %s4524_s22]]   ;;  %s4528_s22 = smov 20  }
  0x1b   :  { %s4660_s4 = sld [smem:[%s5246_s0 + %s4525_s28]]   ;;  %s4529_s28 = smov 21  }
  0x1c   :  { %s4665_s19 = sld [smem:[%s5246_s0 + %s4526_s7]]   ;;  %s4530_s7 = smov 22  }
  0x1d   :  { %5284 = sst [smem:[#allocation60_spill]] %s4640_s6 }
  0x1e   :  { %5285 = sst [smem:[#allocation61_spill]] %s4645_s12 }
  0x1f   :  { %5286 = sst [smem:[#allocation62_spill]] %s4650_s20 }
  0x20   :  { %5287 = sst [smem:[#allocation63_spill]] %s4655_s27 }
  0x21   :  { %5288 = sst [smem:[#allocation64_spill]] %s4660_s4 }
  0x22   :  { %5289 = sst [smem:[#allocation65_spill]] %s4665_s19 }
  0x23   :  { %s4670_s29 = sld [smem:[%s5246_s0 + %s4527_s15]]   ;;  %s4531_s15 = smov 23  }
  0x24   :  { %s4675_s27 = sld [smem:[%s5246_s0 + %s4528_s22]]   ;;  %s4532_s22 = smov 24  }
  0x25   :  { %s4680_s21 = sld [smem:[%s5246_s0 + %s4529_s28]]   ;;  %s4533_s28 = smov 25  }
  0x26   :  { %s4685_s17 = sld [smem:[%s5246_s0 + %s4530_s7]]   ;;  %s4534_s7 = smov 26  }
  0x27   :  { %s4690_s5 = sld [smem:[%s5246_s0 + %s4531_s15]]   ;;  %s4535_s15 = smov 27  }
  0x28   :  { %s4700_s19 = sld [smem:[%s5246_s0 + %s4533_s28]]   ;;  %s4537_s28 = smov 29  }
  0x29   :  { %s4710_s20 = sld [smem:[%s5246_s0 + %s4535_s15]]  }
  0x2a   :  { %5290 = sst [smem:[#allocation66_spill]] %s4675_s27 }
  0x2b   :  { %s4695_s27 = sld [smem:[%s5246_s0 + %s4532_s22]]   ;;  %s4536_s22 = smov 28  }
  0x2c   :  { %5291 = sst [smem:[#allocation67_spill]] %s4685_s17 }
  0x2d   :  { %5292 = sst [smem:[#allocation68_spill]] %s4690_s5 }
  0x2e   :  { %5294 = sst [smem:[#allocation70_spill]] %s4700_s19 }
  0x2f   :  { %s4705_s17 = sld [smem:[%s5246_s0 + %s4534_s7]]   ;;  %s4538_s7 = smov 30  }
  0x30   :  { %s4720_s19 = sld [smem:[%s5246_s0 + %s4537_s28]]  }
  0x31   :  { %5293 = sst [smem:[#allocation69_spill]] %s4695_s27 }
  0x32   :  { %s4715_s27 = sld [smem:[%s5246_s0 + %s4536_s22]]  }
  0x33   :  { %s4725_s6 = sld [smem:[%s5246_s0 + %s4538_s7]]  }
  0x34   :  { %67 = vsyncpa [#allocation9], 0 }
  0x35   :  { %68 = vsyncpa [#allocation11], 0 }
  0x36   :  { %69 = vsyncpa [#allocation14], 0 }
  0x37   :  { %70 = vsyncpa [#allocation17], 0 }
  0x38   :  { %71 = vsyncpa [#allocation20], 0 }
  0x39   :  { %72 = vsyncpa [#allocation23], 0 }
  0x3a   :  { %73 = vsyncpa [#allocation26], 0 }
  0x3b   :  { %74 = vsyncpa [#allocation29], 0 }
  0x3c   :  { %75 = vsyncpa [#allocation32], 0 }
  0x3d   :  { %76 = vsyncpa [#allocation35], 0 }
  0x3e   :  { %77 = vsyncpa [#allocation38], 0  ;;  %s4727_s15 = smov 0  }
  0x3f LB: > { %s5295_s9 = sld [smem:[#allocation52_spill]]  ;;  %s4736_s16 = sadd.s32 4294967295, %s4507_s15   ;;  %s4507_s15 = sphi %s4727_s15, %s83_s15  }
  0x40   : > { %s5296_s8 = sld [smem:[#allocation58_spill]]  ;;  %p3438_p0 = scmp.ge.s32.totalorder %s4507_s15, 1 }
  0x41   : > { %s5297_s5 = sld [smem:[#allocation68_spill]]  ;;  %p759_p1 = scmp.lt.s32.totalorder %s4507_s15, 3 }
  0x42   : > { %s5298_s12 = sld [smem:[#allocation61_spill]]  ;;  %p3710_p2 = scmp.eq.s32.totalorder %s4736_s16, 0 }
  0x43   : > { %s5299_s4 = sld [smem:[#allocation64_spill]]  ;;  %p4741_p3 = pnand %p3438_p0, %p759_p1 }
  0x44   : > { %s5300_s13 = sld [smem:[#allocation53_spill]]  ;;  %s4539_s22 = smov [#allocation10]  }
  0x45   : > { %s5301_s3 = sld [smem:[#allocation57_spill]]  ;;  %s787_s23 = sshll.u32 %s4539_s22, 4  ;;  %s788_s23 = int_to_ptr.vmem [resolvable:$true] %s787_s23 }
  0x46   : > { %5302 = sst [smem:[#allocation71_spill]] %s4507_s15  ;;  %p3646_p4 = pneg %p4741_p3 }
  0x47   : > { %s4540_s1 = smov [#allocation13]  }
  0x48   : > { %p4750_p5 = pnand %p3710_p2, %p3646_p4  ;;  %s4756_s2 = sshll.u32 %s4540_s1, 4  ;;  %s820_s2 = int_to_ptr.vmem [resolvable:$true] %s4756_s2 }
  0x4a   : > { %s785_s0 = sshll.u32 %s5300_s13, 4  ;;  %p4763_p7 = pneg %p4750_p5  ;;  %s4733_s0 = int_to_ptr.hbm [resolvable:$true] %s785_s0 }
  0x4b   : > { %s817_s26 = sshll.u32 %s5301_s3, 4  ;;  %s3827_s10 = sshra.s32 %s4733_s0, 4  ;;  %s4754_s26 = int_to_ptr.hbm [resolvable:$true] %s817_s26  ;;  %s3828_s10 = int_to_ptr.hbm [resolvable:$true] %s3827_s10 }
  0x4c   : > { %s3829_s11 = scalar_lea.hbm %s3828_s10, 1  ;;  %s3834_s15 = scalar_lea.hbm %s5300_s13, 1 }
  0x4d   : > { %p3830_p6 = scmp.ne.s32.totalorder %s3828_s10, %s3829_s11  ;;  %p3835_p10 = scmp.lt.s32.totalorder %s3828_s10, %s5300_s13 }
  0x4e   : > { %p3836_p11 = scmp.lt.s32.totalorder %s3834_s15, %s3829_s11 }
  0x4f   : > { %p3832_p8 = pnand %p4763_p7, %p3830_p6 }
  0x50   : > { %p3837_p12 = por %p3836_p11, %p3835_p10 }
  0x51   : > { %p3833_p9 = pneg %p3832_p8 }
  0x53   : > { %p3838_p13 = pnand %p3837_p12, %p3833_p9 }
  0x55   : > { %3841 = shalt.err (!%p3838_p13)
}
  0x56   : > { %3652 = dma.hbm_to_vmem [thread:$0]  (!%p4750_p5), %s4733_s0, 16, %s788_s23, [#allocation11]  }
  0x57   : > { %s3857_s1 = sshra.s32 %s4754_s26, 4  ;;  %s3864_s10 = scalar_lea.hbm %s5301_s3, 384  ;;  %s3858_s1 = int_to_ptr.hbm [resolvable:$true] %s3857_s1 }
  0x58   : > { %s3859_s7 = scalar_lea.hbm %s3858_s1, 384  ;;  %p3865_p6 = scmp.lt.s32.totalorder %s3858_s1, %s5301_s3 }
  0x59   : > { %p3860_p0 = scmp.ne.s32.totalorder %s3858_s1, %s3859_s7  ;;  %p3866_p8 = scmp.lt.s32.totalorder %s3864_s10, %s3859_s7 }
  0x5b   : > { %p3862_p1 = pnand %p3860_p0, %p4763_p7  ;;  %p3867_p9 = por %p3866_p8, %p3865_p6 }
  0x5d   : > { %p3863_p4 = pneg %p3862_p1 }
  0x5f   : > { %p3868_p10 = pnand %p3867_p9, %p3863_p4 }
  0x61   : > { %3871 = shalt.err (!%p3868_p10)
}
  0x62   : > { %s5260_s15 = smov 128   ;;  %s5262_s0 = smov 8  }
  0x63   : > { %3658 = dma.hbm_to_vmem [thread:$0]  (!%p4750_p5), %s4754_s26, 6144, %s820_s2, [#allocation14], %s5260_s15, %s5260_s15, %s5262_s0  }
  0x64   : > { %s5306_s23 = sshll.u32 %s4620_s14, 4  ;;  %s4543_s7 = smov [#allocation16]   ;;  %s844_s23 = int_to_ptr.hbm [resolvable:$true] %s5306_s23 }
  0x65   : > { %s845_s11 = sshll.u32 %s4543_s7, 4  ;;  %s3887_s1 = sshra.s32 %s844_s23, 4  ;;  %s846_s11 = int_to_ptr.vmem [resolvable:$true] %s845_s11  ;;  %s3888_s1 = int_to_ptr.hbm [resolvable:$true] %s3887_s1 }
  0x66   : > { %s3889_s10 = scalar_lea.hbm %s3888_s1, 256  ;;  %s3894_s3 = scalar_lea.hbm %s4620_s14, 256 }
  0x67   : > { %p3890_p11 = scmp.ne.s32.totalorder %s3888_s1, %s3889_s10  ;;  %p3895_p0 = scmp.lt.s32.totalorder %s3888_s1, %s4620_s14 }
  0x68   : > { %p3896_p1 = scmp.lt.s32.totalorder %s3894_s3, %s3889_s10 }
  0x69   : > { %p3892_p12 = pnand %p3890_p11, %p4763_p7 }
  0x6a   : > { %p3897_p4 = por %p3896_p1, %p3895_p0 }
  0x6b   : > { %p3893_p13 = pneg %p3892_p12 }
  0x6d   : > { %p3898_p6 = pnand %p3897_p4, %p3893_p13 }
  0x6f   : > { %3901 = shalt.err (!%p3898_p6)
}
  0x70   : > { %s5264_s13 = smov 256   ;;  %s5266_s26 = smov 16  }
  0x71   : > { %3664 = dma.hbm_to_vmem [thread:$0]  (!%p4750_p5), %s844_s23, 4096, %s846_s11, [#allocation17], %s5264_s13, %s5264_s13, %s5266_s26  }
  0x72   : > { %s875_s2 = sshll.u32 %s4635_s30, 4  ;;  %s4546_s7 = smov [#allocation19]   ;;  %s876_s2 = int_to_ptr.hbm [resolvable:$true] %s875_s2 }
  0x73   : > { %s877_s3 = sshll.u32 %s4546_s7, 4  ;;  %s901_s1 = sshll.u32 %s5298_s12, 4  ;;  %s878_s3 = int_to_ptr.vmem [resolvable:$true] %s877_s3  ;;  %s902_s1 = int_to_ptr.hbm [resolvable:$true] %s901_s1 }
  0x74   : > { %s3917_s10 = sshra.s32 %s876_s2, 4  ;;  %s3924_s0 = scalar_lea.hbm %s4635_s30, 1  ;;  %s3918_s10 = int_to_ptr.hbm [resolvable:$true] %s3917_s10 }
  0x75   : > { %s3919_s15 = scalar_lea.hbm %s3918_s10, 1  ;;  %p3925_p11 = scmp.lt.s32.totalorder %s3918_s10, %s4635_s30 }
  0x76   : > { %p3920_p8 = scmp.ne.s32.totalorder %s3918_s10, %s3919_s15  ;;  %p3926_p12 = scmp.lt.s32.totalorder %s3924_s0, %s3919_s15 }
  0x78   : > { %p3922_p9 = pnand %p3920_p8, %p4763_p7  ;;  %p3927_p13 = por %p3926_p12, %p3925_p11 }
  0x7a   : > { %p3923_p10 = pneg %p3922_p9 }
  0x7c   : > { %p3928_p0 = pnand %p3927_p13, %p3923_p10 }
  0x7e   : > { %3931 = shalt.err (!%p3928_p0)
}
  0x7f   : > { %3670 = dma.hbm_to_vmem [thread:$0]  (!%p4750_p5), %s876_s2, 16, %s878_s3, [#allocation20]  }
  0x80   : > { %s4547_s23 = smov [#allocation22]   ;;  %s929_s7 = sshll.u32 %s5299_s4, 4  ;;  %s4807_s7 = int_to_ptr.hbm [resolvable:$true] %s929_s7 }
  0x81   : > { %s903_s11 = sshll.u32 %s4547_s23, 4  ;;  %s3947_s13 = sshra.s32 %s902_s1, 4  ;;  %s904_s11 = int_to_ptr.vmem [resolvable:$true] %s903_s11  ;;  %s3948_s13 = int_to_ptr.hbm [resolvable:$true] %s3947_s13 }
  0x82   : > { %s3949_s15 = scalar_lea.hbm %s3948_s13, 1  ;;  %s3954_s0 = scalar_lea.hbm %s5298_s12, 1 }
  0x83   : > { %p3950_p1 = scmp.ne.s32.totalorder %s3948_s13, %s3949_s15  ;;  %p3955_p8 = scmp.lt.s32.totalorder %s3948_s13, %s5298_s12 }
  0x84   : > { %p3956_p9 = scmp.lt.s32.totalorder %s3954_s0, %s3949_s15 }
  0x85   : > { %p3952_p4 = pnand %p3950_p1, %p4763_p7 }
  0x86   : > { %p3957_p10 = por %p3956_p9, %p3955_p8 }
  0x87   : > { %p3953_p6 = pneg %p3952_p4 }
  0x89   : > { %p3958_p11 = pnand %p3957_p10, %p3953_p6 }
  0x8b   : > { %3961 = shalt.err (!%p3958_p11)
}
  0x8c   : > { %3676 = dma.hbm_to_vmem [thread:$0]  (!%p4750_p5), %s902_s1, 16, %s904_s11, [#allocation23]  }
  0x8d   : > { %s955_s2 = sshll.u32 %s4670_s29, 4  ;;  %s4548_s3 = smov [#allocation25]   ;;  %s4816_s2 = int_to_ptr.hbm [resolvable:$true] %s955_s2 }
  0x8e   : > { %s931_s10 = sshll.u32 %s4548_s3, 4  ;;  %s3977_s23 = sshra.s32 %s4807_s7, 4  ;;  %s932_s10 = int_to_ptr.vmem [resolvable:$true] %s931_s10  ;;  %s3978_s23 = int_to_ptr.hbm [resolvable:$true] %s3977_s23 }
  0x8f   : > { %s3979_s13 = scalar_lea.hbm %s3978_s23, 384  ;;  %s3984_s15 = scalar_lea.hbm %s5299_s4, 384 }
  0x90   : > { %p3980_p12 = scmp.ne.s32.totalorder %s3978_s23, %s3979_s13  ;;  %p3985_p1 = scmp.lt.s32.totalorder %s3978_s23, %s5299_s4 }
  0x91   : > { %p3986_p4 = scmp.lt.s32.totalorder %s3984_s15, %s3979_s13 }
  0x92   : > { %p3982_p13 = pnand %p3980_p12, %p4763_p7 }
  0x93   : > { %p3987_p6 = por %p3986_p4, %p3985_p1 }
  0x94   : > { %p3983_p0 = pneg %p3982_p13 }
  0x96   : > { %p3988_p8 = pnand %p3987_p6, %p3983_p0 }
  0x98   : > { %3991 = shalt.err (!%p3988_p8)
}
  0x99   : > { %s5307_s1 = smov 8   ;;  %s5308_s11 = smov 128  }
  0x9a   : > { %3682 = dma.hbm_to_vmem [thread:$0]  (!%p4750_p5), %s4807_s7, 6144, %s932_s10, [#allocation26], %s5308_s11, %s5308_s11, %s5307_s1  }
  0x9b   : > { %s4549_s0 = smov [#allocation28]   ;;  %s981_s26 = sshll.u32 %s4680_s21, 4  ;;  %s4830_s26 = int_to_ptr.hbm [resolvable:$true] %s981_s26 }
  0x9c   : > { %s957_s3 = sshll.u32 %s4549_s0, 4  ;;  %s4007_s23 = sshra.s32 %s4816_s2, 4  ;;  %s958_s3 = int_to_ptr.vmem [resolvable:$true] %s957_s3  ;;  %s4008_s23 = int_to_ptr.hbm [resolvable:$true] %s4007_s23 }
  0x9d   : > { %s4009_s13 = scalar_lea.hbm %s4008_s23, 192  ;;  %s4014_s15 = scalar_lea.hbm %s4670_s29, 192 }
  0x9e   : > { %p4010_p9 = scmp.ne.s32.totalorder %s4008_s23, %s4009_s13  ;;  %p4015_p12 = scmp.lt.s32.totalorder %s4008_s23, %s4670_s29 }
  0x9f   : > { %p4016_p13 = scmp.lt.s32.totalorder %s4014_s15, %s4009_s13 }
  0xa0   : > { %p4012_p10 = pnand %p4010_p9, %p4763_p7 }
  0xa1   : > { %p4017_p0 = por %p4016_p13, %p4015_p12 }
  0xa2   : > { %p4013_p11 = pneg %p4012_p10 }
  0xa4   : > { %p4018_p1 = pnand %p4017_p0, %p4013_p11 }
  0xa6   : > { %4021 = shalt.err (!%p4018_p1)
}
  0xa7   : > { %3688 = dma.hbm_to_vmem [thread:$0]  (!%p4750_p5), %s4816_s2, 3072, %s958_s3, [#allocation29], %s5308_s11, %s5308_s11, %s5307_s1  }
  0xa8   : > { %s1007_s7 = sshll.u32 %s5297_s5, 4  ;;  %s4550_s10 = smov [#allocation31]   ;;  %s4844_s7 = int_to_ptr.hbm [resolvable:$true] %s1007_s7 }
  0xa9   : > { %s983_s0 = sshll.u32 %s4550_s10, 4  ;;  %s4037_s23 = sshra.s32 %s4830_s26, 4  ;;  %s984_s0 = int_to_ptr.vmem [resolvable:$true] %s983_s0  ;;  %s4038_s23 = int_to_ptr.hbm [resolvable:$true] %s4037_s23 }
  0xaa   : > { %s4039_s13 = scalar_lea.hbm %s4038_s23, 64  ;;  %s4044_s15 = scalar_lea.hbm %s4680_s21, 64 }
  0xab   : > { %p4040_p4 = scmp.ne.s32.totalorder %s4038_s23, %s4039_s13  ;;  %p4045_p9 = scmp.lt.s32.totalorder %s4038_s23, %s4680_s21 }
  0xac   : > { %p4046_p10 = scmp.lt.s32.totalorder %s4044_s15, %s4039_s13 }
  0xad   : > { %p4042_p6 = pnand %p4040_p4, %p4763_p7 }
  0xae   : > { %p4047_p11 = por %p4046_p10, %p4045_p9 }
  0xaf   : > { %p4043_p8 = pneg %p4042_p6 }
  0xb1   : > { %p4048_p12 = pnand %p4047_p11, %p4043_p8 }
  0xb3   : > { %4051 = shalt.err (!%p4048_p12)
}
  0xb4   : > { %3694 = dma.hbm_to_vmem [thread:$0]  (!%p4750_p5), %s4830_s26, 1024, %s984_s0, [#allocation32], %s5308_s11, %s5308_s11, %s5307_s1  }
  0xb5   : > { %s4551_s2 = smov [#allocation34]   ;;  %s1037_s10 = sshll.u32 %s4705_s17, 4  ;;  %s4858_s10 = int_to_ptr.hbm [resolvable:$true] %s1037_s10 }
  0xb6   : > { %s1009_s3 = sshll.u32 %s4551_s2, 4  ;;  %s4067_s23 = sshra.s32 %s4844_s7, 4  ;;  %s1010_s3 = int_to_ptr.vmem [resolvable:$true] %s1009_s3  ;;  %s4068_s23 = int_to_ptr.hbm [resolvable:$true] %s4067_s23 }
  0xb7   : > { %s4069_s13 = scalar_lea.hbm %s4068_s23, 256  ;;  %s4074_s15 = scalar_lea.hbm %s5297_s5, 256 }
  0xb8   : > { %p4070_p13 = scmp.ne.s32.totalorder %s4068_s23, %s4069_s13  ;;  %p4075_p4 = scmp.lt.s32.totalorder %s4068_s23, %s5297_s5 }
  0xb9   : > { %p4076_p6 = scmp.lt.s32.totalorder %s4074_s15, %s4069_s13 }
  0xba   : > { %p4072_p0 = pnand %p4070_p13, %p4763_p7 }
  0xbb   : > { %p4077_p8 = por %p4076_p6, %p4075_p4 }
  0xbc   : > { %p4073_p1 = pneg %p4072_p0 }
  0xbe   : > { %p4078_p9 = pnand %p4077_p8, %p4073_p1 }
  0xc0   : > { %4081 = shalt.err (!%p4078_p9)
}
  0xc1   : > { %s5309_s26 = smov 16   ;;  %s5310_s0 = smov 256  }
  0xc2   : > { %3700 = dma.hbm_to_vmem [thread:$0]  (!%p4750_p5), %s4844_s7, 4096, %s1010_s3, [#allocation35], %s5310_s0, %s5310_s0, %s5309_s26  }
  0xc3   : > { %s770_s2 = sshll.u32 %s5295_s9, 4  ;;  %s4552_s4 = smov [#allocation37]   ;;  %s4872_s2 = int_to_ptr.hbm [resolvable:$true] %s770_s2 }
  0xc4   : > { %s1039_s12 = sshll.u32 %s4552_s4, 4  ;;  %s4097_s23 = sshra.s32 %s4858_s10, 4  ;;  %s1040_s12 = int_to_ptr.vmem [resolvable:$true] %s1039_s12  ;;  %s4098_s23 = int_to_ptr.hbm [resolvable:$true] %s4097_s23 }
  0xc5   : > { %s4099_s13 = scalar_lea.hbm %s4098_s23, 2  ;;  %s4104_s15 = scalar_lea.hbm %s4705_s17, 2 }
  0xc6   : > { %p4100_p10 = scmp.ne.s32.totalorder %s4098_s23, %s4099_s13  ;;  %p4105_p13 = scmp.lt.s32.totalorder %s4098_s23, %s4705_s17 }
  0xc7   : > { %p4106_p0 = scmp.lt.s32.totalorder %s4104_s15, %s4099_s13 }
  0xc8   : > { %p4102_p11 = pnand %p4100_p10, %p4763_p7 }
  0xc9   : > { %p4107_p1 = por %p4106_p0, %p4105_p13 }
  0xca   : > { %p4103_p12 = pneg %p4102_p11 }
  0xcc   : > { %p4108_p4 = pnand %p4107_p1, %p4103_p12 }
  0xce   : > { %4111 = shalt.err (!%p4108_p4)
}
  0xcf   : > { %3706 = dma.hbm_to_vmem [thread:$0]  (!%p4750_p5), %s4858_s10, 32, %s1040_s12, [#allocation38]  }
  0xd0   : > { %s4553_s4 = smov [#allocation8]   ;;  %s803_s3 = sshll.u32 %s4600_s25, 4  ;;  %s4883_s3 = int_to_ptr.hbm [resolvable:$true] %s803_s3 }
  0xd1   : > { %s772_s7 = sshll.u32 %s4553_s4, 4  ;;  %s4127_s23 = sshra.s32 %s4872_s2, 4  ;;  %s773_s7 = int_to_ptr.vmem [resolvable:$true] %s772_s7  ;;  %s4128_s23 = int_to_ptr.hbm [resolvable:$true] %s4127_s23 }
  0xd2   : > { %s4129_s13 = scalar_lea.hbm %s4128_s23, 192  ;;  %s4134_s15 = scalar_lea.hbm %s5295_s9, 192 }
  0xd3   : > { %p4130_p6 = scmp.ne.s32.totalorder %s4128_s23, %s4129_s13  ;;  %p4135_p10 = scmp.lt.s32.totalorder %s4128_s23, %s5295_s9 }
  0xd4   : > { %p4136_p11 = scmp.lt.s32.totalorder %s4134_s15, %s4129_s13 }
  0xd5   : > { %p4132_p8 = pnand %p4130_p6, %p4763_p7 }
  0xd6   : > { %p4137_p12 = por %p4136_p11, %p4135_p10 }
  0xd7   : > { %p4133_p9 = pneg %p4132_p8 }
  0xd9   : > { %p4138_p13 = pnand %p4137_p12, %p4133_p9 }
  0xdb   : > { %4141 = shalt.err (!%p4138_p13)
}
  0xdc   : > { %3649 = dma.hbm_to_vmem [thread:$0]  (!%p4750_p5), %s4872_s2, 3072, %s773_s7, [#allocation9], %s5308_s11, %s5308_s11, %s5307_s1  }
  0xdd   : > { %s832_s12 = sshll.u32 %s5296_s8, 4  ;;  %s4554_s10 = smov [#allocation12]   ;;  %s4897_s12 = int_to_ptr.hbm [resolvable:$true] %s832_s12 }
  0xde   : > { %s805_s4 = sshll.u32 %s4554_s10, 4  ;;  %s4157_s23 = sshra.s32 %s4883_s3, 4  ;;  %s806_s4 = int_to_ptr.vmem [resolvable:$true] %s805_s4  ;;  %s4158_s23 = int_to_ptr.hbm [resolvable:$true] %s4157_s23 }
  0xdf   : > { %s4159_s13 = scalar_lea.hbm %s4158_s23, 1  ;;  %s4164_s15 = scalar_lea.hbm %s4600_s25, 1 }
  0xe0   : > { %p4160_p0 = scmp.ne.s32.totalorder %s4158_s23, %s4159_s13  ;;  %p4165_p6 = scmp.lt.s32.totalorder %s4158_s23, %s4600_s25 }
  0xe1   : > { %p4166_p8 = scmp.lt.s32.totalorder %s4164_s15, %s4159_s13 }
  0xe2   : > { %p4162_p1 = pnand %p4160_p0, %p4763_p7 }
  0xe3   : > { %p4167_p9 = por %p4166_p8, %p4165_p6 }
  0xe4   : > { %p4163_p4 = pneg %p4162_p1 }
  0xe6   : > { %p4168_p10 = pnand %p4167_p9, %p4163_p4 }
  0xe8   : > { %4171 = shalt.err (!%p4168_p10)
}
  0xe9   : > { %3655 = dma.hbm_to_vmem [thread:$0]  (!%p4750_p5), %s4883_s3, 16, %s806_s4, [#allocation11]  }
  0xea   : > { %s4555_s2 = smov [#allocation15]   ;;  %s860_s10 = sshll.u32 %s4630_s24, 4  ;;  %s4908_s10 = int_to_ptr.hbm [resolvable:$true] %s860_s10 }
  0xeb   : > { %s834_s7 = sshll.u32 %s4555_s2, 4  ;;  %s4187_s23 = sshra.s32 %s4897_s12, 4  ;;  %s835_s7 = int_to_ptr.vmem [resolvable:$true] %s834_s7  ;;  %s4188_s23 = int_to_ptr.hbm [resolvable:$true] %s4187_s23 }
  0xec   : > { %s4189_s13 = scalar_lea.hbm %s4188_s23, 1  ;;  %s4194_s15 = scalar_lea.hbm %s5296_s8, 1 }
  0xed   : > { %p4190_p11 = scmp.ne.s32.totalorder %s4188_s23, %s4189_s13  ;;  %p4195_p0 = scmp.lt.s32.totalorder %s4188_s23, %s5296_s8 }
  0xee   : > { %p4196_p1 = scmp.lt.s32.totalorder %s4194_s15, %s4189_s13 }
  0xef   : > { %p4192_p12 = pnand %p4190_p11, %p4763_p7 }
  0xf0   : > { %p4197_p4 = por %p4196_p1, %p4195_p0 }
  0xf1   : > { %p4193_p13 = pneg %p4192_p12 }
  0xf3   : > { %p4198_p6 = pnand %p4197_p4, %p4193_p13 }
  0xf5   : > { %4201 = shalt.err (!%p4198_p6)
}
  0xf6   : > { %s5311_s3 = sld [smem:[#allocation60_spill]]  ;;  %s4556_s2 = smov [#allocation18]  }
  0xf7   : > { %3661 = dma.hbm_to_vmem [thread:$0]  (!%p4750_p5), %s4897_s12, 16, %s835_s7, [#allocation14]  }
  0xf8   : > { %s862_s5 = sshll.u32 %s4556_s2, 4  ;;  %s4217_s23 = sshra.s32 %s4908_s10, 4  ;;  %s863_s5 = int_to_ptr.vmem [resolvable:$true] %s862_s5  ;;  %s4218_s23 = int_to_ptr.hbm [resolvable:$true] %s4217_s23 }
  0xf9   : > { %s4219_s13 = scalar_lea.hbm %s4218_s23, 128  ;;  %s4224_s15 = scalar_lea.hbm %s4630_s24, 128 }
  0xfa   : > { %p4220_p8 = scmp.ne.s32.totalorder %s4218_s23, %s4219_s13  ;;  %p4225_p11 = scmp.lt.s32.totalorder %s4218_s23, %s4630_s24 }
  0xfb   : > { %p4226_p12 = scmp.lt.s32.totalorder %s4224_s15, %s4219_s13 }
  0xfc   : > { %s886_s4 = sshll.u32 %s5311_s3, 4  ;;  %p4222_p9 = pnand %p4220_p8, %p4763_p7  ;;  %s4919_s4 = int_to_ptr.hbm [resolvable:$true] %s886_s4 }
  0xfd   : > { %p4227_p13 = por %p4226_p12, %p4225_p11 }
  0xfe   : > { %p4223_p10 = pneg %p4222_p9 }
 0x100   : > { %p4228_p0 = pnand %p4227_p13, %p4223_p10 }
 0x102   : > { %4231 = shalt.err (!%p4228_p0)
}
 0x103   : > { %s5312_s12 = sld [smem:[#allocation62_spill]]  ;;  %s4557_s7 = smov [#allocation21]  }
 0x104   : > { %3667 = dma.hbm_to_vmem [thread:$0]  (!%p4750_p5), %s4908_s10, 2048, %s863_s5, [#allocation17], %s5308_s11, %s5308_s11, %s5307_s1  }
 0x105   : > { %s888_s2 = sshll.u32 %s4557_s7, 4  ;;  %s4247_s23 = sshra.s32 %s4919_s4, 4  ;;  %s889_s2 = int_to_ptr.vmem [resolvable:$true] %s888_s2  ;;  %s4248_s23 = int_to_ptr.hbm [resolvable:$true] %s4247_s23 }
 0x106   : > { %s4249_s13 = scalar_lea.hbm %s4248_s23, 128  ;;  %s4254_s15 = scalar_lea.hbm %s5311_s3, 128 }
 0x107   : > { %p4250_p1 = scmp.ne.s32.totalorder %s4248_s23, %s4249_s13  ;;  %p4255_p8 = scmp.lt.s32.totalorder %s4248_s23, %s5311_s3 }
 0x108   : > { %p4256_p9 = scmp.lt.s32.totalorder %s4254_s15, %s4249_s13 }
 0x109   : > { %s912_s8 = sshll.u32 %s5312_s12, 4  ;;  %p4252_p4 = pnand %p4250_p1, %p4763_p7  ;;  %s4933_s8 = int_to_ptr.hbm [resolvable:$true] %s912_s8 }
 0x10a   : > { %p4257_p10 = por %p4256_p9, %p4255_p8 }
 0x10b   : > { %p4253_p6 = pneg %p4252_p4 }
 0x10d   : > { %p4258_p11 = pnand %p4257_p10, %p4253_p6 }
 0x10f   : > { %4261 = shalt.err (!%p4258_p11)
}
 0x110   : > { %s5313_s5 = sld [smem:[#allocation65_spill]]  ;;  %s4558_s7 = smov [#allocation24]  }
 0x111   : > { %3673 = dma.hbm_to_vmem [thread:$0]  (!%p4750_p5), %s4919_s4, 2048, %s889_s2, [#allocation20], %s5308_s11, %s5308_s11, %s5307_s1  }
 0x112   : > { %s914_s9 = sshll.u32 %s4558_s7, 4  ;;  %s4277_s23 = sshra.s32 %s4933_s8, 4  ;;  %s915_s9 = int_to_ptr.vmem [resolvable:$true] %s914_s9  ;;  %s4278_s23 = int_to_ptr.hbm [resolvable:$true] %s4277_s23 }
 0x113   : > { %s4279_s13 = scalar_lea.hbm %s4278_s23, 1536  ;;  %s4284_s15 = scalar_lea.hbm %s5312_s12, 1536 }
 0x114   : > { %p4280_p12 = scmp.ne.s32.totalorder %s4278_s23, %s4279_s13  ;;  %p4285_p1 = scmp.lt.s32.totalorder %s4278_s23, %s5312_s12 }
 0x115   : > { %p4286_p4 = scmp.lt.s32.totalorder %s4284_s15, %s4279_s13 }
 0x116   : > { %s944_s10 = sshll.u32 %s5313_s5, 4  ;;  %p4282_p13 = pnand %p4280_p12, %p4763_p7  ;;  %s4947_s10 = int_to_ptr.hbm [resolvable:$true] %s944_s10 }
 0x117   : > { %p4287_p6 = por %p4286_p4, %p4285_p1 }
 0x118   : > { %p4283_p0 = pneg %p4282_p13 }
 0x11a   : > { %p4288_p8 = pnand %p4287_p6, %p4283_p0 }
 0x11c   : > { %4291 = shalt.err (!%p4288_p8)
}
 0x11d   : > { %s5314_s4 = sld [smem:[#allocation66_spill]]  ;;  %s4559_s2 = smov [#allocation27]  }
 0x11e   : > { %3679 = dma.hbm_to_vmem [thread:$0]  (!%p4750_p5), %s4933_s8, 24576, %s915_s9, [#allocation23], %s5310_s0, %s5310_s0, %s5309_s26  }
 0x11f   : > { %s946_s7 = sshll.u32 %s4559_s2, 4  ;;  %s4307_s23 = sshra.s32 %s4947_s10, 4  ;;  %s947_s7 = int_to_ptr.vmem [resolvable:$true] %s946_s7  ;;  %s4308_s23 = int_to_ptr.hbm [resolvable:$true] %s4307_s23 }
 0x120   : > { %s4309_s13 = scalar_lea.hbm %s4308_s23, 1  ;;  %s4314_s15 = scalar_lea.hbm %s5313_s5, 1 }
 0x121   : > { %p4310_p9 = scmp.ne.s32.totalorder %s4308_s23, %s4309_s13  ;;  %p4315_p12 = scmp.lt.s32.totalorder %s4308_s23, %s5313_s5 }
 0x122   : > { %p4316_p13 = scmp.lt.s32.totalorder %s4314_s15, %s4309_s13 }
 0x123   : > { %s970_s3 = sshll.u32 %s5314_s4, 4  ;;  %p4312_p10 = pnand %p4310_p9, %p4763_p7  ;;  %s4961_s3 = int_to_ptr.hbm [resolvable:$true] %s970_s3 }
 0x124   : > { %p4317_p0 = por %p4316_p13, %p4315_p12 }
 0x125   : > { %p4313_p11 = pneg %p4312_p10 }
 0x127   : > { %p4318_p1 = pnand %p4317_p0, %p4313_p11 }
 0x129   : > { %4321 = shalt.err (!%p4318_p1)
}
 0x12a   : > { %s5315_s9 = sld [smem:[#allocation67_spill]]  ;;  %s4560_s26 = smov [#allocation30]  }
 0x12b   : > { %3685 = dma.hbm_to_vmem [thread:$0]  (!%p4750_p5), %s4947_s10, 16, %s947_s7, [#allocation26]  }
 0x12c   : > { %s972_s0 = sshll.u32 %s4560_s26, 4  ;;  %s4337_s2 = sshra.s32 %s4961_s3, 4  ;;  %s973_s0 = int_to_ptr.vmem [resolvable:$true] %s972_s0  ;;  %s4338_s2 = int_to_ptr.hbm [resolvable:$true] %s4337_s2 }
 0x12d   : > { %s4339_s23 = scalar_lea.hbm %s4338_s2, 1  ;;  %s4344_s13 = scalar_lea.hbm %s5314_s4, 1 }
 0x12e   : > { %p4340_p4 = scmp.ne.s32.totalorder %s4338_s2, %s4339_s23  ;;  %p4345_p9 = scmp.lt.s32.totalorder %s4338_s2, %s5314_s4 }
 0x12f   : > { %p4346_p10 = scmp.lt.s32.totalorder %s4344_s13, %s4339_s23 }
 0x130   : > { %s996_s8 = sshll.u32 %s5315_s9, 4  ;;  %p4342_p6 = pnand %p4340_p4, %p4763_p7  ;;  %s4972_s8 = int_to_ptr.hbm [resolvable:$true] %s996_s8 }
 0x131   : > { %p4347_p11 = por %p4346_p10, %p4345_p9 }
 0x132   : > { %p4343_p8 = pneg %p4342_p6 }
 0x134   : > { %p4348_p12 = pnand %p4347_p11, %p4343_p8 }
 0x136   : > { %4351 = shalt.err (!%p4348_p12)
}
 0x137   : > { %s5316_s10 = sld [smem:[#allocation70_spill]]  ;;  %s4561_s7 = smov [#allocation33]  }
 0x138   : > { %3691 = dma.hbm_to_vmem [thread:$0]  (!%p4750_p5), %s4961_s3, 16, %s973_s0, [#allocation29]  }
 0x139   : > { %s998_s15 = sshll.u32 %s4561_s7, 4  ;;  %s4367_s2 = sshra.s32 %s4972_s8, 4  ;;  %s999_s15 = int_to_ptr.vmem [resolvable:$true] %s998_s15  ;;  %s4368_s2 = int_to_ptr.hbm [resolvable:$true] %s4367_s2 }
 0x13a   : > { %s4369_s23 = scalar_lea.hbm %s4368_s2, 8  ;;  %s4374_s13 = scalar_lea.hbm %s5315_s9, 8 }
 0x13b   : > { %p4370_p13 = scmp.ne.s32.totalorder %s4368_s2, %s4369_s23  ;;  %p4375_p4 = scmp.lt.s32.totalorder %s4368_s2, %s5315_s9 }
 0x13c   : > { %p4376_p6 = scmp.lt.s32.totalorder %s4374_s13, %s4369_s23 }
 0x13d   : > { %s1025_s26 = sshll.u32 %s5316_s10, 4  ;;  %p4372_p0 = pnand %p4370_p13, %p4763_p7  ;;  %s4983_s26 = int_to_ptr.hbm [resolvable:$true] %s1025_s26 }
 0x13e   : > { %p4377_p8 = por %p4376_p6, %p4375_p4 }
 0x13f   : > { %p4373_p1 = pneg %p4372_p0 }
 0x141   : > { %p4378_p9 = pnand %p4377_p8, %p4373_p1 }
 0x143   : > { %4381 = shalt.err (!%p4378_p9)
}
 0x144   : > { %3697 = dma.hbm_to_vmem [thread:$0]  (!%p4750_p5), %s4972_s8, 128, %s999_s15, [#allocation32]  }
 0x145   : > { %s1048_s3 = sshll.u32 %s4710_s20, 4  ;;  %s4562_s0 = smov [#allocation36]   ;;  %s4994_s3 = int_to_ptr.hbm [resolvable:$true] %s1048_s3 }
 0x146   : > { %s1027_s7 = sshll.u32 %s4562_s0, 4  ;;  %s4397_s2 = sshra.s32 %s4983_s26, 4  ;;  %s1028_s7 = int_to_ptr.vmem [resolvable:$true] %s1027_s7  ;;  %s4398_s2 = int_to_ptr.hbm [resolvable:$true] %s4397_s2 }
 0x147   : > { %s4399_s23 = scalar_lea.hbm %s4398_s2, 2  ;;  %s4404_s13 = scalar_lea.hbm %s5316_s10, 2 }
 0x148   : > { %p4400_p10 = scmp.ne.s32.totalorder %s4398_s2, %s4399_s23  ;;  %p4405_p13 = scmp.lt.s32.totalorder %s4398_s2, %s5316_s10 }
 0x149   : > { %p4406_p0 = scmp.lt.s32.totalorder %s4404_s13, %s4399_s23 }
 0x14a   : > { %p4402_p11 = pnand %p4400_p10, %p4763_p7 }
 0x14b   : > { %p4407_p1 = por %p4406_p0, %p4405_p13 }
 0x14c   : > { %p4403_p12 = pneg %p4402_p11 }
 0x14e   : > { %p4408_p4 = pnand %p4407_p1, %p4403_p12 }
 0x150   : > { %4411 = shalt.err (!%p4408_p4)
}
 0x151   : > { %3703 = dma.hbm_to_vmem [thread:$0]  (!%p4750_p5), %s4983_s26, 32, %s1028_s7, [#allocation35]  }
 0x152   : > { %s4563_s8 = smov [#allocation39]   ;;  %s4427_s0 = sshra.s32 %s4994_s3, 4  ;;  %s4428_s0 = int_to_ptr.hbm [resolvable:$true] %s4427_s0 }
 0x153   : > { %s1050_s15 = sshll.u32 %s4563_s8, 4  ;;  %s4429_s4 = scalar_lea.hbm %s4428_s0, 64  ;;  %s1051_s15 = int_to_ptr.vmem [resolvable:$true] %s1050_s15 }
 0x154   : > { %p4430_p6 = scmp.ne.s32.totalorder %s4428_s0, %s4429_s4  ;;  %s4434_s2 = scalar_lea.hbm %s4710_s20, 64 }
 0x155   : > { %p4435_p10 = scmp.lt.s32.totalorder %s4428_s0, %s4710_s20  ;;  %p4436_p11 = scmp.lt.s32.totalorder %s4434_s2, %s4429_s4 }
 0x156   : > { %p4432_p8 = pnand %p4430_p6, %p4763_p7 }
 0x157   : > { %p4437_p12 = por %p4436_p11, %p4435_p10 }
 0x158   : > { %p4433_p9 = pneg %p4432_p8 }
 0x15a   : > { %p4438_p13 = pnand %p4437_p12, %p4433_p9 }
 0x15c   : > { %4441 = shalt.err (!%p4438_p13)
}
 0x15d   : > { %3709 = dma.hbm_to_vmem [thread:$0]  (!%p4750_p5), %s4994_s3, 1024, %s1051_s15, [#allocation38], %s5308_s11, %s5308_s11, %s5307_s1  }
 0x15e   : > { %1074 = sbr.rel (%p4741_p3) target bundleno = 2318 (0x90e), region = 132 }
 0x163   : > { %4462 = dma.done.wait (%p3710_p2), [#allocation9], 3072  }
 0x164   : > { %4464 = vsyncadd (%p3710_p2), [#allocation9], 4294964224 }
 0x165   : > { %4466 = dma.done.wait (%p3710_p2), [#allocation11], 32  }
 0x166   : > { %4468 = vsyncadd (%p3710_p2), [#allocation11], 4294967264 }
 0x167   : > { %4470 = dma.done.wait (%p3710_p2), [#allocation14], 6160  }
 0x168   : > { %4472 = vsyncadd (%p3710_p2), [#allocation14], 4294961136 }
 0x169   : > { %4474 = dma.done.wait (%p3710_p2), [#allocation17], 6144  }
 0x16a   : > { %4476 = vsyncadd (%p3710_p2), [#allocation17], 4294961152 }
 0x16b   : > { %4478 = dma.done.wait (%p3710_p2), [#allocation20], 2064  }
 0x16c   : > { %4480 = vsyncadd (%p3710_p2), [#allocation20], 4294965232 }
 0x16d   : > { %4482 = dma.done.wait (%p3710_p2), [#allocation23], 24592  }
 0x16e   : > { %4484 = vsyncadd (%p3710_p2), [#allocation23], 4294942704 }
 0x16f   : > { %4486 = dma.done.wait (%p3710_p2), [#allocation26], 6160  }
 0x170   : > { %4488 = vsyncadd (%p3710_p2), [#allocation26], 4294961136 }
 0x171   : > { %4490 = dma.done.wait (%p3710_p2), [#allocation29], 3088  }
 0x172   : > { %4492 = vsyncadd (%p3710_p2), [#allocation29], 4294964208 }
 0x173   : > { %4494 = dma.done.wait (%p3710_p2), [#allocation32], 1152  }
 0x174   : > { %4496 = vsyncadd (%p3710_p2), [#allocation32], 4294966144 }
 0x175   : > { %4498 = dma.done.wait (%p3710_p2), [#allocation35], 4128  }
 0x176   : > { %4500 = vsyncadd (%p3710_p2), [#allocation35], 4294963168 }
 0x177   : > { %4502 = dma.done.wait (%p3710_p2), [#allocation38], 1056  }
 0x178   : > { %4504 = vsyncadd (%p3710_p2), [#allocation38], 4294966240  ;;  %p1261_p3 = scmp.lt.s32.totalorder %s4736_s16, 1  ;;  %vm1279_vm0 = vcmask 516096   ;;  %v4564_v0 = vmov 0.0   ;;  %v1401_v1 = vld [vmem:[#allocation8 + $0xb8] sm:$0xff] }
 0x179   : > { %1280 = vst.msk [vmem:[#allocation2] sm:$0x1] %vm1279_vm0, %v4564_v0  ;;  %v1314_v2 = vld [vmem:[#allocation8 + $0x38] sm:$0xff]  ;;  %v1400_v3 = vld [vmem:[#allocation8 + $0xb0] sm:$0xff]  ;;  %1416 = vmatpush.msra.mxu2 %v1401_v1  ;;  %s5317_s18 = sld [smem:[#allocation51_spill]]  ;;  %v1399_v6 = vld [vmem:[#allocation8 + $0xa8] sm:$0xff] }
 0x17a   : > { %1281 = vst.msk [vmem:[#allocation2 + $0x11] sm:$0x1] %vm1279_vm0, %v4564_v0  ;;  %s5326_s16 = smov (!%p1261_p3, %s4736_s16), 1  ;;  %1329 = vmatpush.msra.mxu0 %v1314_v2  ;;  %v1313_v4 = vld [vmem:[#allocation8 + $0x30] sm:$0xff]  ;;  %v1359_v5 = vld [vmem:[#allocation8 + $0x78] sm:$0xff]  ;;  %v1312_v7 = vld [vmem:[#allocation8 + $0x28] sm:$0xff] }
 0x17b   : > { %1282 = vst [vmem:[#allocation3] sm:$0x1] %v4564_v0  ;;  %s3560_s28 = sshll.u32 %s5326_s16, 4  ;;  %1374 = vmatpush.msra.mxu1 %v1359_v5  ;;  %v1358_v8 = vld [vmem:[#allocation8 + $0x70] sm:$0xff]  ;;  %1417 = vmatpush.msra.mxu2 %v1400_v3  ;;  %v1357_v9 = vld [vmem:[#allocation8 + $0x68] sm:$0xff]  ;;  %v1398_v10 = vld [vmem:[#allocation8 + $0xa0] sm:$0xff] }
 0x17c   : > { %1283 = vst [vmem:[#allocation3 + $0x11] sm:$0x1] %v4564_v0  ;;  %1330 = vmatpush.msra.mxu0 %v1313_v4  ;;  %v1311_v11 = vld [vmem:[#allocation8 + $0x20] sm:$0xff]  ;;  %v1397_v12 = vld [vmem:[#allocation8 + $0x98] sm:$0xff]  ;;  %vm1301_vm1 = vcmask 523264   ;;  %v1396_v15 = vld [vmem:[#allocation8 + $0x90] sm:$0xff] }
 0x17d   : > { %1284 = vst [vmem:[#allocation4] sm:$0x1] %v4564_v0  ;;  %1375 = vmatpush.msra.mxu1 %v1358_v8  ;;  %1418 = vmatpush.msra.mxu2 %v1399_v6  ;;  %v1356_v13 = vld [vmem:[#allocation8 + $0x60] sm:$0xff]  ;;  %v1310_v14 = vld [vmem:[#allocation8 + $0x18] sm:$0xff]  ;;  %v1309_v16 = vld [vmem:[#allocation8 + $0x10] sm:$0xff]  ;;  %s5318_s1 = sld [smem:[#allocation54_spill]] }
 0x17e   : > { %1285 = vst [vmem:[#allocation4 + $0x9] sm:$0x1] %v4564_v0  ;;  %1331 = vmatpush.msra.mxu0 %v1312_v7  ;;  %v1355_v17 = vld [vmem:[#allocation8 + $0x58] sm:$0xff]  ;;  %v1395_v20 = vld [vmem:[#allocation8 + $0x88] sm:$0xff]  ;;  %v1354_v22 = vld [vmem:[#allocation8 + $0x50] sm:$0xff]  ;;  %s5319_s11 = sld [smem:[#allocation55_spill]] }
 0x17f   : > { %1286 = vst.msk [vmem:[#allocation5] sm:$0x1] %vm1279_vm0, %v4564_v0  ;;  %s1265_s22 = scalar_lea.vmem %s5317_s18, %s3560_s28  ;;  %1376 = vmatpush.msra.mxu1 %v1357_v9  ;;  %1419 = vmatpush.msra.mxu2 %v1398_v10  ;;  %v1308_v21 = vld [vmem:[#allocation8 + $0x8] sm:$0xff]  ;;  %v1394_v24 = vld [vmem:[#allocation8 + $0x80] sm:$0xff]  ;;  %vm1446_vm2 = vcmask 1041408   ;;  %vm1442_vm3 = vcmask 146432  }
 0x180   : > { %1287 = vst.msk [vmem:[#allocation5 + $0x5] sm:$0x1] %vm1279_vm0, %v4564_v0  ;;  %1332 = vmatpush.msra.mxu0 %v1311_v11  ;;  %v1299_v18 = vld [vmem:[%s1265_s22] sm:$0xff]  ;;  %v1300_v19 = vld [vmem:[%s1265_s22 + $0x8] sm:$0xff]  ;;  %v1353_v23 = vld [vmem:[#allocation8 + $0x48] sm:$0xff]  ;;  %s5320_s4 = sld [smem:[#allocation56_spill]] }
 0x181   : > { %1288 = vst [vmem:[#allocation6] sm:$0x1] %v4564_v0  ;;  %1377 = vmatpush.msra.mxu1 %v1356_v13  ;;  %1420 = vmatpush.msra.mxu2 %v1397_v12  ;;  %v1307_v25 = vld [vmem:[#allocation8] sm:$0xff]  ;;  %vm1642_vm4 = vcmask 80896   ;;  %vm1876_vm5 = vcmask 519168   ;;  %vm1988_vm6 = vcmask 1043456  }
 0x182   : > { %1289 = vst [vmem:[#allocation6 + $0x9] sm:$0x1] %v4564_v0  ;;  %1333 = vmatpush.msra.mxu0 %v1310_v14  ;;  %v1352_v26 = vld [vmem:[#allocation8 + $0x40] sm:$0xff]  ;;  %vm1984_vm7 = vcmask 31744   ;;  %s4565_s26 = smov 32   ;;  %s4566_s3 = smov 64  }
 0x183   : > { %1302 = vst.msk [vmem:[#allocation2 + $0x1] sm:$0xff] %vm1301_vm1, %v1299_v18  ;;  %1378 = vmatpush.msra.mxu1 %v1355_v17  ;;  %1421 = vmatpush.msra.mxu2 %v1396_v15  ;;  %v3818_v33 = vld [vmem:[#allocation10] ss:$0 sm:$0xff]  ;;  %v1438_v50 = vld [vmem:[%s5318_s1] sm:$0xff]  ;;  %s5321_s7 = sld [smem:[#allocation69_spill]]  ;;  %s3488_s23 = sshll.u32 %s5326_s16, 2 }
 0x184   : > { %1303 = vst.msk [vmem:[#allocation2 + $0x9] sm:$0xff] %vm1301_vm1, %v1300_v19  ;;  %1334 = vmatpush.msra.mxu0 %v1309_v16  ;;  %v3497_v51 = vld [vmem:[%s5318_s1 + $0x8] sm:$0xff]  ;;  %v1485_v53 = vld [vmem:[%s5319_s11 + $0x78] sm:$0xff]  ;;  %v1484_v54 = vld [vmem:[%s5319_s11 + $0x70] sm:$0xff]  ;;  %vm2078_vm8 = vcmask 261120   ;;  %s1278_s13 = scalar_lea.vmem %s4725_s6, %s3488_s23  ;;  %vm2377_vm9 = vcmask 64512  }
 0x185   : > { %1379 = vmatpush.msra.mxu1 %v1354_v22  ;;  %1422 = vmatpush.msra.mxu2 %v1395_v20  ;;  %v1483_v55 = vld [vmem:[%s5319_s11 + $0x68] sm:$0xff]  ;;  %v1482_v56 = vld [vmem:[%s5319_s11 + $0x60] sm:$0xff]  ;;  %v3515_v57 = vld [vmem:[%s5319_s11 + $0xf8] sm:$0xff]  ;;  %s3487_s8 = sshll.u32 %s5326_s16, 3  ;;  %s5322_s0 = sld [smem:[#allocation59_spill]]  ;;  %vm2522_vm11 = vcmask 1040384  }
 0x186   : > { %1335 = vmatpush.msra.mxu0 %v1308_v21  ;;  %v3514_v58 = vld [vmem:[%s5319_s11 + $0xf0] sm:$0xff]  ;;  %v1481_v59 = vld [vmem:[%s5319_s11 + $0x58] sm:$0xff]  ;;  %v3513_v60 = vld [vmem:[%s5319_s11 + $0xe8] sm:$0xff]  ;;  %s1274_s15 = scalar_lea.vmem %s4720_s19, %s3487_s8  ;;  %vm2788_vm12 = vcmask 1046528   ;;  %vm2972_vm13 = vcmask 1045504   ;;  %s5323_s2 = sld [smem:[#allocation63_spill]] }
 0x187   : > { %1380 = vmatpush.msra.mxu1 %v1353_v23  ;;  %1423 = vmatpush.msra.mxu2 %v1394_v24  ;;  %v1480_v61 = vld [vmem:[%s5319_s11 + $0x50] sm:$0xff]  ;;  %v3512_v62 = vld [vmem:[%s5319_s11 + $0xe0] sm:$0xff]  ;;  %v1479_v63 = vld [vmem:[%s5319_s11 + $0x48] sm:$0xff]  ;;  %s3561_s18 = sshll.u32 %s5326_s16, 5 }
 0x188   : > { %1336 = vmatpush.msra.mxu0 %v1307_v25  ;;  %v3511_v1 = vld [vmem:[%s5319_s11 + $0xd8] sm:$0xff]  ;;  %v1478_v2 = vld [vmem:[%s5319_s11 + $0x40] sm:$0xff]  ;;  %v3510_v3 = vld [vmem:[%s5319_s11 + $0xd0] sm:$0xff]  ;;  %s1270_s28 = scalar_lea.vmem %s4715_s27, %s3561_s18 }
 0x189   : > { %1381 = vmatpush.msra.mxu1 %v1352_v26  ;;  %v1477_v4 = vld [vmem:[%s5319_s11 + $0x38] sm:$0xff]  ;;  %v3509_v5 = vld [vmem:[%s5319_s11 + $0xc8] sm:$0xff]  ;;  %v1476_v6 = vld [vmem:[%s5319_s11 + $0x30] sm:$0xff] }
 0x18a   : > { %v1305_v27 = vld [vmem:[#allocation2] sm:$0xff]  ;;  %v1475_v8 = vld [vmem:[%s5319_s11 + $0x28] sm:$0xff]  ;;  %v3507_v9 = vld [vmem:[%s5319_s11 + $0xb8] sm:$0xff] }
 0x18b   : > { %v1349_v28 = vld [vmem:[#allocation2 + $0x1] sm:$0xff]  ;;  %3489 = vmatmul.msk.f32.vlgmr.msra.gmra.mxu0 %vm1301_vm1, %v1305_v27  ;;  %v1392_v31 = vld [vmem:[#allocation2 + $0xa] sm:$0xff]  ;;  %1552 = vmatpush.msrb.mxu1 %v3515_v57  ;;  %v1473_v12 = vld [vmem:[%s5319_s11 + $0x18] sm:$0xff] }
 0x18c   : > { %v1391_v29 = vld [vmem:[#allocation2 + $0x2] sm:$0xff]  ;;  %3491 = vmatmul.msk.f32.vlgmr.msra.gmra.mxu1 %vm1301_vm1, %v1349_v28  ;;  %v3506_v11 = vld [vmem:[%s5319_s11 + $0xb0] sm:$0xff]  ;;  %v3503_v18 = vld [vmem:[%s5319_s11 + $0x98] sm:$0xff] }
 0x18d   : > { %3493 = vmatmul.msk.f32.vlgmr.msra.gmra.mxu2 %vm1301_vm1, %v1391_v29  ;;  %v1306_v30 = vld [vmem:[#allocation2 + $0x8] sm:$0xff]  ;;  %1553 = vmatpush.msrb.mxu1 %v3514_v58  ;;  %v3508_v7 = vld [vmem:[%s5319_s11 + $0xc0] sm:$0xff]  ;;  %v1472_v14 = vld [vmem:[%s5319_s11 + $0x10] sm:$0xff] }
 0x18e   : > { %v1350_v32 = vld [vmem:[#allocation2 + $0x9] sm:$0xff]  ;;  %v1474_v10 = vld [vmem:[%s5319_s11 + $0x20] sm:$0xff]  ;;  %v3534_v22 = vld [vmem:[%s5319_s11 + $0x178] sm:$0xff] }
 0x18f   : > { %1554 = vmatpush.msrb.mxu1 %v3513_v60  ;;  %v3505_v13 = vld [vmem:[%s5319_s11 + $0xa8] sm:$0xff]  ;;  %v1470_v16 = vld [vmem:[%s5319_s11] sm:$0xff]  ;;  %v3502_v19 = vld [vmem:[%s5319_s11 + $0x90] sm:$0xff] }
 0x190   : > { %v1471_v15 = vld [vmem:[%s5319_s11 + $0x8] sm:$0xff]  ;;  %v3504_v17 = vld [vmem:[%s5319_s11 + $0xa0] sm:$0xff]  ;;  %v3533_v23 = vld [vmem:[%s5319_s11 + $0x170] sm:$0xff] }
 0x191   : > { %1555 = vmatpush.msrb.mxu1 %v3512_v62  ;;  %v3501_v20 = vld [vmem:[%s5319_s11 + $0x88] sm:$0xff]  ;;  %v3500_v21 = vld [vmem:[%s5319_s11 + $0x80] sm:$0xff]  ;;  %v3530_v26 = vld [vmem:[%s5319_s11 + $0x158] sm:$0xff] }
 0x192   : > { %v3532_v24 = vld [vmem:[%s5319_s11 + $0x168] sm:$0xff]  ;;  %v3531_v25 = vld [vmem:[%s5319_s11 + $0x160] sm:$0xff]  ;;  %v3529_v27 = vld [vmem:[%s5319_s11 + $0x150] sm:$0xff] }
 0x193   : > { %3490 = vmatmul.msk.f32.gmra.mxu0 %vm1301_vm1, %v1306_v30  ;;  %1556 = vmatpush.msrb.mxu1 %v3511_v1  ;;  %v3528_v28 = vld [vmem:[%s5319_s11 + $0x148] sm:$0xff]  ;;  %v3527_v29 = vld [vmem:[%s5319_s11 + $0x140] sm:$0xff]  ;;  %v3526_v30 = vld [vmem:[%s5319_s11 + $0x138] sm:$0xff] }
 0x194   : > { %3492 = vmatmul.msk.f32.gmra.mxu1 %vm1301_vm1, %v1350_v32  ;;  %v1747_v57 = vld [vmem:[#allocation13 + $0xe0] sm:$0xff]  ;;  %v1680_v58 = vld [vmem:[#allocation13 + $0x58] sm:$0xff]  ;;  %v1679_v60 = vld [vmem:[#allocation13 + $0x50] sm:$0xff] }
 0x195   : > { %3494 = vmatmul.msk.f32.gmra.mxu2 %vm1301_vm1, %v1392_v31  ;;  %1557 = vmatpush.msrb.mxu1 %v3510_v3  ;;  %v3525_v31 = vld [vmem:[%s5319_s11 + $0x130] sm:$0xff]  ;;  %v1639_v3 = vld [vmem:[%s5320_s4] sm:$0xf] }
 0x196   : > { %v1678_v62 = vld [vmem:[#allocation13 + $0x48] sm:$0xff] }
 0x197   : > { %1558 = vmatpush.msrb.mxu1 %v3509_v5 }
 0x199   : > { %1559 = vmatpush.msrb.mxu1 %v3508_v7  ;;  %v1742_v7 = vld [vmem:[#allocation13 + $0xb8] sm:$0xff] }
 0x19b   : > { %1560 = vmatpush.msrb.mxu1 %v3507_v9  ;;  %v1741_v9 = vld [vmem:[#allocation13 + $0xb0] sm:$0xff] }
 0x19d   : > { %1561 = vmatpush.msrb.mxu1 %v3506_v11  ;;  %v1740_v11 = vld [vmem:[#allocation13 + $0xa8] sm:$0xff] }
 0x19f   : > { %1562 = vmatpush.msrb.mxu1 %v3505_v13  ;;  %v3537_v13 = vld [vmem:[%s5320_s4 + $0x4] sm:$0xf] }
 0x1a1   : > { %1563 = vmatpush.msrb.mxu1 %v3504_v17  ;;  %v1671_v17 = vld [vmem:[#allocation13 + $0x10] sm:$0xff] }
 0x1a3   : > { %1564 = vmatpush.msrb.mxu1 %v3503_v18  ;;  %v1811_v18 = vld [vmem:[#allocation13 + $0x168] sm:$0xff] }
 0x1a5   : > { %1565 = vmatpush.msrb.mxu1 %v3502_v19  ;;  %v1670_v19 = vld [vmem:[#allocation13 + $0x8] sm:$0xff] }
 0x1a7   : > { %1566 = vmatpush.msrb.mxu1 %v3501_v20  ;;  %v1810_v20 = vld [vmem:[#allocation13 + $0x160] sm:$0xff] }
 0x1a9   : > { %1567 = vmatpush.msrb.mxu1 %v3500_v21  ;;  %v3540_v21 = vld [vmem:[%s5320_s4 + $0x8] sm:$0xf] }
 0x208   : > { %v1338_v34 = vpop.f32.mrf.mxu0 }
 0x209   : > { %v1347_v35 = vadd.f32 %v3818_v33, %v1338_v34  ;;  %v1383_v36 = vpop.f32.mrf.mxu1 }
 0x20b   : > { %v1389_v37 = vadd.f32 %v1383_v36, %v1347_v35  ;;  %v3516_v35 = vld [vmem:[%s5318_s1 + $0x10] sm:$0xff]  ;;  %v3523_v36 = vld [vmem:[%s5319_s11 + $0x120] sm:$0xff] }
 0x210   : > { %v1425_v38 = vpop.f32.mrf.mxu2  ;;  %v1341_v40 = vpop.f32.mrf.mxu0 }
 0x211   : > { %v1431_v39 = vadd.f32 %v1425_v38, %v1389_v37  ;;  %v1348_v41 = vadd.f32 %v3818_v33, %v1341_v40  ;;  %v1386_v42 = vpop.f32.mrf.mxu1  ;;  %v3524_v33 = vld [vmem:[%s5319_s11 + $0x128] sm:$0xff]  ;;  %v3522_v37 = vld [vmem:[%s5319_s11 + $0x118] sm:$0xff]  ;;  %v3521_v38 = vld [vmem:[%s5319_s11 + $0x110] sm:$0xff] }
 0x212   : > { %v3519_v40 = vld [vmem:[%s5319_s11 + $0x100] sm:$0xff] }
 0x213   : > { %v1433_v43 = vmax.f32 %v1431_v39, 0.0  ;;  %v1390_v44 = vadd.f32 %v1386_v42, %v1348_v41  ;;  %v3520_v39 = vld [vmem:[%s5319_s11 + $0x108] sm:$0xff] }
 0x215   : > { %1435 = vst [vmem:[#allocation3 + $0x1] sm:$0xff] %v1433_v43  ;;  %v3819_v43 = vld [vmem:[#allocation12] ss:$0 sm:$0xff] }
 0x218   : > { %v1428_v45 = vpop.f32.mrf.mxu2 }
 0x219   : > { %v1432_v46 = vadd.f32 %v1428_v45, %v1390_v44 }
 0x21b   : > { %v1434_v47 = vmax.f32 %v1432_v46, 0.0 }
 0x21c   : > { %v1439_v52 = vld [vmem:[#allocation3] sm:$0xff] }
 0x21d   : > { %1436 = vst [vmem:[#allocation3 + $0x9] sm:$0xff] %v1434_v47 }
 0x224   : > { %v5089_v48 = vld [vmem:[#allocation3 + $0x10] sm:$0x3]  ;;  %v5095_v49 = vld [vmem:[#allocation3 + $0x8] sm:$0xff] }
 0x225   : > { %3495 = vmatpush.msk.msra.mxu3 %vm1446_vm2, %v5089_v48  ;;  %3498 = vmatpush.msk.msrb.mxu0 %vm1446_vm2, %v5089_v48 }
 0x227   : > { %1464 = vmatpush.msra.mxu3 %v5095_v49  ;;  %1529 = vmatpush.msrb.mxu0 %v5095_v49 }
 0x229   : > { %1465 = vmatpush.msra.mxu3 %v1439_v52  ;;  %1530 = vmatpush.msrb.mxu0 %v1439_v52 }
 0x22a   : > { %3496 = vmatmul.msk.f32.vlgmr.msra.gmra.mxu3 %vm1442_vm3, %v1438_v50  ;;  %3499 = vmatmul.msk.f32.vlgmr.msrb.gmra.mxu0 %vm1442_vm3, %v3497_v51  ;;  %v1750_v51 = vld [vmem:[#allocation13 + $0xf8] sm:$0xff] }
 0x22b   : > { %1486 = vmatpush.msrb.mxu3 %v1485_v53  ;;  %1615 = vmatpush.msra.mxu0 %v3534_v22  ;;  %v1749_v53 = vld [vmem:[#allocation13 + $0xf0] sm:$0xff]  ;;  %v1809_v22 = vld [vmem:[#allocation13 + $0x158] sm:$0xff] }
 0x22c   : > { %1751 = vmatpush.msra.mxu1 %v1750_v51  ;;  %v1844_v51 = vld [vmem:[#allocation21 + $0x40] sm:$0xff] }
 0x22d   : > { %1487 = vmatpush.msrb.mxu3 %v1484_v54  ;;  %1616 = vmatpush.msra.mxu0 %v3533_v23  ;;  %v1808_v23 = vld [vmem:[#allocation13 + $0x150] sm:$0xff] }
 0x22e   : > { %1752 = vmatpush.msra.mxu1 %v1749_v53  ;;  %v1842_v53 = vld [vmem:[#allocation21 + $0x30] sm:$0xff] }
 0x22f   : > { %1488 = vmatpush.msrb.mxu3 %v1483_v55  ;;  %1617 = vmatpush.msra.mxu0 %v3532_v24  ;;  %v1748_v55 = vld [vmem:[#allocation13 + $0xe8] sm:$0xff] }
 0x230   : > { %1753 = vmatpush.msra.mxu1 %v1748_v55  ;;  %v1807_v24 = vld [vmem:[#allocation13 + $0x148] sm:$0xff] }
 0x231   : > { %1489 = vmatpush.msrb.mxu3 %v1482_v56  ;;  %1618 = vmatpush.msra.mxu0 %v3531_v25  ;;  %v1681_v56 = vld [vmem:[#allocation13 + $0x60] sm:$0xff]  ;;  %v1841_v55 = vld [vmem:[#allocation21 + $0x28] sm:$0xff] }
 0x232   : > { %1754 = vmatpush.msra.mxu1 %v1747_v57  ;;  %v1669_v25 = vld [vmem:[#allocation13] sm:$0xff] }
 0x233   : > { %1490 = vmatpush.msrb.mxu3 %v1481_v59  ;;  %1619 = vmatpush.msra.mxu0 %v3530_v26  ;;  %v1746_v59 = vld [vmem:[#allocation13 + $0xd8] sm:$0xff]  ;;  %v1739_v26 = vld [vmem:[#allocation13 + $0xa0] sm:$0xff] }
 0x234   : > { %1755 = vmatpush.msra.mxu1 %v1746_v59  ;;  %v1839_v57 = vld [vmem:[#allocation21 + $0x18] sm:$0xff]  ;;  %v1837_v59 = vld [vmem:[#allocation21 + $0x8] sm:$0xff] }
 0x235   : > { %1491 = vmatpush.msrb.mxu3 %v1480_v61  ;;  %1620 = vmatpush.msra.mxu0 %v3529_v27  ;;  %v1745_v61 = vld [vmem:[#allocation13 + $0xd0] sm:$0xff]  ;;  %v1806_v27 = vld [vmem:[#allocation13 + $0x140] sm:$0xff] }
 0x236   : > { %1756 = vmatpush.msra.mxu1 %v1745_v61  ;;  %v1887_v61 = vld [vmem:[#allocation28 + $0x38] sm:$0xff] }
 0x237   : > { %1492 = vmatpush.msrb.mxu3 %v1479_v63  ;;  %1621 = vmatpush.msra.mxu0 %v3528_v28  ;;  %v1744_v63 = vld [vmem:[#allocation13 + $0xc8] sm:$0xff]  ;;  %v1738_v28 = vld [vmem:[#allocation13 + $0x98] sm:$0xff] }
 0x238   : > { %1757 = vmatpush.msra.mxu1 %v1744_v63  ;;  %v1924_v63 = vld [vmem:[#allocation28 + $0x78] sm:$0xff] }
 0x239   : > { %1493 = vmatpush.msrb.mxu3 %v1478_v2  ;;  %1622 = vmatpush.msra.mxu0 %v3527_v29  ;;  %v1677_v2 = vld [vmem:[#allocation13 + $0x40] sm:$0xff]  ;;  %v1805_v29 = vld [vmem:[#allocation13 + $0x138] sm:$0xff] }
 0x23b   : > { %1494 = vmatpush.msrb.mxu3 %v1477_v4  ;;  %1623 = vmatpush.msra.mxu0 %v3526_v30  ;;  %v1743_v4 = vld [vmem:[#allocation13 + $0xc0] sm:$0xff]  ;;  %v1737_v30 = vld [vmem:[#allocation13 + $0x90] sm:$0xff] }
 0x23c   : > { %1758 = vmatpush.msra.mxu1 %v1743_v4  ;;  %v1883_v4 = vld [vmem:[#allocation28 + $0x18] sm:$0xff] }
 0x23d   : > { %1495 = vmatpush.msrb.mxu3 %v1476_v6  ;;  %1624 = vmatpush.msra.mxu0 %v3525_v31  ;;  %v1676_v6 = vld [vmem:[#allocation13 + $0x38] sm:$0xff]  ;;  %v1804_v31 = vld [vmem:[#allocation13 + $0x130] sm:$0xff] }
 0x23e   : > { %1759 = vmatpush.msra.mxu1 %v1742_v7 }
 0x23f   : > { %1496 = vmatpush.msrb.mxu3 %v1475_v8  ;;  %1625 = vmatpush.msra.mxu0 %v3524_v33  ;;  %v1675_v8 = vld [vmem:[#allocation13 + $0x30] sm:$0xff]  ;;  %v1803_v33 = vld [vmem:[#allocation13 + $0x128] sm:$0xff] }
 0x240   : > { %1760 = vmatpush.msra.mxu1 %v1741_v9 }
 0x241   : > { %1497 = vmatpush.msrb.mxu3 %v1474_v10  ;;  %1626 = vmatpush.msra.mxu0 %v3523_v36  ;;  %v1674_v10 = vld [vmem:[#allocation13 + $0x28] sm:$0xff]  ;;  %v1801_v36 = vld [vmem:[#allocation13 + $0x118] sm:$0xff] }
 0x242   : > { %1761 = vmatpush.msra.mxu1 %v1740_v11 }
 0x243   : > { %1498 = vmatpush.msrb.mxu3 %v1473_v12  ;;  %1627 = vmatpush.msra.mxu0 %v3522_v37  ;;  %v1673_v12 = vld [vmem:[#allocation13 + $0x20] sm:$0xff]  ;;  %v1800_v37 = vld [vmem:[#allocation13 + $0x110] sm:$0xff] }
 0x244   : > { %1762 = vmatpush.msra.mxu1 %v1739_v26  ;;  %v1954_v26 = vld [vmem:[#allocation28 + $0x98] sm:$0xff] }
 0x245   : > { %1499 = vmatpush.msrb.mxu3 %v1472_v14  ;;  %1628 = vmatpush.msra.mxu0 %v3521_v38  ;;  %v1813_v14 = vld [vmem:[#allocation13 + $0x178] sm:$0xff]  ;;  %v1799_v38 = vld [vmem:[#allocation13 + $0x108] sm:$0xff] }
 0x246   : > { %1763 = vmatpush.msra.mxu1 %v1738_v28  ;;  %v1952_v28 = vld [vmem:[#allocation28 + $0x88] sm:$0xff] }
 0x247   : > { %1500 = vmatpush.msrb.mxu3 %v1471_v15  ;;  %1629 = vmatpush.msra.mxu0 %v3520_v39  ;;  %v1672_v15 = vld [vmem:[#allocation13 + $0x18] sm:$0xff]  ;;  %v1798_v39 = vld [vmem:[#allocation13 + $0x100] sm:$0xff] }
 0x248   : > { %1764 = vmatpush.msra.mxu1 %v1737_v30  ;;  %v3821_v30 = vld [vmem:[#allocation22] ss:$0 sm:$0xff] }
 0x249   : > { %1501 = vmatpush.msrb.mxu3 %v1470_v16  ;;  %1630 = vmatpush.msra.mxu0 %v3519_v40  ;;  %v1812_v16 = vld [vmem:[#allocation13 + $0x170] sm:$0xff]  ;;  %v1851_v40 = vld [vmem:[#allocation21 + $0x78] sm:$0xff] }
 0x24b   : > { %3517 = vmatpush.msk.msra.mxu3 %vm1446_vm2, %v5089_v48  ;;  %v1684_v48 = vld [vmem:[#allocation13 + $0x78] sm:$0xff]  ;;  %1856 = vmatpush.msrb.mxu0 %v1851_v40 }
 0x24d   : > { %1592 = vmatpush.msra.mxu3 %v5095_v49  ;;  %v1683_v49 = vld [vmem:[#allocation13 + $0x70] sm:$0xff] }
 0x24f   : > { %1593 = vmatpush.msra.mxu3 %v1439_v52  ;;  %v1682_v52 = vld [vmem:[#allocation13 + $0x68] sm:$0xff] }
 0x2a7   : > { %v1532_v32 = vpop.f32.mrf.mxu0 }
 0x2a8   : > { %1568 = vmatmul.f32.vlgmr.msrb.gmra.mxu1 %v1532_v32  ;;  %v1736_v32 = vld [vmem:[#allocation13 + $0x88] sm:$0xff] }
 0x2a9   : > { %1765 = vmatpush.msra.mxu1 %v1736_v32 }
 0x2ad   : > { %v1467_v34 = vpop.f32.mrf.mxu3 }
 0x2ae   : > { %1502 = vmatmul.f32.vlgmr.msrb.gmra.mxu3 %v1467_v34  ;;  %v1735_v34 = vld [vmem:[#allocation13 + $0x80] sm:$0xff] }
 0x2af   : > { %1685 = vmatpush.msrb.mxu3 %v1684_v48  ;;  %1766 = vmatpush.msra.mxu1 %v1735_v34  ;;  %v1846_v48 = vld [vmem:[#allocation21 + $0x50] sm:$0xff] }
 0x2b1   : > { %1686 = vmatpush.msrb.mxu3 %v1683_v49  ;;  %v1845_v49 = vld [vmem:[#allocation21 + $0x48] sm:$0xff]  ;;  %1936 = vmatpush.msrb.mxu1 %v1924_v63  ;;  %v2085_v63 = vld [vmem:[#allocation31 + $0x10] sm:$0xff] }
 0x2b3   : > { %1687 = vmatpush.msrb.mxu3 %v1682_v52  ;;  %v1843_v52 = vld [vmem:[#allocation21 + $0x38] sm:$0xff] }
 0x2b5   : > { %1688 = vmatpush.msrb.mxu3 %v1681_v56  ;;  %v1840_v56 = vld [vmem:[#allocation21 + $0x20] sm:$0xff] }
 0x2b6   : > { %3518 = vmatmul.msk.f32.vlgmr.msra.gmra.mxu3 %vm1442_vm3, %v3516_v35  ;;  %v1802_v35 = vld [vmem:[#allocation13 + $0x120] sm:$0xff] }
 0x2b7   : > { %1689 = vmatpush.msrb.mxu3 %v1680_v58  ;;  %v1838_v58 = vld [vmem:[#allocation21 + $0x10] sm:$0xff] }
 0x2b9   : > { %1690 = vmatpush.msrb.mxu3 %v1679_v60  ;;  %v1836_v60 = vld [vmem:[#allocation21] sm:$0xff] }
 0x2bb   : > { %1691 = vmatpush.msrb.mxu3 %v1678_v62  ;;  %v1886_v62 = vld [vmem:[#allocation28 + $0x30] sm:$0xff] }
 0x2bd   : > { %1692 = vmatpush.msrb.mxu3 %v1677_v2  ;;  %v1923_v2 = vld [vmem:[#allocation28 + $0x70] sm:$0xff] }
 0x2be   : > { %1937 = vmatpush.msrb.mxu1 %v1923_v2  ;;  %v2044_v2 = vld [vmem:[#allocation39 + $0x10] sm:$0xff] }
 0x2bf   : > { %1693 = vmatpush.msrb.mxu3 %v1676_v6  ;;  %v3820_v6 = vld [vmem:[#allocation15] ss:$0 sm:$0xff] }
 0x2c1   : > { %1694 = vmatpush.msrb.mxu3 %v1675_v8 }
 0x2c3   : > { %1695 = vmatpush.msrb.mxu3 %v1674_v10 }
 0x2c5   : > { %1696 = vmatpush.msrb.mxu3 %v1673_v12 }
 0x2c7   : > { %1697 = vmatpush.msrb.mxu3 %v1672_v15  ;;  %v1881_v15 = vld [vmem:[#allocation28 + $0x8] sm:$0xff] }
 0x2c9   : > { %1698 = vmatpush.msrb.mxu3 %v1671_v17  ;;  %v1880_v17 = vld [vmem:[#allocation28] sm:$0xff] }
 0x2cb   : > { %1699 = vmatpush.msrb.mxu3 %v1670_v19  ;;  %v1958_v19 = vld [vmem:[#allocation28 + $0xb8] sm:$0xff] }
 0x2cd   : > { %1700 = vmatpush.msrb.mxu3 %v1669_v25  ;;  %v1955_v25 = vld [vmem:[#allocation28 + $0xa0] sm:$0xff] }
 0x2cf   : > { %1899 = vmatpush.msra.mxu3 %v1887_v61  ;;  %v2150_v61 = vld [vmem:[#allocation18 + $0x50] sm:$0xff] }
 0x2d1   : > { %1900 = vmatpush.msra.mxu3 %v1886_v62  ;;  %v2045_v62 = vld [vmem:[#allocation39 + $0x18] sm:$0xff] }
 0x325   : > { %v1569_v45 = vpop.f32.mrf.mxu1 }
 0x331   : > { %v1503_v41 = vpop.f32.mrf.mxu3 }
 0x332   : > { %v1509_v44 = vadd.f32 %v3819_v43, %v1503_v41  ;;  %v1850_v41 = vld [vmem:[#allocation21 + $0x70] sm:$0xff]  ;;  %v1848_v43 = vld [vmem:[#allocation21 + $0x60] sm:$0xff] }
 0x333   : > { %1857 = vmatpush.msrb.mxu0 %v1850_v41 }
 0x334   : > { %v1572_v46 = vadd.f32 %v1569_v45, %v1509_v44  ;;  %v1847_v44 = vld [vmem:[#allocation21 + $0x58] sm:$0xff] }
 0x339   : > { %v1595_v42 = vpop.f32.mrf.mxu3 }
 0x33a   : > { %1631 = vmatmul.f32.vlgmr.msra.gmra.mxu0 %v1595_v42  ;;  %v1849_v42 = vld [vmem:[#allocation21 + $0x68] sm:$0xff] }
 0x33b   : > { %1858 = vmatpush.msrb.mxu0 %v1849_v42 }
 0x33d   : > { %1859 = vmatpush.msrb.mxu0 %v1848_v43  ;;  %v1983_v43 = vld [vmem:[#allocation36] sm:$0x3] }
 0x33f   : > { %1860 = vmatpush.msrb.mxu0 %v1847_v44  ;;  %v2155_v44 = vld [vmem:[#allocation18 + $0x78] sm:$0xff] }
 0x341   : > { %1861 = vmatpush.msrb.mxu0 %v1846_v48  ;;  %v2049_v48 = vld [vmem:[#allocation39 + $0x38] sm:$0xff] }
 0x343   : > { %1862 = vmatpush.msrb.mxu0 %v1845_v49  ;;  %v2089_v49 = vld [vmem:[#allocation31 + $0x30] sm:$0xff] }
 0x345   : > { %1863 = vmatpush.msrb.mxu0 %v1844_v51  ;;  %v2153_v51 = vld [vmem:[#allocation18 + $0x68] sm:$0xff] }
 0x347   : > { %1864 = vmatpush.msrb.mxu0 %v1843_v52  ;;  %v2048_v52 = vld [vmem:[#allocation39 + $0x30] sm:$0xff] }
 0x349   : > { %1865 = vmatpush.msrb.mxu0 %v1842_v53  ;;  %v2088_v53 = vld [vmem:[#allocation31 + $0x28] sm:$0xff] }
 0x34b   : > { %1866 = vmatpush.msrb.mxu0 %v1841_v55  ;;  %v2152_v55 = vld [vmem:[#allocation18 + $0x60] sm:$0xff] }
 0x34d   : > { %1867 = vmatpush.msrb.mxu0 %v1840_v56  ;;  %v2047_v56 = vld [vmem:[#allocation39 + $0x28] sm:$0xff] }
 0x34f   : > { %1868 = vmatpush.msrb.mxu0 %v1839_v57  ;;  %v2087_v57 = vld [vmem:[#allocation31 + $0x20] sm:$0xff] }
 0x351   : > { %1869 = vmatpush.msrb.mxu0 %v1838_v58  ;;  %v2151_v58 = vld [vmem:[#allocation18 + $0x58] sm:$0xff] }
 0x353   : > { %1870 = vmatpush.msrb.mxu0 %v1837_v59  ;;  %v2046_v59 = vld [vmem:[#allocation39 + $0x20] sm:$0xff] }
 0x355   : > { %1871 = vmatpush.msrb.mxu0 %v1836_v60  ;;  %v2086_v60 = vld [vmem:[#allocation31 + $0x18] sm:$0xff] }
 0x3b7   : > { %v1632_v47 = vpop.f32.mrf.mxu0 }
 0x3b8   : > { %v5156_v50 = vadd.f32 %v1632_v47, %v1572_v46 }
 0x3ba   : > { %v1636_v54 = vmax.f32 %v5156_v50, 0.0  ;;  %v2236_v50 = vld [vmem:[#allocation25 + $0xd0] sm:$0xff] }
 0x3bc   : > { %1637 = vst [vmem:[#allocation4 + $0x1] sm:$0xff] %v1636_v54 }
 0x3c3   : > { %v1641_v1 = vld [vmem:[#allocation4 + $0x8] sm:$0x3]  ;;  %v1640_v5 = vld [vmem:[#allocation4] sm:$0xff] }
 0x3c4   : > { %3535 = vmatpush.msk.msrb.mxu2 %vm1446_vm2, %v1641_v1 }
 0x3c6   : > { %1664 = vmatpush.msrb.mxu2 %v1640_v5 }
 0x3c7   : > { %3536 = vmatmul.msk.f32.vlgmr.msrb.gmra.mxu2 %vm1642_vm4, %v1639_v3  ;;  %v1884_v3 = vld [vmem:[#allocation28 + $0x20] sm:$0xff] }
 0x3c8   : > { %3538 = vmatpush.msk.msra.mxu2 %vm1446_vm2, %v1641_v1 }
 0x3ca   : > { %1729 = vmatpush.msra.mxu2 %v1640_v5 }
 0x3cc   : > { %3541 = vmatpush.msk.msrb.mxu2 %vm1446_vm2, %v1641_v1  ;;  %v1885_v1 = vld [vmem:[#allocation28 + $0x28] sm:$0xff] }
 0x3cd   : > { %1901 = vmatpush.msra.mxu3 %v1885_v1  ;;  %v2149_v1 = vld [vmem:[#allocation18 + $0x48] sm:$0xff] }
 0x3ce   : > { %1792 = vmatpush.msrb.mxu2 %v1640_v5  ;;  %v1882_v5 = vld [vmem:[#allocation28 + $0x10] sm:$0xff] }
 0x3cf   : > { %3539 = vmatmul.msk.f32.vlgmr.msra.gmra.mxu2 %vm1642_vm4, %v3537_v13  ;;  %1902 = vmatpush.msra.mxu3 %v1884_v3  ;;  %v2084_v3 = vld [vmem:[#allocation31 + $0x8] sm:$0xff] }
 0x3d0   : > { %1814 = vmatpush.msra.mxu2 %v1813_v14  ;;  %v1922_v14 = vld [vmem:[#allocation28 + $0x68] sm:$0xff] }
 0x3d1   : > { %1903 = vmatpush.msra.mxu3 %v1883_v4  ;;  %1938 = vmatpush.msrb.mxu1 %v1922_v14  ;;  %v2148_v4 = vld [vmem:[#allocation18 + $0x40] sm:$0xff] }
 0x3d2   : > { %1815 = vmatpush.msra.mxu2 %v1812_v16  ;;  %v1921_v16 = vld [vmem:[#allocation28 + $0x60] sm:$0xff] }
 0x3d3   : > { %1904 = vmatpush.msra.mxu3 %v1882_v5  ;;  %1939 = vmatpush.msrb.mxu1 %v1921_v16  ;;  %v2043_v5 = vld [vmem:[#allocation39 + $0x8] sm:$0xff] }
 0x3d4   : > { %1816 = vmatpush.msra.mxu2 %v1811_v18  ;;  %v1920_v18 = vld [vmem:[#allocation28 + $0x58] sm:$0xff] }
 0x3d5   : > { %1905 = vmatpush.msra.mxu3 %v1881_v15  ;;  %1940 = vmatpush.msrb.mxu1 %v1920_v18  ;;  %v2140_v14 = vld [vmem:[#allocation18] sm:$0xff]  ;;  %v2042_v15 = vld [vmem:[#allocation39] sm:$0xff]  ;;  %v2239_v18 = vld [vmem:[#allocation25 + $0xe8] sm:$0xff] }
 0x3d6   : > { %1817 = vmatpush.msra.mxu2 %v1810_v20  ;;  %v1919_v20 = vld [vmem:[#allocation28 + $0x50] sm:$0xff] }
 0x3d7   : > { %3542 = vmatmul.msk.f32.vlgmr.msrb.gmra.mxu2 %vm1642_vm4, %v3540_v21  ;;  %1906 = vmatpush.msra.mxu3 %v1880_v17  ;;  %v1957_v21 = vld [vmem:[#allocation28 + $0xb0] sm:$0xff] }
 0x3d8   : > { %1818 = vmatpush.msra.mxu2 %v1809_v22  ;;  %v1918_v22 = vld [vmem:[#allocation28 + $0x48] sm:$0xff]  ;;  %1941 = vmatpush.msrb.mxu1 %v1919_v20  ;;  %v2241_v16 = vld [vmem:[#allocation25 + $0xf8] sm:$0xff] }
 0x3d9   : > { %v2240_v17 = vld [vmem:[#allocation25 + $0xf0] sm:$0xff] }
 0x3da   : > { %1819 = vmatpush.msra.mxu2 %v1808_v23  ;;  %v1956_v23 = vld [vmem:[#allocation28 + $0xa8] sm:$0xff]  ;;  %1942 = vmatpush.msrb.mxu1 %v1918_v22  ;;  %v2335_v22 = vld [vmem:[#allocation34 + $0xf0] sm:$0xff] }
 0x3dc   : > { %1820 = vmatpush.msra.mxu2 %v1807_v24  ;;  %v1917_v24 = vld [vmem:[#allocation28 + $0x40] sm:$0xff] }
 0x3dd   : > { %1943 = vmatpush.msrb.mxu1 %v1917_v24  ;;  %v2331_v24 = vld [vmem:[#allocation34 + $0xd0] sm:$0xff] }
 0x3de   : > { %1821 = vmatpush.msra.mxu2 %v1806_v27  ;;  %v1953_v27 = vld [vmem:[#allocation28 + $0x90] sm:$0xff] }
 0x3e0   : > { %1822 = vmatpush.msra.mxu2 %v1805_v29  ;;  %v1951_v29 = vld [vmem:[#allocation28 + $0x80] sm:$0xff] }
 0x3e2   : > { %1823 = vmatpush.msra.mxu2 %v1804_v31 }
 0x3e4   : > { %1824 = vmatpush.msra.mxu2 %v1803_v33 }
 0x3e6   : > { %1825 = vmatpush.msra.mxu2 %v1802_v35 }
 0x3e8   : > { %1826 = vmatpush.msra.mxu2 %v1801_v36  ;;  %v3822_v36 = vld [vmem:[#allocation30] ss:$0 sm:$0xff] }
 0x3ea   : > { %1827 = vmatpush.msra.mxu2 %v1800_v37 }
 0x3ec   : > { %1828 = vmatpush.msra.mxu2 %v1799_v38 }
 0x3ee   : > { %1829 = vmatpush.msra.mxu2 %v1798_v39 }
 0x44a   : > { %v1666_v45 = vpop.f32.mrf.mxu2 }
 0x44b   : > { %1701 = vmatmul.f32.vlgmr.msrb.gmra.mxu3 %v1666_v45  ;;  %v2090_v45 = vld [vmem:[#allocation31 + $0x38] sm:$0xff] }
 0x44c   : > { %1970 = vmatpush.msrb.mxu3 %v1958_v19  ;;  %v2238_v19 = vld [vmem:[#allocation25 + $0xe0] sm:$0xff] }
 0x44e   : > { %1971 = vmatpush.msrb.mxu3 %v1957_v21  ;;  %v2237_v21 = vld [vmem:[#allocation25 + $0xd8] sm:$0xff] }
 0x450   : > { %1972 = vmatpush.msrb.mxu3 %v1956_v23  ;;  %v2235_v23 = vld [vmem:[#allocation25 + $0xc8] sm:$0xff] }
 0x452   : > { %v1731_v46 = vpop.f32.mrf.mxu2  ;;  %1973 = vmatpush.msrb.mxu3 %v1955_v25  ;;  %v2234_v25 = vld [vmem:[#allocation25 + $0xc0] sm:$0xff] }
 0x453   : > { %1767 = vmatmul.f32.vlgmr.msra.gmra.mxu1 %v1731_v46  ;;  %v2012_v46 = vld [vmem:[#allocation37] sm:$0x3] }
 0x454   : > { %1974 = vmatpush.msrb.mxu3 %v1954_v26  ;;  %2061 = vmatpush.msra.mxu1 %v2049_v48  ;;  %v2233_v26 = vld [vmem:[#allocation25 + $0xb8] sm:$0xff] }
 0x455   : > { %v2280_v48 = vld [vmem:[#allocation25 + $0x178] sm:$0xff] }
 0x456   : > { %1975 = vmatpush.msrb.mxu3 %v1953_v27  ;;  %2062 = vmatpush.msra.mxu1 %v2048_v52  ;;  %v2232_v27 = vld [vmem:[#allocation25 + $0xb0] sm:$0xff]  ;;  %v2226_v52 = vld [vmem:[#allocation25 + $0x80] sm:$0xff] }
 0x458   : > { %1976 = vmatpush.msrb.mxu3 %v1952_v28  ;;  %2063 = vmatpush.msra.mxu1 %v2047_v56  ;;  %v2231_v28 = vld [vmem:[#allocation25 + $0xa8] sm:$0xff] }
 0x459   : > { %v2325_v56 = vld [vmem:[#allocation34 + $0xa0] sm:$0xff] }
 0x45a   : > { %v1794_v47 = vpop.f32.mrf.mxu2  ;;  %1977 = vmatpush.msrb.mxu3 %v1951_v29  ;;  %2064 = vmatpush.msra.mxu1 %v2046_v59  ;;  %v2082_v29 = vld [vmem:[#allocation33] sm:$0xff]  ;;  %v2323_v59 = vld [vmem:[#allocation34 + $0x90] sm:$0xff] }
 0x45b   : > { %1830 = vmatmul.f32.vlgmr.msra.gmra.mxu2 %v1794_v47  ;;  %v2154_v47 = vld [vmem:[#allocation18 + $0x70] sm:$0xff] }
 0x45c   : > { %2065 = vmatpush.msra.mxu1 %v2045_v62  ;;  %v2321_v62 = vld [vmem:[#allocation34 + $0x80] sm:$0xff] }
 0x45e   : > { %2066 = vmatpush.msra.mxu1 %v2044_v2  ;;  %v2336_v2 = vld [vmem:[#allocation34 + $0xf8] sm:$0xff] }
 0x460   : > { %2067 = vmatpush.msra.mxu1 %v2043_v5  ;;  %v2456_v5 = vld [vmem:[#allocation16 + $0xd0] sm:$0xff] }
 0x462   : > { %2068 = vmatpush.msra.mxu1 %v2042_v15  ;;  %v2330_v15 = vld [vmem:[#allocation34 + $0xc8] sm:$0xff] }
 0x4ce   : > { %v1702_v7 = vpop.f32.mrf.mxu3 }
 0x4cf   : > { %v1708_v8 = vadd.f32 %v3820_v6, %v1702_v7  ;;  %v2083_v6 = vld [vmem:[#allocation31] sm:$0xff]  ;;  %v2147_v7 = vld [vmem:[#allocation18 + $0x38] sm:$0xff] }
 0x4d0   : > { %v1768_v9 = vpop.f32.mrf.mxu1 }
 0x4d1   : > { %v1771_v10 = vadd.f32 %v1768_v9, %v1708_v8  ;;  %v2146_v8 = vld [vmem:[#allocation18 + $0x30] sm:$0xff]  ;;  %v2145_v9 = vld [vmem:[#allocation18 + $0x28] sm:$0xff] }
 0x4de   : > { %v1831_v11 = vpop.f32.mrf.mxu2 }
 0x4df   : > { %v1834_v12 = vadd.f32 %v1831_v11, %v1771_v10  ;;  %v2144_v10 = vld [vmem:[#allocation18 + $0x20] sm:$0xff]  ;;  %v2143_v11 = vld [vmem:[#allocation18 + $0x18] sm:$0xff] }
 0x4e1   : > { %v1835_v13 = vmax.f32 %v1834_v12, 0.0  ;;  %v2142_v12 = vld [vmem:[#allocation18 + $0x10] sm:$0xff] }
 0x4e3   : > { %1872 = vmatmul.f32.vlgmr.msrb.gmra.mxu0 %v1835_v13  ;;  %v2141_v13 = vld [vmem:[#allocation18 + $0x8] sm:$0xff] }
 0x560   : > { %v1873_v31 = vpop.f32.mrf.mxu0 }
 0x561   : > { %v5170_v32 = vadd.f32 %v3821_v30, %v1873_v31  ;;  %v2199_v31 = vld [vmem:[#allocation25 + $0x78] sm:$0xff] }
 0x563   : > { %1877 = vst.msk [vmem:[#allocation5 + $0x1] sm:$0xf] %vm1876_vm5, %v5170_v32 }
 0x56a   : > { %v1879_v33 = vld [vmem:[#allocation5] sm:$0xf] }
 0x56b   : > { %v1915_v34 = vld [vmem:[#allocation5 + $0x1] sm:$0xf]  ;;  %3543 = vmatmul.msk.f32.vlgmr.msra.gmra.mxu3 %vm1301_vm1, %v1879_v33 }
 0x56c   : > { %3544 = vmatmul.msk.f32.vlgmr.msrb.gmra.mxu1 %vm1301_vm1, %v1915_v34  ;;  %v1949_v35 = vld [vmem:[#allocation5 + $0x2] sm:$0xf]  ;;  %v2197_v33 = vld [vmem:[#allocation25 + $0x68] sm:$0xff]  ;;  %v2196_v34 = vld [vmem:[#allocation25 + $0x60] sm:$0xff] }
 0x56d   : > { %2242 = vmatpush.msrb.mxu1 %v2241_v16  ;;  %v2313_v16 = vld [vmem:[#allocation34 + $0x40] sm:$0xff] }
 0x56f   : > { %2243 = vmatpush.msrb.mxu1 %v2240_v17  ;;  %v2272_v17 = vld [vmem:[#allocation25 + $0x138] sm:$0xff] }
 0x571   : > { %2244 = vmatpush.msrb.mxu1 %v2239_v18  ;;  %v2328_v18 = vld [vmem:[#allocation34 + $0xb8] sm:$0xff] }
 0x573   : > { %3545 = vmatmul.msk.f32.vlgmr.msrb.gmra.mxu3 %vm1301_vm1, %v1949_v35  ;;  %2245 = vmatpush.msrb.mxu1 %v2238_v19  ;;  %v2195_v35 = vld [vmem:[#allocation25 + $0x58] sm:$0xff] }
 0x574   : > { %v2311_v19 = vld [vmem:[#allocation34 + $0x30] sm:$0xff] }
 0x575   : > { %2246 = vmatpush.msrb.mxu1 %v2237_v21  ;;  %v2450_v21 = vld [vmem:[#allocation16 + $0xa0] sm:$0xff] }
 0x577   : > { %2247 = vmatpush.msrb.mxu1 %v2236_v50  ;;  %v2271_v50 = vld [vmem:[#allocation25 + $0x130] sm:$0xff] }
 0x579   : > { %2248 = vmatpush.msrb.mxu1 %v2235_v23  ;;  %v2309_v23 = vld [vmem:[#allocation34 + $0x20] sm:$0xff] }
 0x57b   : > { %2249 = vmatpush.msrb.mxu1 %v2234_v25  ;;  %v2444_v25 = vld [vmem:[#allocation16 + $0x70] sm:$0xff] }
 0x57d   : > { %2250 = vmatpush.msrb.mxu1 %v2233_v26  ;;  %v2270_v26 = vld [vmem:[#allocation25 + $0x128] sm:$0xff] }
 0x57f   : > { %2251 = vmatpush.msrb.mxu1 %v2232_v27  ;;  %v2307_v27 = vld [vmem:[#allocation34 + $0x10] sm:$0xff] }
 0x581   : > { %2252 = vmatpush.msrb.mxu1 %v2231_v28  ;;  %v2324_v28 = vld [vmem:[#allocation34 + $0x98] sm:$0xff] }
 0x5e9   : > { %v1945_v39 = vpop.f32.mrf.mxu1 }
 0x5ee   : > { %v1908_v37 = vpop.f32.mrf.mxu3 }
 0x5ef   : > { %v1914_v38 = vadd.f32 %v3822_v36, %v1908_v37  ;;  %v2194_v36 = vld [vmem:[#allocation25 + $0x50] sm:$0xff]  ;;  %v2193_v37 = vld [vmem:[#allocation25 + $0x48] sm:$0xff] }
 0x5f1   : > { %v1948_v40 = vadd.f32 %v1945_v39, %v1914_v38  ;;  %v2192_v38 = vld [vmem:[#allocation25 + $0x40] sm:$0xff]  ;;  %v2191_v39 = vld [vmem:[#allocation25 + $0x38] sm:$0xff] }
 0x5f6   : > { %v1979_v41 = vpop.f32.mrf.mxu3 }
 0x5f7   : > { %v1982_v42 = vadd.f32 %v1979_v41, %v1948_v40  ;;  %v2190_v40 = vld [vmem:[#allocation25 + $0x30] sm:$0xff]  ;;  %v2189_v41 = vld [vmem:[#allocation25 + $0x28] sm:$0xff] }
 0x5f9   : > { %3546 = vmatpush.msk.msrb.mxu2 %vm1988_vm6, %v1982_v42  ;;  %3548 = vmatpush.msk.msra.mxu0 %vm1988_vm6, %v1982_v42  ;;  %v2230_v42 = vld [vmem:[#allocation25 + $0xa0] sm:$0xff] }
 0x5fa   : > { %3547 = vmatmul.msk.f32.vlgmr.msrb.gmra.mxu2 %vm1984_vm7, %v1983_v43  ;;  %3549 = vmatmul.msk.f32.vlgmr.msra.gmra.mxu0 %vm1984_vm7, %v2012_v46  ;;  %v2229_v43 = vld [vmem:[#allocation25 + $0x98] sm:$0xff]  ;;  %v2329_v46 = vld [vmem:[#allocation34 + $0xc0] sm:$0xff] }
 0x5fb   : > { %2160 = vmatpush.msrb.mxu0 %v2155_v44  ;;  %2102 = vmatpush.msra.mxu2 %v2090_v45  ;;  %v2228_v44 = vld [vmem:[#allocation25 + $0x90] sm:$0xff]  ;;  %v2227_v45 = vld [vmem:[#allocation25 + $0x88] sm:$0xff] }
 0x5fc   : > { %2253 = vmatpush.msrb.mxu1 %v2230_v42  ;;  %v2265_v42 = vld [vmem:[#allocation25 + $0x100] sm:$0xff] }
 0x5fd   : > { %2161 = vmatpush.msrb.mxu0 %v2154_v47  ;;  %2103 = vmatpush.msra.mxu2 %v2089_v49  ;;  %v2188_v47 = vld [vmem:[#allocation25 + $0x20] sm:$0xff] }
 0x5fe   : > { %2254 = vmatpush.msrb.mxu1 %v2229_v43  ;;  %v2327_v49 = vld [vmem:[#allocation34 + $0xb0] sm:$0xff]  ;;  %v2314_v43 = vld [vmem:[#allocation34 + $0x48] sm:$0xff] }
 0x5ff   : > { %2162 = vmatpush.msrb.mxu0 %v2153_v51  ;;  %2104 = vmatpush.msra.mxu2 %v2088_v53  ;;  %v2187_v51 = vld [vmem:[#allocation25 + $0x18] sm:$0xff]  ;;  %v2460_v53 = vld [vmem:[#allocation16 + $0xf0] sm:$0xff] }
 0x600   : > { %2255 = vmatpush.msrb.mxu1 %v2228_v44  ;;  %v2434_v44 = vld [vmem:[#allocation16 + $0x20] sm:$0xff] }
 0x601   : > { %2163 = vmatpush.msrb.mxu0 %v2152_v55  ;;  %2105 = vmatpush.msra.mxu2 %v2087_v57  ;;  %v2279_v55 = vld [vmem:[#allocation25 + $0x170] sm:$0xff] }
 0x602   : > { %2256 = vmatpush.msrb.mxu1 %v2227_v45  ;;  %v2186_v57 = vld [vmem:[#allocation25 + $0x10] sm:$0xff] }
 0x603   : > { %2164 = vmatpush.msrb.mxu0 %v2151_v58  ;;  %2106 = vmatpush.msra.mxu2 %v2086_v60  ;;  %v2278_v58 = vld [vmem:[#allocation25 + $0x168] sm:$0xff] }
 0x604   : > { %2257 = vmatpush.msrb.mxu1 %v2226_v52  ;;  %v2185_v60 = vld [vmem:[#allocation25 + $0x8] sm:$0xff] }
 0x605   : > { %2165 = vmatpush.msrb.mxu0 %v2150_v61  ;;  %2107 = vmatpush.msra.mxu2 %v2085_v63  ;;  %v2277_v61 = vld [vmem:[#allocation25 + $0x160] sm:$0xff] }
 0x606   : > { %v2184_v63 = vld [vmem:[#allocation25] sm:$0xff] }
 0x607   : > { %2166 = vmatpush.msrb.mxu0 %v2149_v1  ;;  %2108 = vmatpush.msra.mxu2 %v2084_v3  ;;  %v2276_v1 = vld [vmem:[#allocation25 + $0x158] sm:$0xff]  ;;  %v2308_v52 = vld [vmem:[#allocation34 + $0x18] sm:$0xff] }
 0x608   : > { %v2458_v3 = vld [vmem:[#allocation16 + $0xe0] sm:$0xff] }
 0x609   : > { %2167 = vmatpush.msrb.mxu0 %v2148_v4  ;;  %2109 = vmatpush.msra.mxu2 %v2083_v6  ;;  %v2319_v4 = vld [vmem:[#allocation34 + $0x70] sm:$0xff] }
 0x60a   : > { %3551 = vmatmul.msk.f32.vlgmr.msra.gmra.mxu2 %vm1301_vm1, %v5170_v32  ;;  %v2198_v32 = vld [vmem:[#allocation25 + $0x70] sm:$0xff]  ;;  %v2454_v6 = vld [vmem:[#allocation16 + $0xc0] sm:$0xff] }
 0x60b   : > { %2168 = vmatpush.msrb.mxu0 %v2147_v7  ;;  %2281 = vmatpush.msrb.mxu2 %v2280_v48  ;;  %v2452_v7 = vld [vmem:[#allocation16 + $0xb0] sm:$0xff]  ;;  %v2312_v48 = vld [vmem:[#allocation34 + $0x38] sm:$0xff] }
 0x60d   : > { %2169 = vmatpush.msrb.mxu0 %v2146_v8  ;;  %2282 = vmatpush.msrb.mxu2 %v2279_v55  ;;  %v2275_v8 = vld [vmem:[#allocation25 + $0x150] sm:$0xff] }
 0x60f   : > { %2170 = vmatpush.msrb.mxu0 %v2145_v9  ;;  %2283 = vmatpush.msrb.mxu2 %v2278_v58  ;;  %v2317_v9 = vld [vmem:[#allocation34 + $0x60] sm:$0xff] }
 0x611   : > { %2171 = vmatpush.msrb.mxu0 %v2144_v10  ;;  %2284 = vmatpush.msrb.mxu2 %v2277_v61  ;;  %v2334_v10 = vld [vmem:[#allocation34 + $0xe8] sm:$0xff] }
 0x613   : > { %2172 = vmatpush.msrb.mxu0 %v2143_v11  ;;  %2285 = vmatpush.msrb.mxu2 %v2276_v1  ;;  %v2274_v11 = vld [vmem:[#allocation25 + $0x148] sm:$0xff] }
 0x614   : > { %v5193_v1 = vld [vmem:[#allocation3 + $0x9] sm:$0xff] }
 0x615   : > { %2173 = vmatpush.msrb.mxu0 %v2142_v12  ;;  %2286 = vmatpush.msrb.mxu2 %v2275_v8  ;;  %v2315_v12 = vld [vmem:[#allocation34 + $0x50] sm:$0xff] }
 0x617   : > { %2174 = vmatpush.msrb.mxu0 %v2141_v13  ;;  %v2332_v13 = vld [vmem:[#allocation34 + $0xd8] sm:$0xff]  ;;  %2287 = vmatpush.msrb.mxu2 %v2274_v11 }
 0x619   : > { %2175 = vmatpush.msrb.mxu0 %v2140_v14  ;;  %v2273_v14 = vld [vmem:[#allocation25 + $0x140] sm:$0xff] }
 0x61a   : > { %2176 = vmatmul.f32.vlgmr.msrb.gmra.mxu0 %v1636_v54  ;;  %v2333_v54 = vld [vmem:[#allocation34 + $0xe0] sm:$0xff]  ;;  %2288 = vmatpush.msrb.mxu2 %v2273_v14 }
 0x61b   : > { %2337 = vmatpush.msra.mxu0 %v2335_v22  ;;  %v2448_v22 = vld [vmem:[#allocation16 + $0x90] sm:$0xff] }
 0x61c   : > { %2289 = vmatpush.msrb.mxu2 %v2272_v17 }
 0x61d   : > { %2338 = vmatpush.msra.mxu0 %v2333_v54  ;;  %v2326_v54 = vld [vmem:[#allocation34 + $0xa8] sm:$0xff] }
 0x61e   : > { %2290 = vmatpush.msrb.mxu2 %v2271_v50  ;;  %v2451_v50 = vld [vmem:[#allocation16 + $0xa8] sm:$0xff] }
 0x61f   : > { %2339 = vmatpush.msra.mxu0 %v2331_v24  ;;  %v2446_v24 = vld [vmem:[#allocation16 + $0x80] sm:$0xff] }
 0x620   : > { %2291 = vmatpush.msrb.mxu2 %v2270_v26  ;;  %v2449_v26 = vld [vmem:[#allocation16 + $0x98] sm:$0xff] }
 0x621   : > { %2340 = vmatpush.msra.mxu0 %v2329_v46 }
 0x623   : > { %2341 = vmatpush.msra.mxu0 %v2327_v49  ;;  %v2310_v49 = vld [vmem:[#allocation34 + $0x28] sm:$0xff] }
 0x625   : > { %2342 = vmatpush.msra.mxu0 %v2325_v56  ;;  %v3823_v56 = vld [vmem:[#allocation19] ss:$0 sm:$0xff] }
 0x627   : > { %2343 = vmatpush.msra.mxu0 %v2323_v59 }
 0x629   : > { %2344 = vmatpush.msra.mxu0 %v2321_v62 }
 0x62b   : > { %2345 = vmatpush.msra.mxu0 %v2319_v4 }
 0x62d   : > { %2346 = vmatpush.msra.mxu0 %v2317_v9  ;;  %v2304_v9 = vld [vmem:[%s5321_s7 + $0x8] sm:$0xff] }
 0x62f   : > { %2347 = vmatpush.msra.mxu0 %v2315_v12 }
 0x631   : > { %2348 = vmatpush.msra.mxu0 %v2313_v16 }
 0x633   : > { %2349 = vmatpush.msra.mxu0 %v2311_v19  ;;  %v2457_v19 = vld [vmem:[#allocation16 + $0xd8] sm:$0xff] }
 0x635   : > { %2350 = vmatpush.msra.mxu0 %v2309_v23  ;;  %v2577_v23 = vld [vmem:[#allocation24 + $0xf8] sm:$0xff] }
 0x637   : > { %2351 = vmatpush.msra.mxu0 %v2307_v27  ;;  %v2572_v27 = vld [vmem:[#allocation24 + $0xd0] sm:$0xff] }
 0x677   : > { %v2033_v55 = vpop.f32.mrf.mxu0 }
 0x67d   : > { %v5184_v20 = vpop.f32.mrf.mxu2 }
 0x67e   : > { %3550 = vmatmul.msk.f32.vlgmr.msra.gmra.mxu1 %vm1301_vm1, %v5184_v20 }
 0x67f   : > { %2468 = vmatpush.msra.mxu1 %v2460_v53  ;;  %v2306_v53 = vld [vmem:[#allocation34 + $0x8] sm:$0xff] }
 0x681   : > { %2469 = vmatpush.msra.mxu1 %v2458_v3 }
 0x683   : > { %2470 = vmatpush.msra.mxu1 %v2456_v5 }
 0x685   : > { %2471 = vmatpush.msra.mxu1 %v2454_v6 }
 0x687   : > { %2472 = vmatpush.msra.mxu1 %v2452_v7  ;;  %v2303_v7 = vld [vmem:[%s5321_s7] sm:$0xff] }
 0x689   : > { %2473 = vmatpush.msra.mxu1 %v2450_v21  ;;  %v2455_v21 = vld [vmem:[#allocation16 + $0xc8] sm:$0xff] }
 0x68b   : > { %2474 = vmatpush.msra.mxu1 %v2448_v22  ;;  %v2453_v22 = vld [vmem:[#allocation16 + $0xb8] sm:$0xff] }
 0x68d   : > { %v2111_v30 = vpop.f32.mrf.mxu2  ;;  %2475 = vmatpush.msra.mxu1 %v2446_v24  ;;  %v2574_v24 = vld [vmem:[#allocation24 + $0xe0] sm:$0xff] }
 0x68e   : > { %3552 = vmatpush.msk.msra.mxu3 %vm1988_vm6, %v2111_v30  ;;  %v2269_v30 = vld [vmem:[#allocation25 + $0x120] sm:$0xff] }
 0x68f   : > { %3553 = vmatmul.msk.f32.vlgmr.msra.gmra.mxu3 %vm1984_vm7, %v2082_v29  ;;  %v2442_v29 = vld [vmem:[#allocation16 + $0x60] sm:$0xff]  ;;  %2476 = vmatpush.msra.mxu1 %v2444_v25  ;;  %v2575_v25 = vld [vmem:[#allocation24 + $0xe8] sm:$0xff] }
 0x690   : > { %2200 = vmatpush.msrb.mxu3 %v2199_v31  ;;  %v2305_v31 = vld [vmem:[#allocation34] sm:$0xff]  ;;  %2292 = vmatpush.msrb.mxu2 %v2269_v30  ;;  %v2570_v30 = vld [vmem:[#allocation24 + $0xc0] sm:$0xff] }
 0x691   : > { %2352 = vmatpush.msra.mxu0 %v2305_v31  ;;  %2477 = vmatpush.msra.mxu1 %v2442_v29  ;;  %v2447_v29 = vld [vmem:[#allocation16 + $0x88] sm:$0xff] }
 0x692   : > { %2201 = vmatpush.msrb.mxu3 %v2198_v32  ;;  %v2322_v32 = vld [vmem:[#allocation34 + $0x88] sm:$0xff]  ;;  %v2571_v31 = vld [vmem:[#allocation24 + $0xc8] sm:$0xff] }
 0x694   : > { %2202 = vmatpush.msrb.mxu3 %v2197_v33  ;;  %v2440_v33 = vld [vmem:[#allocation16 + $0x50] sm:$0xff] }
 0x695   : > { %2478 = vmatpush.msra.mxu1 %v2440_v33  ;;  %v2568_v33 = vld [vmem:[#allocation24 + $0xb0] sm:$0xff] }
 0x696   : > { %2203 = vmatpush.msrb.mxu3 %v2196_v34  ;;  %v2268_v34 = vld [vmem:[#allocation25 + $0x118] sm:$0xff] }
 0x697   : > { %2293 = vmatpush.msrb.mxu2 %v2268_v34  ;;  %v2569_v34 = vld [vmem:[#allocation24 + $0xb8] sm:$0xff] }
 0x698   : > { %2204 = vmatpush.msrb.mxu3 %v2195_v35  ;;  %v2320_v35 = vld [vmem:[#allocation34 + $0x78] sm:$0xff] }
 0x69a   : > { %2205 = vmatpush.msrb.mxu3 %v2194_v36  ;;  %v2267_v36 = vld [vmem:[#allocation25 + $0x110] sm:$0xff] }
 0x69b   : > { %2294 = vmatpush.msrb.mxu2 %v2267_v36  ;;  %v2566_v36 = vld [vmem:[#allocation24 + $0xa0] sm:$0xff] }
 0x69c   : > { %2206 = vmatpush.msrb.mxu3 %v2193_v37  ;;  %v2318_v37 = vld [vmem:[#allocation34 + $0x68] sm:$0xff] }
 0x69e   : > { %2207 = vmatpush.msrb.mxu3 %v2192_v38  ;;  %v2438_v38 = vld [vmem:[#allocation16 + $0x40] sm:$0xff] }
 0x69f   : > { %2479 = vmatpush.msra.mxu1 %v2438_v38  ;;  %v2441_v38 = vld [vmem:[#allocation16 + $0x58] sm:$0xff] }
 0x6a0   : > { %2208 = vmatpush.msrb.mxu3 %v2191_v39  ;;  %v2266_v39 = vld [vmem:[#allocation25 + $0x108] sm:$0xff] }
 0x6a1   : > { %2295 = vmatpush.msrb.mxu2 %v2266_v39  ;;  %v2564_v39 = vld [vmem:[#allocation24 + $0x90] sm:$0xff] }
 0x6a2   : > { %2209 = vmatpush.msrb.mxu3 %v2190_v40  ;;  %v2316_v40 = vld [vmem:[#allocation34 + $0x58] sm:$0xff] }
 0x6a3   : > { %2296 = vmatpush.msrb.mxu2 %v2265_v42  ;;  %v2562_v42 = vld [vmem:[#allocation24 + $0x80] sm:$0xff] }
 0x6a4   : > { %2210 = vmatpush.msrb.mxu3 %v2189_v41  ;;  %v2436_v41 = vld [vmem:[#allocation16 + $0x30] sm:$0xff] }
 0x6a5   : > { %2480 = vmatpush.msra.mxu1 %v2436_v41  ;;  %v2439_v41 = vld [vmem:[#allocation16 + $0x48] sm:$0xff] }
 0x6a6   : > { %2211 = vmatpush.msrb.mxu3 %v2188_v47  ;;  %v2432_v47 = vld [vmem:[#allocation16 + $0x10] sm:$0xff] }
 0x6a7   : > { %2481 = vmatpush.msra.mxu1 %v2434_v44  ;;  %v2437_v44 = vld [vmem:[#allocation16 + $0x38] sm:$0xff] }
 0x6a8   : > { %2212 = vmatpush.msrb.mxu3 %v2187_v51  ;;  %v2430_v51 = vld [vmem:[#allocation16] sm:$0xff] }
 0x6a9   : > { %2482 = vmatpush.msra.mxu1 %v2432_v47  ;;  %v2435_v47 = vld [vmem:[#allocation16 + $0x28] sm:$0xff] }
 0x6aa   : > { %2213 = vmatpush.msrb.mxu3 %v2186_v57  ;;  %v2177_v57 = vpop.f32.mrf.mxu0 }
 0x6ab   : > { %2483 = vmatpush.msra.mxu1 %v2430_v51  ;;  %v2178_v58 = vadd.f32 %v3823_v56, %v2177_v57  ;;  %v2433_v51 = vld [vmem:[#allocation16 + $0x18] sm:$0xff]  ;;  %v2554_v56 = vld [vmem:[#allocation24 + $0x40] sm:$0xff]  ;;  %v2555_v57 = vld [vmem:[#allocation24 + $0x48] sm:$0xff] }
 0x6ac   : > { %2214 = vmatpush.msrb.mxu3 %v2185_v60 }
 0x6ae   : > { %2215 = vmatpush.msrb.mxu3 %v2184_v63  ;;  %v5190_v63 = vld [vmem:[#allocation3 + $0x1] sm:$0xff] }
 0x6b0   : > { %2357 = vmatpush.msra.mxu3 %v2336_v2 }
 0x6b2   : > { %2358 = vmatpush.msra.mxu3 %v2334_v10  ;;  %v3824_v10 = vld [vmem:[#allocation27] ss:$0 sm:$0xff] }
 0x6b4   : > { %2359 = vmatpush.msra.mxu3 %v2332_v13 }
 0x6b6   : > { %2360 = vmatpush.msra.mxu3 %v2330_v15 }
 0x6b8   : > { %2361 = vmatpush.msra.mxu3 %v2328_v18  ;;  %v2459_v18 = vld [vmem:[#allocation16 + $0xe8] sm:$0xff] }
 0x6ba   : > { %2362 = vmatpush.msra.mxu3 %v2326_v54  ;;  %v2576_v54 = vld [vmem:[#allocation24 + $0xf0] sm:$0xff] }
 0x6bc   : > { %2363 = vmatpush.msra.mxu3 %v2324_v28  ;;  %v2573_v28 = vld [vmem:[#allocation24 + $0xd8] sm:$0xff] }
 0x6be   : > { %2364 = vmatpush.msra.mxu3 %v2322_v32  ;;  %v2445_v32 = vld [vmem:[#allocation16 + $0x78] sm:$0xff] }
 0x6c0   : > { %2365 = vmatpush.msra.mxu3 %v2320_v35  ;;  %v2443_v35 = vld [vmem:[#allocation16 + $0x68] sm:$0xff] }
 0x6c2   : > { %2366 = vmatpush.msra.mxu3 %v2318_v37  ;;  %v2567_v37 = vld [vmem:[#allocation24 + $0xa8] sm:$0xff] }
 0x6c4   : > { %2367 = vmatpush.msra.mxu3 %v2316_v40  ;;  %v2565_v40 = vld [vmem:[#allocation24 + $0x98] sm:$0xff] }
 0x6c6   : > { %2368 = vmatpush.msra.mxu3 %v2314_v43  ;;  %v2563_v43 = vld [vmem:[#allocation24 + $0x88] sm:$0xff] }
 0x6c8   : > { %2369 = vmatpush.msra.mxu3 %v2312_v48  ;;  %v2558_v48 = vld [vmem:[#allocation24 + $0x60] sm:$0xff] }
 0x6ca   : > { %2370 = vmatpush.msra.mxu3 %v2310_v49  ;;  %v2559_v49 = vld [vmem:[#allocation24 + $0x68] sm:$0xff] }
 0x6cc   : > { %2371 = vmatpush.msra.mxu3 %v2308_v52  ;;  %v2556_v52 = vld [vmem:[#allocation24 + $0x50] sm:$0xff] }
 0x6ce   : > { %2372 = vmatpush.msra.mxu3 %v2306_v53  ;;  %v2557_v53 = vld [vmem:[#allocation24 + $0x58] sm:$0xff] }
 0x6fb   : > { %v2070_v45 = vpop.f32.mrf.mxu1 }
 0x6fc   : > { %v2074_v46 = vrot.slane %v2070_v45, 1 }
 0x6fe   : > { %2075 = vrot.lane.b32.xlu0 %v2074_v46, %s4565_s26  ;;  %v2561_v46 = vld [vmem:[#allocation24 + $0x78] sm:$0xff] }
 0x706   : > { %2037 = vrot.lane.b32.xlu0 %v2033_v55, %s4566_s3  ;;  %v2431_v55 = vld [vmem:[#allocation16 + $0x8] sm:$0xff] }
 0x712   : > { %v2137_v59 = vpop.f32.mrf.mxu3 }
 0x713   : > { %v2180_v60 = vadd.f32 %v2178_v58, %v2137_v59  ;;  %v2552_v58 = vld [vmem:[#allocation24 + $0x30] sm:$0xff]  ;;  %v2553_v59 = vld [vmem:[#allocation24 + $0x38] sm:$0xff] }
 0x715   : > { %2181 = vst [vmem:[#allocation6 + $0x1] sm:$0xff] %v2180_v60  ;;  %2353 = vmatmul.f32.vlgmr.msra.gmra.mxu0 %v2180_v60  ;;  %2258 = vmatmul.f32.vlgmr.msrb.gmra.mxu1 %v2180_v60 }
 0x716   : > { %2656 = vmatpush.msrb.mxu1 %v2577_v23  ;;  %v1290_v23 = vlaneseq }
 0x718   : > { %2657 = vmatpush.msrb.mxu1 %v2575_v25  ;;  %v2727_v25 = vld [vmem:[#allocation24 + $0x248] sm:$0xff]  ;;  %vm1292_vm10 = vcmp.lt.s32.totalorder %v1290_v23, 256 }
 0x719   : > { %1294 = vst.msk [vmem:[#allocation7] ss:$8 sm:$0x3] %vm1292_vm10, %v4564_v0  ;;  %v2779_v23 = vld [vmem:[#allocation24 + $0x3e8] sm:$0xff] }
 0x71a   : > { %2658 = vmatpush.msrb.mxu1 %v2573_v28  ;;  %1297 = vst.msk [vmem:[#allocation7 + $0x21] ss:$8 sm:$0x3] %vm1292_vm10, %v4564_v0  ;;  %v2722_v28 = vld [vmem:[#allocation24 + $0x220] sm:$0xff]  ;;  %v2607_v0 = vld [vmem:[#allocation24 + $0x1e8] sm:$0xff] }
 0x71c   : > { %v2183_v61 = vld [vmem:[#allocation6] sm:$0xff]  ;;  %2659 = vmatpush.msrb.mxu1 %v2571_v31 }
 0x71d   : > { %v2263_v62 = vld [vmem:[#allocation6 + $0x2] sm:$0xff]  ;;  %2216 = vmatmul.f32.vlgmr.msrb.gmra.mxu3 %v2183_v61  ;;  %2484 = vmatmul.f32.vlgmr.msra.gmra.mxu1 %v5190_v63  ;;  %v2551_v61 = vld [vmem:[#allocation24 + $0x28] sm:$0xff] }
 0x71e   : > { %2297 = vmatmul.f32.vlgmr.msrb.gmra.mxu2 %v2263_v62  ;;  %2660 = vmatpush.msrb.mxu1 %v2569_v34  ;;  %v2548_v62 = vld [vmem:[#allocation24 + $0x10] sm:$0xff]  ;;  %v2721_v31 = vld [vmem:[#allocation24 + $0x218] sm:$0xff]  ;;  %v2718_v34 = vld [vmem:[#allocation24 + $0x200] sm:$0xff] }
 0x720   : > { %2661 = vmatpush.msrb.mxu1 %v2567_v37  ;;  %v2604_v37 = vld [vmem:[#allocation24 + $0x1d0] sm:$0xff] }
 0x722   : > { %2662 = vmatpush.msrb.mxu1 %v2565_v40  ;;  %v2603_v40 = vld [vmem:[#allocation24 + $0x1c8] sm:$0xff] }
 0x724   : > { %2663 = vmatpush.msrb.mxu1 %v2563_v43  ;;  %v2598_v43 = vld [vmem:[#allocation24 + $0x1a0] sm:$0xff] }
 0x725   : > { %2373 = vmatmul.f32.vlgmr.msra.gmra.mxu3 %v2180_v60  ;;  %2487 = vmatmul.f32.gmra.mxu1 %v5193_v1  ;;  %v2550_v60 = vld [vmem:[#allocation24 + $0x20] sm:$0xff] }
 0x726   : > { %2664 = vmatpush.msrb.mxu1 %v2561_v46  ;;  %v2596_v46 = vld [vmem:[#allocation24 + $0x190] sm:$0xff] }
 0x728   : > { %2665 = vmatpush.msrb.mxu1 %v2559_v49  ;;  %v2594_v49 = vld [vmem:[#allocation24 + $0x180] sm:$0xff] }
 0x72a   : > { %2666 = vmatpush.msrb.mxu1 %v2557_v53  ;;  %v2592_v53 = vld [vmem:[#allocation24 + $0x170] sm:$0xff] }
 0x72c   : > { %2667 = vmatpush.msrb.mxu1 %v2555_v57  ;;  %v2591_v57 = vld [vmem:[#allocation24 + $0x168] sm:$0xff] }
 0x72e   : > { %2668 = vmatpush.msrb.mxu1 %v2553_v59 }
 0x730   : > { %2669 = vmatpush.msrb.mxu1 %v2551_v61  ;;  %v2589_v61 = vld [vmem:[#allocation24 + $0x158] sm:$0xff] }
 0x770   : > { %v2076_v2 = vpop.permute.xlu0 %2075 }
 0x771   : > { %v2079_v3 = vsel %vm2078_vm8, %v2070_v45, %v2076_v2  ;;  %v2560_v45 = vld [vmem:[#allocation24 + $0x70] sm:$0xff]  ;;  %v2549_v2 = vld [vmem:[#allocation24 + $0x18] sm:$0xff] }
 0x772   : > { %v2080_v4 = vsel %vm1301_vm1, %v2079_v3, 0.0  ;;  %v2546_v3 = vld [vmem:[#allocation24] sm:$0xff]  ;;  %2670 = vmatpush.msrb.mxu1 %v2549_v2 }
 0x773   : > { %2081 = vst [vmem:[%s1278_s13 + $0x2] sm:$0x1] %v2080_v4  ;;  %v2547_v4 = vld [vmem:[#allocation24 + $0x8] sm:$0xff]  ;;  %v2586_v2 = vld [vmem:[#allocation24 + $0x140] sm:$0xff] }
 0x774   : > { %2671 = vmatpush.msrb.mxu1 %v2547_v4 }
 0x778   : > { %v2038_v5 = vpop.permute.xlu0 %2037 }
 0x779   : > { %v2040_v6 = vsel %vm1301_vm1, %v5184_v20, %v2038_v5  ;;  %v2461_v20 = vld [vmem:[#allocation16 + $0xf8] sm:$0xff] }
 0x77a   : > { %2041 = vst [vmem:[%s1278_s13] sm:$0x3] %v2040_v6  ;;  %v2748_v5 = vld [vmem:[#allocation24 + $0x2f0] sm:$0xff]  ;;  %v2749_v6 = vld [vmem:[#allocation24 + $0x2f8] sm:$0xff] }
 0x77b   : > { %2849 = vmatpush.msra.mxu1 %v2749_v6  ;;  %v2584_v6 = vld [vmem:[#allocation24 + $0x130] sm:$0xff] }
 0x792   : > { %v2354_v8 = vpop.f32.mrf.mxu0  ;;  %v2259_v13 = vpop.f32.mrf.mxu1 }
 0x793   : > { %2399 = vmatpush.msrb.mxu0 %v2354_v8  ;;  %v2744_v8 = vld [vmem:[#allocation24 + $0x2d0] sm:$0xff] }
 0x794   : > { %3554 = vmatmul.msk.f32.vlgmr.msrb.gmra.mxu0 %vm2377_vm9, %v2303_v7 }
 0x795   : > { %2610 = vmatpush.msra.mxu0 %v2576_v54  ;;  %v2729_v54 = vld [vmem:[#allocation24 + $0x258] sm:$0xff] }
 0x797   : > { %2611 = vmatpush.msra.mxu0 %v2574_v24  ;;  %v2726_v24 = vld [vmem:[#allocation24 + $0x240] sm:$0xff] }
 0x799   : > { %2612 = vmatpush.msra.mxu0 %v2572_v27  ;;  %v2725_v27 = vld [vmem:[#allocation24 + $0x238] sm:$0xff] }
 0x79b   : > { %2613 = vmatpush.msra.mxu0 %v2570_v30  ;;  %v2720_v30 = vld [vmem:[#allocation24 + $0x210] sm:$0xff] }
 0x79c   : > { %3555 = vmatmul.msk.f32.gmra.mxu0 %vm2377_vm9, %v2304_v9 }
 0x79d   : > { %2614 = vmatpush.msra.mxu0 %v2568_v33  ;;  %v2609_v33 = vld [vmem:[#allocation24 + $0x1f8] sm:$0xff] }
 0x79f   : > { %2615 = vmatpush.msra.mxu0 %v2566_v36  ;;  %v2606_v36 = vld [vmem:[#allocation24 + $0x1e0] sm:$0xff] }
 0x7a0   : > { %v2217_v11 = vpop.f32.mrf.mxu3 }
 0x7a1   : > { %v2223_v12 = vadd.f32 %v3824_v10, %v2217_v11  ;;  %v2298_v15 = vpop.f32.mrf.mxu2  ;;  %2616 = vmatpush.msra.mxu0 %v2564_v39  ;;  %v2742_v10 = vld [vmem:[#allocation24 + $0x2c0] sm:$0xff]  ;;  %v2743_v11 = vld [vmem:[#allocation24 + $0x2c8] sm:$0xff] }
 0x7a2   : > { %v2602_v39 = vld [vmem:[#allocation24 + $0x1c0] sm:$0xff] }
 0x7a3   : > { %v2262_v14 = vadd.f32 %v2259_v13, %v2223_v12  ;;  %2617 = vmatpush.msra.mxu0 %v2562_v42  ;;  %v2740_v12 = vld [vmem:[#allocation24 + $0x2b0] sm:$0xff]  ;;  %v2741_v13 = vld [vmem:[#allocation24 + $0x2b8] sm:$0xff] }
 0x7a4   : > { %v2601_v42 = vld [vmem:[#allocation24 + $0x1b8] sm:$0xff] }
 0x7a5   : > { %v2301_v16 = vadd.f32 %v2298_v15, %v2262_v14  ;;  %2618 = vmatpush.msra.mxu0 %v2560_v45  ;;  %v2738_v14 = vld [vmem:[#allocation24 + $0x2a0] sm:$0xff]  ;;  %v2739_v15 = vld [vmem:[#allocation24 + $0x2a8] sm:$0xff] }
 0x7a6   : > { %v5214_v45 = vld [vmem:[%s5322_s0] sm:$0x3] }
 0x7a7   : > { %2302 = vst [vmem:[%s1274_s15] sm:$0xff] %v2301_v16  ;;  %2619 = vmatpush.msra.mxu0 %v2558_v48  ;;  %v2737_v16 = vld [vmem:[#allocation24 + $0x298] sm:$0xff]  ;;  %v2485_v48 = vpop.f32.mrf.mxu1 }
 0x7a8   : > { %v2374_v17 = vpop.f32.mrf.mxu3 }
 0x7a9   : > { %2422 = vmatpush.msra.mxu2 %v2374_v17  ;;  %2620 = vmatpush.msra.mxu0 %v2556_v52  ;;  %v2735_v17 = vld [vmem:[#allocation24 + $0x288] sm:$0xff]  ;;  %v2464_v52 = vperm.slane %v5214_v45, 0 }
 0x7aa   : > { %3556 = vmatmul.msk.f32.vlgmr.msra.gmra.mxu2 %vm2377_vm9, %v2303_v7  ;;  %v2747_v7 = vld [vmem:[#allocation24 + $0x2e8] sm:$0xff] }
 0x7ab   : > { %2491 = vmatpush.msrb.mxu2 %v2461_v20  ;;  %2621 = vmatpush.msra.mxu0 %v2554_v56  ;;  %v2734_v20 = vld [vmem:[#allocation24 + $0x280] sm:$0xff] }
 0x7ac   : > { %2850 = vmatpush.msra.mxu1 %v2747_v7  ;;  %v2590_v56 = vld [vmem:[#allocation24 + $0x160] sm:$0xff] }
 0x7ad   : > { %2492 = vmatpush.msrb.mxu2 %v2459_v18  ;;  %2622 = vmatpush.msra.mxu0 %v2552_v58  ;;  %v2732_v18 = vld [vmem:[#allocation24 + $0x270] sm:$0xff]  ;;  %v2486_v58 = vadd.f32 %v2485_v48, %v2464_v52  ;;  %v2582_v7 = vld [vmem:[#allocation24 + $0x120] sm:$0xff]  ;;  %v2919_v48 = vld [vmem:[#allocation24 + $0x478] sm:$0xff] }
 0x7af   : > { %2493 = vmatpush.msrb.mxu2 %v2457_v19  ;;  %2623 = vmatpush.msra.mxu0 %v2550_v60  ;;  %v2733_v19 = vld [vmem:[#allocation24 + $0x278] sm:$0xff]  ;;  %v2588_v60 = vld [vmem:[#allocation24 + $0x150] sm:$0xff] }
 0x7b1   : > { %2494 = vmatpush.msrb.mxu2 %v2455_v21  ;;  %2624 = vmatpush.msra.mxu0 %v2548_v62  ;;  %v2730_v21 = vld [vmem:[#allocation24 + $0x260] sm:$0xff] }
 0x7b2   : > { %3557 = vmatmul.msk.f32.gmra.mxu2 %vm2377_vm9, %v2304_v9  ;;  %v2745_v9 = vld [vmem:[#allocation24 + $0x2d8] sm:$0xff] }
 0x7b3   : > { %2495 = vmatpush.msrb.mxu2 %v2453_v22  ;;  %2625 = vmatpush.msra.mxu0 %v2546_v3  ;;  %v2731_v22 = vld [vmem:[#allocation24 + $0x268] sm:$0xff] }
 0x7b4   : > { %2851 = vmatpush.msra.mxu1 %v2745_v9  ;;  %v2587_v3 = vld [vmem:[#allocation24 + $0x148] sm:$0xff] }
 0x7b5   : > { %2496 = vmatpush.msrb.mxu2 %v2451_v50  ;;  %2803 = vmatpush.msrb.mxu0 %v2748_v5  ;;  %v2728_v50 = vld [vmem:[#allocation24 + $0x250] sm:$0xff]  ;;  %v2488_v5 = vpop.f32.mrf.mxu1 }
 0x7b6   : > { %2852 = vmatpush.msra.mxu1 %v2743_v11  ;;  %v2489_v9 = vadd.f32 %v2488_v5, %v2464_v52  ;;  %v2580_v11 = vld [vmem:[#allocation24 + $0x110] sm:$0xff]  ;;  %v2769_v52 = vld [vmem:[#allocation24 + $0x398] sm:$0xff] }
 0x7b7   : > { %2497 = vmatpush.msrb.mxu2 %v2449_v26  ;;  %v2724_v26 = vld [vmem:[#allocation24 + $0x230] sm:$0xff] }
 0x7b8   : > { %2853 = vmatpush.msra.mxu1 %v2741_v13  ;;  %v2910_v5 = vld [vmem:[#allocation24 + $0x430] sm:$0xff] }
 0x7b9   : > { %2498 = vmatpush.msrb.mxu2 %v2447_v29  ;;  %v2723_v29 = vld [vmem:[#allocation24 + $0x228] sm:$0xff] }
 0x7ba   : > { %2854 = vmatpush.msra.mxu1 %v2739_v15  ;;  %v2579_v15 = vld [vmem:[#allocation24 + $0x108] sm:$0xff] }
 0x7bb   : > { %2499 = vmatpush.msrb.mxu2 %v2445_v32  ;;  %v2608_v32 = vld [vmem:[#allocation24 + $0x1f0] sm:$0xff] }
 0x7bc   : > { %2855 = vmatpush.msra.mxu1 %v2737_v16  ;;  %2633 = vmatpush.msrb.mxu3 %v2608_v32  ;;  %v2934_v16 = vld [vmem:[#allocation24 + $0x4f0] sm:$0xff]  ;;  %v2774_v32 = vld [vmem:[#allocation24 + $0x3c0] sm:$0xff] }
 0x7bd   : > { %2500 = vmatpush.msrb.mxu2 %v2443_v35  ;;  %v2719_v35 = vld [vmem:[#allocation24 + $0x208] sm:$0xff] }
 0x7be   : > { %2856 = vmatpush.msra.mxu1 %v2735_v17  ;;  %2634 = vmatpush.msrb.mxu3 %v2606_v36 }
 0x7bf   : > { %2501 = vmatpush.msrb.mxu2 %v2441_v38  ;;  %v2605_v38 = vld [vmem:[#allocation24 + $0x1d8] sm:$0xff] }
 0x7c0   : > { %2857 = vmatpush.msra.mxu1 %v2733_v19  ;;  %2635 = vmatpush.msrb.mxu3 %v2604_v37  ;;  %v2781_v19 = vld [vmem:[#allocation24 + $0x3f8] sm:$0xff] }
 0x7c1   : > { %2502 = vmatpush.msrb.mxu2 %v2439_v41  ;;  %v2600_v41 = vld [vmem:[#allocation24 + $0x1b0] sm:$0xff]  ;;  %v2773_v37 = vld [vmem:[#allocation24 + $0x3b8] sm:$0xff] }
 0x7c2   : > { %2858 = vmatpush.msra.mxu1 %v2731_v22  ;;  %2636 = vmatpush.msrb.mxu3 %v2602_v39  ;;  %v2932_v22 = vld [vmem:[#allocation24 + $0x4e0] sm:$0xff]  ;;  %v2923_v39 = vld [vmem:[#allocation24 + $0x498] sm:$0xff] }
 0x7c3   : > { %2503 = vmatpush.msrb.mxu2 %v2437_v44  ;;  %v2599_v44 = vld [vmem:[#allocation24 + $0x1a8] sm:$0xff] }
 0x7c4   : > { %2859 = vmatpush.msra.mxu1 %v2729_v54  ;;  %2637 = vmatpush.msrb.mxu3 %v2600_v41  ;;  %v2778_v54 = vld [vmem:[#allocation24 + $0x3e0] sm:$0xff] }
 0x7c5   : > { %2504 = vmatpush.msrb.mxu2 %v2435_v47  ;;  %v2597_v47 = vld [vmem:[#allocation24 + $0x198] sm:$0xff] }
 0x7c6   : > { %2860 = vmatpush.msra.mxu1 %v2727_v25  ;;  %2638 = vmatpush.msrb.mxu3 %v2598_v43  ;;  %v2931_v25 = vld [vmem:[#allocation24 + $0x4d8] sm:$0xff]  ;;  %v2771_v43 = vld [vmem:[#allocation24 + $0x3a8] sm:$0xff] }
 0x7c7   : > { %2505 = vmatpush.msrb.mxu2 %v2433_v51  ;;  %v2595_v51 = vld [vmem:[#allocation24 + $0x188] sm:$0xff] }
 0x7c8   : > { %2861 = vmatpush.msra.mxu1 %v2725_v27  ;;  %2639 = vmatpush.msrb.mxu3 %v2596_v46  ;;  %v2777_v27 = vld [vmem:[#allocation24 + $0x3d8] sm:$0xff]  ;;  %v2921_v46 = vld [vmem:[#allocation24 + $0x488] sm:$0xff] }
 0x7c9   : > { %2506 = vmatpush.msrb.mxu2 %v2431_v55  ;;  %v2593_v55 = vld [vmem:[#allocation24 + $0x178] sm:$0xff] }
 0x7ca   : > { %2507 = vmatmul.f32.vlgmr.msrb.gmra.mxu2 %v5190_v63  ;;  %v2746_v63 = vld [vmem:[#allocation24 + $0x2e0] sm:$0xff]  ;;  %2862 = vmatpush.msra.mxu1 %v2723_v29  ;;  %v2929_v29 = vld [vmem:[#allocation24 + $0x4c8] sm:$0xff] }
 0x7cb   : > { %2804 = vmatpush.msrb.mxu0 %v2746_v63  ;;  %2679 = vmatpush.msra.mxu2 %v2609_v33  ;;  %v2585_v63 = vld [vmem:[#allocation24 + $0x138] sm:$0xff]  ;;  %v2775_v33 = vld [vmem:[#allocation24 + $0x3c8] sm:$0xff] }
 0x7cc   : > { %2863 = vmatpush.msra.mxu1 %v2721_v31  ;;  %2640 = vmatpush.msrb.mxu3 %v2594_v49  ;;  %v2927_v31 = vld [vmem:[#allocation24 + $0x4b8] sm:$0xff] }
 0x7cd   : > { %2805 = vmatpush.msrb.mxu0 %v2744_v8  ;;  %2680 = vmatpush.msra.mxu2 %v2607_v0  ;;  %v2583_v8 = vld [vmem:[#allocation24 + $0x128] sm:$0xff]  ;;  %v2772_v0 = vld [vmem:[#allocation24 + $0x3b0] sm:$0xff] }
 0x7ce   : > { %2864 = vmatpush.msra.mxu1 %v2719_v35  ;;  %2641 = vmatpush.msrb.mxu3 %v2592_v53  ;;  %v2925_v35 = vld [vmem:[#allocation24 + $0x4a8] sm:$0xff]  ;;  %v2916_v53 = vld [vmem:[#allocation24 + $0x460] sm:$0xff] }
 0x7cf   : > { %2806 = vmatpush.msrb.mxu0 %v2742_v10  ;;  %2681 = vmatpush.msra.mxu2 %v2605_v38  ;;  %v2922_v38 = vld [vmem:[#allocation24 + $0x490] sm:$0xff] }
 0x7d0   : > { %2642 = vmatpush.msrb.mxu3 %v2590_v56 }
 0x7d1   : > { %2807 = vmatpush.msrb.mxu0 %v2740_v12  ;;  %2682 = vmatpush.msra.mxu2 %v2603_v40  ;;  %v2581_v12 = vld [vmem:[#allocation24 + $0x118] sm:$0xff] }
 0x7d2   : > { %2510 = vmatmul.f32.gmra.mxu2 %v5193_v1  ;;  %v2736_v1 = vld [vmem:[#allocation24 + $0x290] sm:$0xff]  ;;  %2643 = vmatpush.msrb.mxu3 %v2588_v60  ;;  %v2915_v60 = vld [vmem:[#allocation24 + $0x458] sm:$0xff] }
 0x7d3   : > { %2808 = vmatpush.msrb.mxu0 %v2738_v14  ;;  %2683 = vmatpush.msra.mxu2 %v2601_v42  ;;  %v2578_v14 = vld [vmem:[#allocation24 + $0x100] sm:$0xff] }
 0x7d4   : > { %2644 = vmatpush.msrb.mxu3 %v2586_v2  ;;  %v2770_v42 = vld [vmem:[#allocation24 + $0x3a0] sm:$0xff]  ;;  %v2765_v2 = vld [vmem:[#allocation24 + $0x378] sm:$0xff] }
 0x7d5   : > { %2809 = vmatpush.msrb.mxu0 %v2736_v1  ;;  %2684 = vmatpush.msra.mxu2 %v2599_v44  ;;  %v2920_v44 = vld [vmem:[#allocation24 + $0x480] sm:$0xff] }
 0x7d6   : > { %2645 = vmatpush.msrb.mxu3 %v2584_v6  ;;  %v2911_v6 = vld [vmem:[#allocation24 + $0x438] sm:$0xff] }
 0x7d7   : > { %2810 = vmatpush.msrb.mxu0 %v2734_v20  ;;  %2685 = vmatpush.msra.mxu2 %v2597_v47  ;;  %v2935_v20 = vld [vmem:[#allocation24 + $0x4f8] sm:$0xff]  ;;  %v2918_v47 = vld [vmem:[#allocation24 + $0x470] sm:$0xff] }
 0x7d8   : > { %2646 = vmatpush.msrb.mxu3 %v2582_v7  ;;  %v2762_v7 = vld [vmem:[#allocation24 + $0x360] sm:$0xff] }
 0x7d9   : > { %2811 = vmatpush.msrb.mxu0 %v2732_v18  ;;  %2686 = vmatpush.msra.mxu2 %v2595_v51  ;;  %v2780_v18 = vld [vmem:[#allocation24 + $0x3f0] sm:$0xff] }
 0x7da   : > { %2647 = vmatpush.msrb.mxu3 %v2580_v11  ;;  %v2768_v51 = vld [vmem:[#allocation24 + $0x390] sm:$0xff] }
 0x7db   : > { %2812 = vmatpush.msrb.mxu0 %v2730_v21  ;;  %2687 = vmatpush.msra.mxu2 %v2593_v55  ;;  %v2917_v55 = vld [vmem:[#allocation24 + $0x468] sm:$0xff] }
 0x7dc   : > { %2648 = vmatpush.msrb.mxu3 %v2578_v14 }
 0x7dd   : > { %2813 = vmatpush.msrb.mxu0 %v2728_v50  ;;  %2688 = vmatpush.msra.mxu2 %v2591_v57  ;;  %v2933_v50 = vld [vmem:[#allocation24 + $0x4e8] sm:$0xff]  ;;  %v2766_v57 = vld [vmem:[#allocation24 + $0x380] sm:$0xff] }
 0x7de   : > { %2826 = vmatpush.msra.mxu3 %v2780_v18  ;;  %v2759_v18 = vld [vmem:[#allocation24 + $0x348] sm:$0xff] }
 0x7df   : > { %2814 = vmatpush.msrb.mxu0 %v2726_v24  ;;  %2689 = vmatpush.msra.mxu2 %v2589_v61  ;;  %v2930_v24 = vld [vmem:[#allocation24 + $0x4d0] sm:$0xff] }
 0x7e0   : > { %2827 = vmatpush.msra.mxu3 %v2778_v54  ;;  %v2757_v54 = vld [vmem:[#allocation24 + $0x338] sm:$0xff] }
 0x7e1   : > { %2815 = vmatpush.msrb.mxu0 %v2724_v26  ;;  %2690 = vmatpush.msra.mxu2 %v2587_v3  ;;  %v2776_v26 = vld [vmem:[#allocation24 + $0x3d0] sm:$0xff]  ;;  %v2912_v3 = vld [vmem:[#allocation24 + $0x440] sm:$0xff] }
 0x7e2   : > { %2828 = vmatpush.msra.mxu3 %v2776_v26  ;;  %v2752_v26 = vld [vmem:[#allocation24 + $0x310] sm:$0xff] }
 0x7e3   : > { %2816 = vmatpush.msrb.mxu0 %v2722_v28  ;;  %2691 = vmatpush.msra.mxu2 %v2585_v63  ;;  %v2928_v28 = vld [vmem:[#allocation24 + $0x4c0] sm:$0xff] }
 0x7e4   : > { %2829 = vmatpush.msra.mxu3 %v2774_v32 }
 0x7e5   : > { %2817 = vmatpush.msrb.mxu0 %v2720_v30  ;;  %2692 = vmatpush.msra.mxu2 %v2583_v8  ;;  %v2926_v30 = vld [vmem:[#allocation24 + $0x4b0] sm:$0xff]  ;;  %v2763_v8 = vld [vmem:[#allocation24 + $0x368] sm:$0xff] }
 0x7e6   : > { %2830 = vmatpush.msra.mxu3 %v2772_v0 }
 0x7e7   : > { %2818 = vmatpush.msrb.mxu0 %v2718_v34  ;;  %2693 = vmatpush.msra.mxu2 %v2581_v12  ;;  %v2924_v34 = vld [vmem:[#allocation24 + $0x4a0] sm:$0xff]  ;;  %v2760_v12 = vld [vmem:[#allocation24 + $0x350] sm:$0xff] }
 0x7e8   : > { %2831 = vmatpush.msra.mxu3 %v2770_v42  ;;  %v2967_v42 = vld [vmem:[#allocation24 + $0x5f8] sm:$0xff] }
 0x7e9   : > { %2694 = vmatpush.msra.mxu2 %v2579_v15  ;;  %v2906_v15 = vld [vmem:[#allocation24 + $0x410] sm:$0xff] }
 0x7ea   : > { %2832 = vmatpush.msra.mxu3 %v2768_v51  ;;  %v2961_v51 = vld [vmem:[#allocation24 + $0x5c8] sm:$0xff] }
 0x7eb   : > { %2872 = vmatpush.msrb.mxu2 %v2781_v19  ;;  %v2904_v19 = vld [vmem:[#allocation24 + $0x400] sm:$0xff] }
 0x7ec   : > { %2833 = vmatpush.msra.mxu3 %v2766_v57 }
 0x7ed   : > { %2873 = vmatpush.msrb.mxu2 %v2779_v23 }
 0x7ef   : > { %2874 = vmatpush.msrb.mxu2 %v2777_v27  ;;  %v2753_v27 = vld [vmem:[#allocation24 + $0x318] sm:$0xff] }
 0x7f1   : > { %2875 = vmatpush.msrb.mxu2 %v2775_v33  ;;  %v2465_v33 = vperm.slane %v5214_v45, 1  ;;  %v2965_v45 = vld [vmem:[#allocation24 + $0x5e8] sm:$0xff] }
 0x7f3   : > { %2876 = vmatpush.msrb.mxu2 %v2773_v37 }
 0x7f5   : > { %2877 = vmatpush.msrb.mxu2 %v2771_v43 }
 0x7f7   : > { %2878 = vmatpush.msrb.mxu2 %v2769_v52  ;;  %v2958_v52 = vld [vmem:[#allocation24 + $0x5b0] sm:$0xff] }
 0x811   : > { %v2401_v59 = vpop.f32.mrf.mxu0 }
 0x812   : > { %v2514_v62 = vadd.f32 %v2486_v58, %v2401_v59  ;;  %v2767_v58 = vld [vmem:[#allocation24 + $0x388] sm:$0xff]  ;;  %v2914_v59 = vld [vmem:[#allocation24 + $0x450] sm:$0xff] }
 0x813   : > { %2879 = vmatpush.msrb.mxu2 %v2767_v58  ;;  %v2954_v58 = vld [vmem:[#allocation24 + $0x590] sm:$0xff] }
 0x814   : > { %v2523_v4 = vrot.slane %v2514_v62, 7  ;;  %v2764_v62 = vld [vmem:[#allocation24 + $0x370] sm:$0xff] }
 0x815   : > { %2834 = vmatpush.msra.mxu3 %v2764_v62  ;;  %2880 = vmatpush.msrb.mxu2 %v2765_v2  ;;  %v2952_v62 = vld [vmem:[#allocation24 + $0x580] sm:$0xff]  ;;  %v2953_v2 = vld [vmem:[#allocation24 + $0x588] sm:$0xff] }
 0x816   : > { %2535 = vst [vmem:[#allocation7] sm:$0xfe] %v2523_v4 }
 0x817   : > { %2835 = vmatpush.msra.mxu3 %v2762_v7  ;;  %2881 = vmatpush.msrb.mxu2 %v2763_v8  ;;  %v2946_v8 = vld [vmem:[#allocation24 + $0x550] sm:$0xff] }
 0x819   : > { %v2404_v10 = vpop.f32.mrf.mxu0  ;;  %2836 = vmatpush.msra.mxu3 %v2760_v12  ;;  %v2945_v12 = vld [vmem:[#allocation24 + $0x548] sm:$0xff] }
 0x81a   : > { %v2516_v13 = vadd.f32 %v2489_v9, %v2404_v10  ;;  %v2908_v9 = vld [vmem:[#allocation24 + $0x420] sm:$0xff]  ;;  %v2909_v10 = vld [vmem:[#allocation24 + $0x428] sm:$0xff] }
 0x81c   : > { %v2525_v1 = vrot.slane %v2516_v13, 7  ;;  %v2761_v13 = vld [vmem:[#allocation24 + $0x358] sm:$0xff] }
 0x81d   : > { %v2542_v17 = vld [vmem:[#allocation7] sm:$0xff]  ;;  %2882 = vmatpush.msrb.mxu2 %v2761_v13  ;;  %v2942_v13 = vld [vmem:[#allocation24 + $0x530] sm:$0xff] }
 0x81e   : > { %v5218_v21 = vsel %vm2522_vm11, %v2523_v4, %v2525_v1  ;;  %2539 = vst [vmem:[#allocation7 + $0x20] sm:$0x1] %v2525_v1  ;;  %2626 = vmatmul.f32.vlgmr.msra.gmra.mxu0 %v2542_v17  ;;  %2672 = vmatmul.f32.vlgmr.msrb.gmra.mxu1 %v2542_v17  ;;  %v2711_v36 = vld [vmem:[#allocation7] sm:$0xfe]  ;;  %v2907_v1 = vld [vmem:[#allocation24 + $0x418] sm:$0xff] }
 0x81f   : > { %2987 = vmatpush.msra.mxu0 %v2934_v16  ;;  %3033 = vmatpush.msrb.mxu1 %v2935_v20  ;;  %v2789_v40 = vrot.slane %v2711_v36, 1  ;;  %v2790_v41 = vrot.slane %v5218_v21, 1  ;;  %v2913_v4 = vld [vmem:[#allocation24 + $0x448] sm:$0xff]  ;;  %v2974_v20 = vrot.slane %v5218_v21, 2  ;;  %v2758_v17 = vld [vmem:[#allocation24 + $0x340] sm:$0xff] }
 0x820   : > { %v2899_v11 = vld [vmem:[#allocation7] sm:$0xfc]  ;;  %2837 = vmatpush.msra.mxu3 %v2758_v17  ;;  %2883 = vmatpush.msrb.mxu2 %v2759_v18  ;;  %v2938_v17 = vld [vmem:[#allocation24 + $0x510] sm:$0xff]  ;;  %v2939_v18 = vld [vmem:[#allocation24 + $0x518] sm:$0xff] }
 0x821   : > { %2988 = vmatpush.msra.mxu0 %v2932_v22  ;;  %3034 = vmatpush.msrb.mxu1 %v2933_v50  ;;  %v2791_v49 = vsel %vm2788_vm12, %v2789_v40, %v2790_v41  ;;  %v2973_v16 = vrot.slane %v2899_v11, 2  ;;  %v2905_v22 = vld [vmem:[#allocation24 + $0x408] sm:$0xff]  ;;  %v2756_v50 = vld [vmem:[#allocation24 + $0x330] sm:$0xff]  ;;  %v2944_v11 = vld [vmem:[#allocation24 + $0x540] sm:$0xff] }
 0x822   : > { %2838 = vmatpush.msra.mxu3 %v2756_v50  ;;  %2884 = vmatpush.msrb.mxu2 %v2757_v54  ;;  %v2936_v50 = vld [vmem:[#allocation24 + $0x500] sm:$0xff]  ;;  %v2937_v54 = vld [vmem:[#allocation24 + $0x508] sm:$0xff] }
 0x823   : > { %2989 = vmatpush.msra.mxu0 %v2930_v24  ;;  %3035 = vmatpush.msrb.mxu1 %v2931_v25  ;;  %v2975_v23 = vsel %vm2972_vm13, %v2973_v16, %v2974_v20  ;;  %v2754_v24 = vld [vmem:[#allocation24 + $0x320] sm:$0xff]  ;;  %v2755_v25 = vld [vmem:[#allocation24 + $0x328] sm:$0xff] }
 0x824   : > { %2839 = vmatpush.msra.mxu3 %v2754_v24  ;;  %2885 = vmatpush.msrb.mxu2 %v2755_v25  ;;  %v2941_v16 = vld [vmem:[#allocation24 + $0x528] sm:$0xff] }
 0x825   : > { %2990 = vmatpush.msra.mxu0 %v2928_v28  ;;  %3036 = vmatpush.msrb.mxu1 %v2929_v29  ;;  %v2715_v56 = vld [vmem:[#allocation7 + $0x20] sm:$0x1] }
 0x826   : > { %2629 = vmatmul.f32.gmra.mxu0 %v5218_v21  ;;  %2675 = vmatmul.f32.gmra.mxu1 %v5218_v21  ;;  %v2795_v61 = vrot.slane %v2715_v56, 1  ;;  %v2901_v21 = vld [vmem:[#allocation7 + $0x20] sm:$0x3]  ;;  %v2957_v56 = vld [vmem:[#allocation24 + $0x5a8] sm:$0xff] }
 0x827   : > { %2991 = vmatpush.msra.mxu0 %v2926_v30  ;;  %3037 = vmatpush.msrb.mxu1 %v2927_v31  ;;  %v2979_v28 = vrot.slane %v2901_v21, 2  ;;  %v2750_v30 = vld [vmem:[#allocation24 + $0x300] sm:$0xff]  ;;  %v2751_v31 = vld [vmem:[#allocation24 + $0x308] sm:$0xff] }
 0x828   : > { %v2796_v63 = vsel %vm2788_vm12, %v2790_v41, %v2795_v61  ;;  %2840 = vmatpush.msra.mxu3 %v2752_v26  ;;  %2886 = vmatpush.msrb.mxu2 %v2753_v27  ;;  %v2966_v41 = vld [vmem:[#allocation24 + $0x5f0] sm:$0xff] }
 0x829   : > { %2992 = vmatpush.msra.mxu0 %v2924_v34  ;;  %3038 = vmatpush.msrb.mxu1 %v2925_v35  ;;  %v2980_v32 = vsel %vm2972_vm13, %v2974_v20, %v2979_v28 }
 0x82a   : > { %2841 = vmatpush.msra.mxu3 %v2750_v30  ;;  %2887 = vmatpush.msrb.mxu2 %v2751_v31 }
 0x82b   : > { %2993 = vmatpush.msra.mxu0 %v2922_v38  ;;  %3039 = vmatpush.msrb.mxu1 %v2923_v39 }
 0x82d   : > { %2994 = vmatpush.msra.mxu0 %v2920_v44  ;;  %3040 = vmatpush.msrb.mxu1 %v2921_v46  ;;  %v2424_v14 = vpop.f32.mrf.mxu2  ;;  %v2964_v46 = vld [vmem:[#allocation24 + $0x5e0] sm:$0xff] }
 0x82e   : > { %2819 = vmatmul.f32.vlgmr.msrb.gmra.mxu0 %v2791_v49  ;;  %2865 = vmatmul.f32.vlgmr.msra.gmra.mxu1 %v2791_v49  ;;  %v2960_v49 = vld [vmem:[#allocation24 + $0x5c0] sm:$0xff] }
 0x82f   : > { %2995 = vmatpush.msra.mxu0 %v2918_v47  ;;  %3041 = vmatpush.msrb.mxu1 %v2919_v48  ;;  %v2962_v47 = vld [vmem:[#allocation24 + $0x5d0] sm:$0xff]  ;;  %v2963_v48 = vld [vmem:[#allocation24 + $0x5d8] sm:$0xff] }
 0x831   : > { %2996 = vmatpush.msra.mxu0 %v2916_v53  ;;  %3042 = vmatpush.msrb.mxu1 %v2917_v55  ;;  %v2959_v53 = vld [vmem:[#allocation24 + $0x5b8] sm:$0xff]  ;;  %v2956_v55 = vld [vmem:[#allocation24 + $0x5a0] sm:$0xff] }
 0x833   : > { %2997 = vmatpush.msra.mxu0 %v2914_v59  ;;  %3043 = vmatpush.msrb.mxu1 %v2915_v60  ;;  %v2955_v59 = vld [vmem:[#allocation24 + $0x598] sm:$0xff] }
 0x835   : > { %2998 = vmatpush.msra.mxu0 %v2912_v3  ;;  %3044 = vmatpush.msrb.mxu1 %v2913_v4  ;;  %v2427_v29 = vpop.f32.mrf.mxu2  ;;  %v2950_v3 = vld [vmem:[#allocation24 + $0x570] sm:$0xff]  ;;  %v2951_v4 = vld [vmem:[#allocation24 + $0x578] sm:$0xff] }
 0x836   : > { %2822 = vmatmul.f32.gmra.mxu0 %v2796_v63  ;;  %2868 = vmatmul.f32.gmra.mxu1 %v2796_v63  ;;  %v2949_v63 = vld [vmem:[#allocation24 + $0x568] sm:$0xff] }
 0x837   : > { %2999 = vmatpush.msra.mxu0 %v2910_v5  ;;  %3045 = vmatpush.msrb.mxu1 %v2911_v6  ;;  %v2948_v6 = vld [vmem:[#allocation24 + $0x560] sm:$0xff] }
 0x839   : > { %3000 = vmatpush.msra.mxu0 %v2908_v9  ;;  %3046 = vmatpush.msrb.mxu1 %v2909_v10  ;;  %v2947_v9 = vld [vmem:[#allocation24 + $0x558] sm:$0xff] }
 0x83b   : > { %3001 = vmatpush.msra.mxu0 %v2906_v15  ;;  %3047 = vmatpush.msrb.mxu1 %v2907_v1  ;;  %v2940_v1 = vld [vmem:[#allocation24 + $0x520] sm:$0xff] }
 0x83d   : > { %3002 = vmatpush.msra.mxu0 %v2904_v19  ;;  %3048 = vmatpush.msrb.mxu1 %v2905_v22 }
 0x83e   : > { %3003 = vmatmul.f32.vlgmr.msra.gmra.mxu0 %v2975_v23  ;;  %3049 = vmatmul.f32.vlgmr.msrb.gmra.mxu1 %v2975_v23 }
 0x846   : > { %3006 = vmatmul.f32.gmra.mxu0 %v2980_v32  ;;  %3052 = vmatmul.f32.gmra.mxu1 %v2980_v32 }
 0x84d   : > { %v2508_v34 = vpop.f32.mrf.mxu2 }
 0x84e   : > { %v2509_v35 = vadd.f32 %v2508_v34, %v2465_v33 }
 0x850   : > { %v2515_v36 = vadd.f32 %v2509_v35, %v2424_v14  ;;  %v2943_v14 = vld [vmem:[#allocation24 + $0x538] sm:$0xff] }
 0x852   : > { %v2524_v0 = vrot.slane %v2515_v36, 7 }
 0x854   : > { %2536 = vst [vmem:[#allocation7 + $0x8] sm:$0xfe] %v2524_v0 }
 0x855   : > { %v2511_v37 = vpop.f32.mrf.mxu2 }
 0x856   : > { %v2512_v38 = vadd.f32 %v2511_v37, %v2465_v33 }
 0x858   : > { %v2517_v39 = vadd.f32 %v2512_v38, %v2427_v29 }
 0x85a   : > { %v2527_v40 = vrot.slane %v2517_v39, 7  ;;  %v2541_v39 = vld [vmem:[%s5323_s2] sm:$0x3] }
 0x85b   : > { %v2543_v43 = vld [vmem:[#allocation7 + $0x8] sm:$0xff] }
 0x85c   : > { %v5230_v44 = vsel %vm2522_vm11, %v2524_v0, %v2527_v40  ;;  %2540 = vst [vmem:[#allocation7 + $0x28] sm:$0x1] %v2527_v40  ;;  %2649 = vmatmul.f32.vlgmr.msrb.gmra.mxu3 %v2543_v43  ;;  %2695 = vmatmul.f32.vlgmr.msra.gmra.mxu2 %v2543_v43  ;;  %v2712_v57 = vld [vmem:[#allocation7 + $0x8] sm:$0xfe]  ;;  %v2703_v43 = vperm.slane %v2541_v39, 0 }
 0x85d   : > { %3010 = vmatpush.msrb.mxu3 %v2966_v41  ;;  %3056 = vmatpush.msra.mxu2 %v2967_v42  ;;  %v2792_v60 = vrot.slane %v2712_v57, 1  ;;  %v2793_v61 = vrot.slane %v5230_v44, 1  ;;  %v2900_v20 = vld [vmem:[#allocation7 + $0x8] sm:$0xfc]  ;;  %v2977_v22 = vrot.slane %v5230_v44, 2 }
 0x85e   : > { %v2976_v19 = vrot.slane %v2900_v20, 2 }
 0x85f   : > { %3011 = vmatpush.msrb.mxu3 %v2964_v46  ;;  %3057 = vmatpush.msra.mxu2 %v2965_v45  ;;  %v2794_v5 = vsel %vm2788_vm12, %v2792_v60, %v2793_v61  ;;  %v2704_v46 = vperm.slane %v2541_v39, 1 }
 0x860   : > { %v2978_v23 = vsel %vm2972_vm13, %v2976_v19, %v2977_v22 }
 0x861   : > { %3012 = vmatpush.msrb.mxu3 %v2962_v47  ;;  %3058 = vmatpush.msra.mxu2 %v2963_v48 }
 0x863   : > { %3013 = vmatpush.msrb.mxu3 %v2960_v49  ;;  %3059 = vmatpush.msra.mxu2 %v2961_v51  ;;  %v2716_v7 = vld [vmem:[#allocation7 + $0x28] sm:$0x1] }
 0x864   : > { %2652 = vmatmul.f32.gmra.mxu3 %v5230_v44  ;;  %2698 = vmatmul.f32.gmra.mxu2 %v5230_v44  ;;  %v2797_v10 = vrot.slane %v2716_v7, 1  ;;  %v2902_v21 = vld [vmem:[#allocation7 + $0x28] sm:$0x3] }
 0x865   : > { %3014 = vmatpush.msrb.mxu3 %v2958_v52  ;;  %3060 = vmatpush.msra.mxu2 %v2959_v53  ;;  %v2981_v24 = vrot.slane %v2902_v21, 2 }
 0x866   : > { %v2798_v15 = vsel %vm2788_vm12, %v2793_v61, %v2797_v10 }
 0x867   : > { %3015 = vmatpush.msrb.mxu3 %v2956_v55  ;;  %3061 = vmatpush.msra.mxu2 %v2957_v56  ;;  %v2982_v25 = vsel %vm2972_vm13, %v2977_v22, %v2981_v24 }
 0x869   : > { %3016 = vmatpush.msrb.mxu3 %v2954_v58  ;;  %3062 = vmatpush.msra.mxu2 %v2955_v59 }
 0x86b   : > { %3017 = vmatpush.msrb.mxu3 %v2952_v62  ;;  %3063 = vmatpush.msra.mxu2 %v2953_v2 }
 0x86c   : > { %2842 = vmatmul.f32.vlgmr.msra.gmra.mxu3 %v2794_v5  ;;  %2888 = vmatmul.f32.vlgmr.msrb.gmra.mxu2 %v2794_v5 }
 0x86d   : > { %3018 = vmatpush.msrb.mxu3 %v2950_v3  ;;  %3064 = vmatpush.msra.mxu2 %v2951_v4 }
 0x86f   : > { %3019 = vmatpush.msrb.mxu3 %v2948_v6  ;;  %3065 = vmatpush.msra.mxu2 %v2949_v63 }
 0x871   : > { %3020 = vmatpush.msrb.mxu3 %v2946_v8  ;;  %3066 = vmatpush.msra.mxu2 %v2947_v9 }
 0x873   : > { %3021 = vmatpush.msrb.mxu3 %v2944_v11  ;;  %3067 = vmatpush.msra.mxu2 %v2945_v12 }
 0x874   : > { %2845 = vmatmul.f32.gmra.mxu3 %v2798_v15  ;;  %2891 = vmatmul.f32.gmra.mxu2 %v2798_v15 }
 0x875   : > { %3022 = vmatpush.msrb.mxu3 %v2942_v13  ;;  %3068 = vmatpush.msra.mxu2 %v2943_v14 }
 0x877   : > { %3023 = vmatpush.msrb.mxu3 %v2940_v1  ;;  %3069 = vmatpush.msra.mxu2 %v2941_v16 }
 0x879   : > { %3024 = vmatpush.msrb.mxu3 %v2938_v17  ;;  %3070 = vmatpush.msra.mxu2 %v2939_v18 }
 0x87b   : > { %3025 = vmatpush.msrb.mxu3 %v2936_v50  ;;  %3071 = vmatpush.msra.mxu2 %v2937_v54 }
 0x87c   : > { %3026 = vmatmul.f32.vlgmr.msrb.gmra.mxu3 %v2978_v23  ;;  %3072 = vmatmul.f32.vlgmr.msra.gmra.mxu2 %v2978_v23 }
 0x884   : > { %3029 = vmatmul.f32.gmra.mxu3 %v2982_v25  ;;  %3075 = vmatmul.f32.gmra.mxu2 %v2982_v25 }
 0x89b   : > { %v2627_v26 = vpop.f32.mrf.mxu0  ;;  %v2673_v27 = vpop.f32.mrf.mxu1 }
 0x8a3   : > { %v2630_v28 = vpop.f32.mrf.mxu0  ;;  %v2676_v29 = vpop.f32.mrf.mxu1 }
 0x8ab   : > { %v2820_v34 = vpop.f32.mrf.mxu0  ;;  %v2866_v35 = vpop.f32.mrf.mxu1 }
 0x8b3   : > { %v2823_v37 = vpop.f32.mrf.mxu0  ;;  %v2869_v38 = vpop.f32.mrf.mxu1 }
 0x8bb   : > { %v3004_v45 = vpop.f32.mrf.mxu0  ;;  %v3050_v47 = vpop.f32.mrf.mxu1 }
 0x8c3   : > { %v3007_v5 = vpop.f32.mrf.mxu0  ;;  %v3053_v6 = vpop.f32.mrf.mxu1 }
 0x8df   : > { %v2650_v30 = vpop.f32.mrf.mxu3  ;;  %v2696_v31 = vpop.f32.mrf.mxu2 }
 0x8e0   : > { %v2651_v42 = vadd.f32 %v2650_v30, %v2627_v26  ;;  %v2697_v44 = vadd.f32 %v2696_v31, %v2673_v27 }
 0x8e2   : > { %v2707_v51 = vadd.f32 %v2703_v43, %v2651_v42  ;;  %v2708_v52 = vadd.f32 %v2704_v46, %v2697_v44 }
 0x8e7   : > { %v2653_v32 = vpop.f32.mrf.mxu3  ;;  %v2699_v33 = vpop.f32.mrf.mxu2 }
 0x8e8   : > { %v2654_v60 = vadd.f32 %v2653_v32, %v2630_v28  ;;  %v2700_v61 = vadd.f32 %v2699_v33, %v2676_v29 }
 0x8ea   : > { %v2709_v63 = vadd.f32 %v2703_v43, %v2654_v60  ;;  %v2710_v7 = vadd.f32 %v2704_v46, %v2700_v61 }
 0x8ef   : > { %v2843_v36 = vpop.f32.mrf.mxu3  ;;  %v2889_v0 = vpop.f32.mrf.mxu2 }
 0x8f0   : > { %v2844_v48 = vadd.f32 %v2843_v36, %v2820_v34  ;;  %v2890_v49 = vadd.f32 %v2889_v0, %v2866_v35 }
 0x8f2   : > { %v2895_v56 = vadd.f32 %v2844_v48, %v2707_v51  ;;  %v2896_v57 = vadd.f32 %v2890_v49, %v2708_v52 }
 0x8f7   : > { %v2846_v40 = vpop.f32.mrf.mxu3  ;;  %v2892_v41 = vpop.f32.mrf.mxu2 }
 0x8f8   : > { %v2847_v3 = vadd.f32 %v2846_v40, %v2823_v37  ;;  %v2893_v4 = vadd.f32 %v2892_v41, %v2869_v38 }
 0x8fa   : > { %v2897_v10 = vadd.f32 %v2847_v3, %v2709_v63  ;;  %v2898_v11 = vadd.f32 %v2893_v4, %v2710_v7 }
 0x8ff   : > { %v3027_v53 = vpop.f32.mrf.mxu3  ;;  %v3073_v55 = vpop.f32.mrf.mxu2 }
 0x900   : > { %v3028_v58 = vadd.f32 %v3027_v53, %v3004_v45  ;;  %v3074_v59 = vadd.f32 %v3073_v55, %v3050_v47 }
 0x902   : > { %v3079_v62 = vadd.f32 %v3028_v58, %v2895_v56  ;;  %v3080_v2 = vadd.f32 %v3074_v59, %v2896_v57 }
 0x904   : > { %3083 = vst [vmem:[%s1270_s28] sm:$0xff] %v3079_v62 }
 0x905   : > { %3084 = vst [vmem:[%s1270_s28 + $0x8] sm:$0xff] %v3080_v2 }
 0x907   : > { %v3030_v8 = vpop.f32.mrf.mxu3  ;;  %v3076_v9 = vpop.f32.mrf.mxu2 }
 0x908   : > { %v3031_v12 = vadd.f32 %v3030_v8, %v3007_v5  ;;  %v3077_v13 = vadd.f32 %v3076_v9, %v3053_v6 }
 0x90a   : > { %v3081_v14 = vadd.f32 %v3031_v12, %v2897_v10  ;;  %v3082_v15 = vadd.f32 %v3077_v13, %v2898_v11 }
 0x90c   : > { %3085 = vst [vmem:[%s1270_s28 + $0x10] sm:$0xff] %v3081_v14 }
 0x90d   : > { %3086 = vst [vmem:[%s1270_s28 + $0x18] sm:$0xff] %v3082_v15 }
 0x90e PF: > { %s5324_s16 = sld [smem:[#allocation71_spill]] }
 0x914   : > { %s83_s15 = sadd.s32 1, %s5324_s16  }
 0x915   : > { %p80_p2 = scmp.ge.s32.totalorder %s83_s15, 4  }
 0x917   :  { %82 = sbr.rel (!%p80_p2) target bundleno = 63 (0x3f), region = 318 }
 0x91c   :  { %3136 = vsyncpa [#allocation9], 1 }
 0x91d   :  { %3138 = vsyncpa [#allocation9 + $0x1], 1 }
 0x91e   :  { %3139 = vsyncpa [#allocation11], 1 }
 0x91f   :  { %3140 = vsyncpa [#allocation14], 1 }
 0x920   :  { %3141 = vsyncpa [#allocation17], 1 }
 0x921   :  { %3142 = vsyncpa [#allocation20], 1 }
 0x922   :  { %3143 = vsyncpa [#allocation23], 1 }
 0x923   :  { %3144 = vsyncpa [#allocation26], 1 }
 0x924   :  { %3145 = vsyncpa [#allocation29], 1 }
 0x925   :  { %3146 = vsyncpa [#allocation32], 1 }
 0x926   :  { %3147 = vsyncpa [#allocation35], 1 }
 0x927   :  { %3148 = vsyncpa [#allocation38], 1 }

</bundles_post_ra>
